<compile_context>
chip_gen: v7x
topology: tpu7x:2x2x1
jax: 0.10.0
libtpu: 0.0.40
codegen_flags: <defaults>
</compile_context>

<pallas_src>
import jax
import jax.numpy as jnp
from jax.experimental import pallas as pl
from jax.experimental.pallas import tpu as pltpu

# ----------------------------- small config --------------------------------
IMG = 16            # (module default 224)
PATCH = 4           # (module default 16)
IN_CH = 3
EMBED = 32          # (module default 384)
DEPTH = 2           # (module implies 12 ViT blocks; small synthetic depth)
HEADS = 2
HEAD_DIM = EMBED // HEADS
MLP_RATIO = 4
MLP_DIM = MLP_RATIO * EMBED
N_PATCH = (IMG // PATCH) ** 2         # patches per image (search grid == template grid here)
SEQ = 2 * N_PATCH                     # concatenated [search ; template] tokens
PATCH_DIM = IN_CH * PATCH * PATCH
EPS = 1e-6

assert DEPTH >= 2
assert EMBED % HEADS == 0

# backwards-compatible name guard (CompilerParams is the current API)
_CompilerParams = getattr(pltpu, "CompilerParams", None) or getattr(pltpu, "TPUCompilerParams")


# ----------------------------- kernel helpers -------------------------------
def _ln(x, g, b):
    mu = jnp.mean(x, axis=-1, keepdims=True)
    var = jnp.mean((x - mu) ** 2, axis=-1, keepdims=True)
    return (x - mu) * jax.lax.rsqrt(var + EPS) * g + b


def _gelu_tanh(x):
    # TODO(synk): PyTorch nn.GELU default is exact erf; tanh approximation differs by ~1e-3.
    c = 0.7978845608028654  # sqrt(2/pi)
    return 0.5 * x * (1.0 + jnp.tanh(c * (x + 0.044715 * x * x * x)))


# ----------------------------- fused Pallas kernel --------------------------
def fused_backbone_kernel(xp_ref, zp_ref, pw_ref, pb_ref, pos_ref,
                          wqkv_ref, bqkv_ref, wo_ref, vece_ref,
                          w1_ref, b1_ref, w2_ref, norm_ref,
                          emb_ref, inter_ref, out_ref):
    # ---- fused patch embedding for search (x) and template (z) + bias + pos ----
    patches = jnp.concatenate([xp_ref[0], zp_ref[0]], axis=0)          # (SEQ, D)
    pos = pos_ref[...]                                                 # (N, E)
    pos2 = jnp.concatenate([pos, pos], axis=0)                         # (SEQ, E)
    tok = (jnp.dot(patches, pw_ref[...], preferred_element_type=jnp.float32)
           + pb_ref[...] + pos2)                                       # (SEQ, E)
    emb_ref[0] = tok        # outputs['input_embeding']  (pos_drop == identity in eval)

    scale = 1.0 / (HEAD_DIM ** 0.5)
    t = tok
    for d in range(DEPTH):                       # static unroll over transformer blocks
        ve = vece_ref[d]                         # (6, E): ln1_g, ln1_b, bo, ln2_g, ln2_b, b2
        bqkv = bqkv_ref[d]                       # (3*HEADS, HEAD_DIM)

        # ---- multi-head self-attention (pre-LN) ----
        h = _ln(t, ve[0:1], ve[1:2])
        qkv = []
        for j in range(3):                       # q, k, v projections (per-head weight slabs,
            heads = []                           # leading-dim indexed -> no lane slicing)
            for hh in range(HEADS):
                w = wqkv_ref[(d * 3 + j) * HEADS + hh]                 # (E, Dh) view
                b = bqkv[j * HEADS + hh:j * HEADS + hh + 1]            # (1, Dh)
                heads.append(jnp.dot(h, w, preferred_element_type=jnp.float32) + b)
            qkv.append(jnp.stack(heads, axis=0))                       # (H, SEQ, Dh)
        q, k, v = qkv

        # head-batched scores / context (single 3-D dot_general each)
        s = jnp.einsum('hqd,hkd->hqk', q, k,
                       preferred_element_type=jnp.float32) * scale     # (H, SEQ, SEQ)
        s = s - jnp.max(s, axis=-1, keepdims=True)
        p = jnp.exp(s)
        p = p * pl.reciprocal(jnp.sum(p, axis=-1, keepdims=True), approx=True)
        ctx = jnp.einsum('hqk,hkd->hqd', p, v,
                         preferred_element_type=jnp.float32)           # (H, SEQ, Dh)
        ctx = jnp.concatenate([ctx[hh] for hh in range(HEADS)], axis=-1)  # (SEQ, E)

        # single full-width output projection
        t = t + jnp.dot(ctx, wo_ref[d], preferred_element_type=jnp.float32) + ve[2:3]

        # ---- MLP (pre-LN) ----
        h2 = _ln(t, ve[3:4], ve[4:5])
        m = _gelu_tanh(jnp.dot(h2, w1_ref[d], preferred_element_type=jnp.float32)
                       + b1_ref[d])
        t = t + jnp.dot(m, w2_ref[d], preferred_element_type=jnp.float32) + ve[5:6]

        if d != DEPTH - 1:
            inter_ref[d, 0] = t                  # outputs[d]

    ngb = norm_ref[...]                          # (2, E): [norm_g, norm_b]
    out_ref[0] = _ln(t, ngb[0:1], ngb[1:2])      # outputs[DEPTH - 1]


# ----------------------------- pallas wrapper --------------------------------
def _pallas_backbone(xp, zp, pk):
    B = xp.shape[0]

    def const_spec(shape):
        nd = len(shape)
        return pl.BlockSpec(shape, lambda b, _nd=nd: (0,) * _nd)

    return pl.pallas_call(
        fused_backbone_kernel,
        out_shape=(
            jax.ShapeDtypeStruct((B, SEQ, EMBED), jnp.float32),             # input_embeding
            jax.ShapeDtypeStruct((DEPTH - 1, B, SEQ, EMBED), jnp.float32),  # block outputs 0..DEPTH-2
            jax.ShapeDtypeStruct((B, SEQ, EMBED), jnp.float32),             # norm(last block)
        ),
        grid=(B,),
        in_specs=[
            pl.BlockSpec((1, N_PATCH, PATCH_DIM), lambda b: (b, 0, 0)),     # x patches
            pl.BlockSpec((1, N_PATCH, PATCH_DIM), lambda b: (b, 0, 0)),     # z patches
            const_spec((PATCH_DIM, EMBED)),                                 # patch proj weight
            const_spec((1, EMBED)),                                         # patch proj bias
            const_spec((N_PATCH, EMBED)),                                   # pos_embed_x
            const_spec((DEPTH * 3 * HEADS, EMBED, HEAD_DIM)),               # per-head qkv weights
            const_spec((DEPTH, 3 * HEADS, HEAD_DIM)),                       # per-head qkv biases
            const_spec((DEPTH, EMBED, EMBED)),                              # wo
            const_spec((DEPTH, 6, EMBED)),                                  # packed small vectors
            const_spec((DEPTH, EMBED, MLP_DIM)),                            # w1
            const_spec((DEPTH, 1, MLP_DIM)),                                # b1
            const_spec((DEPTH, MLP_DIM, EMBED)),                            # w2
            const_spec((2, EMBED)),                                         # final norm g/b
        ],
        out_specs=(
            pl.BlockSpec((1, SEQ, EMBED), lambda b: (b, 0, 0)),
            pl.BlockSpec((DEPTH - 1, 1, SEQ, EMBED), lambda b: (0, b, 0, 0)),
            pl.BlockSpec((1, SEQ, EMBED), lambda b: (b, 0, 0)),
        ),
        compiler_params=_CompilerParams(
            dimension_semantics=("parallel",),   # v7x: shard batch over 2 TCs; no-op on v5e/v6e
        ),
    )(xp, zp, pk['patch_w'], pk['patch_b'], pk['pos'],
      pk['wqkv'], pk['bqkv'], pk['wo'], pk['vece'],
      pk['w1'], pk['b1'], pk['w2'], pk['norm_gb'])


# ----------------------------- glue (plain JAX) ------------------------------
def patchify(x):
    # x: [B, C, H, W] NCHW -> [B, N, C*P*P]  (row-major patch order, matching
    # Conv2d(kernel=stride=P) followed by flatten(2).transpose(1, 2)).
    B, C, H, W = x.shape
    ph, pw = H // PATCH, W // PATCH
    x = x.reshape(B, C, ph, PATCH, pw, PATCH)
    x = x.transpose(0, 2, 4, 1, 3, 5)
    return x.reshape(B, ph * pw, C * PATCH * PATCH)


def init_params(key):
    keys = jax.random.split(key, 3 + DEPTH)
    rnd = lambda k, shape: jax.random.normal(k, shape, jnp.float32) * 0.02
    params = {
        'patch_w': rnd(keys[0], (PATCH_DIM, EMBED)),
        'patch_b': rnd(keys[1], (EMBED,)),
        'pos_embed_x': rnd(keys[2], (1, N_PATCH, EMBED)),
        'norm_g': jnp.ones((EMBED,), jnp.float32),
        'norm_b': jnp.zeros((EMBED,), jnp.float32),
        'blocks': [],
    }
    for i in range(DEPTH):
        ks = jax.random.split(keys[3 + i], 12)
        params['blocks'].append(dict(
            ln1_g=jnp.ones((EMBED,), jnp.float32),
            ln1_b=jnp.zeros((EMBED,), jnp.float32),
            wq=rnd(ks[0], (EMBED, EMBED)),
            wk=rnd(ks[1], (EMBED, EMBED)),
            wv=rnd(ks[2], (EMBED, EMBED)),
            bq=rnd(ks[3], (EMBED,)),
            bk=rnd(ks[4], (EMBED,)),
            bv=rnd(ks[5], (EMBED,)),
            wo=rnd(ks[6], (EMBED, EMBED)),
            bo=rnd(ks[7], (EMBED,)),
            ln2_g=jnp.ones((EMBED,), jnp.float32),
            ln2_b=jnp.zeros((EMBED,), jnp.float32),
            w1=rnd(ks[8], (EMBED, MLP_DIM)),
            b1=rnd(ks[9], (MLP_DIM,)),
            w2=rnd(ks[10], (MLP_DIM, EMBED)),
            b2=rnd(ks[11], (EMBED,)),
        ))
    return params


def pack_params(p):
    """Pack the natural per-block params into the fused-kernel layouts (done once)."""
    Dh = HEAD_DIM
    wqkv_rows, bqkv_rows = [], []
    wo_l, vece_l, w1_l, b1_l, w2_l = [], [], [], [], []
    for blk in p['blocks']:
        for w in (blk['wq'], blk['wk'], blk['wv']):
            for hh in range(HEADS):
                wqkv_rows.append(w[:, hh * Dh:(hh + 1) * Dh])          # (E, Dh)
        bqkv_rows.append(jnp.concatenate(
            [blk['bq'].reshape(HEADS, Dh),
             blk['bk'].reshape(HEADS, Dh),
             blk['bv'].reshape(HEADS, Dh)], axis=0))                   # (3H, Dh)
        wo_l.append(blk['wo'])
        vece_l.append(jnp.stack([blk['ln1_g'], blk['ln1_b'], blk['bo'],
                                 blk['ln2_g'], blk['ln2_b'], blk['b2']], axis=0))
        w1_l.append(blk['w1'])
        b1_l.append(blk['b1'].reshape(1, MLP_DIM))
        w2_l.append(blk['w2'])
    return {
        'patch_w': p['patch_w'],
        'patch_b': p['patch_b'].reshape(1, EMBED),
        'pos': p['pos_embed_x'][0],                                    # (N, E) for the kernel
        'pos_embed_x': p['pos_embed_x'],                               # (1, N, E) passthrough
        'wqkv': jnp.stack(wqkv_rows, axis=0),                          # (DEPTH*3*H, E, Dh)
        'bqkv': jnp.stack(bqkv_rows, axis=0),                          # (DEPTH, 3H, Dh)
        'wo': jnp.stack(wo_l, axis=0),                                 # (DEPTH, E, E)
        'vece': jnp.stack(vece_l, axis=0),                             # (DEPTH, 6, E)
        'w1': jnp.stack(w1_l, axis=0),                                 # (DEPTH, E, M)
        'b1': jnp.stack(b1_l, axis=0),                                 # (DEPTH, 1, M)
        'w2': jnp.stack(w2_l, axis=0),                                 # (DEPTH, M, E)
        'norm_gb': jnp.stack([p['norm_g'], p['norm_b']], axis=0),      # (2, E)
    }


@jax.jit
def _forward_impl(packed, x, z):
    xp = patchify(x)
    zp = patchify(z)
    return _pallas_backbone(xp, zp, packed)


def backbone_forward(packed, x, z, outlayer=None):
    # `outlayer` accepted but unused, matching BaseBackbone.forward.
    # pos_embed_x is shared between search and template -> patch grids must match.
    assert x.shape == z.shape
    emb, inter, final = _forward_impl(packed, x, z)
    outputs = {}
    outputs['input_embeding'] = emb
    for i in range(DEPTH - 1):
        outputs[i] = inter[i]
    outputs[DEPTH - 1] = final
    outputs['pos_embed_x'] = packed['pos_embed_x']
    return outputs


# ----------------------------- pure-JAX reference ----------------------------
def reference_forward(params, x, z):
    def ln(a, g, b):
        mu = jnp.mean(a, axis=-1, keepdims=True)
        var = jnp.mean((a - mu) ** 2, axis=-1, keepdims=True)
        return (a - mu) * jax.lax.rsqrt(var + EPS) * g + b

    def embed(img):
        pch = patchify(img)
        return pch @ params['patch_w'] + params['patch_b'] + params['pos_embed_x']

    t = jnp.concatenate([embed(x), embed(z)], axis=1)    # (B, SEQ, E)
    outs = {'input_embeding': t}
    B = t.shape[0]
    for i, blk in enumerate(params['blocks']):
        h = ln(t, blk['ln1_g'], blk['ln1_b'])
        q = h @ blk['wq'] + blk['bq']
        k = h @ blk['wk'] + blk['bk']
        v = h @ blk['wv'] + blk['bv']
        split = lambda a: a.reshape(B, SEQ, HEADS, HEAD_DIM).transpose(0, 2, 1, 3)
        qh, kh, vh = split(q), split(k), split(v)
        s = jnp.einsum('bhqd,bhkd->bhqk', qh, kh) / (HEAD_DIM ** 0.5)
        p = jax.nn.softmax(s, axis=-1)
        ctx = jnp.einsum('bhqk,bhkd->bhqd', p, vh)
        ctx = ctx.transpose(0, 2, 1, 3).reshape(B, SEQ, EMBED)
        t = t + ctx @ blk['wo'] + blk['bo']
        h2 = ln(t, blk['ln2_g'], blk['ln2_b'])
        m = h2 @ blk['w1'] + blk['b1']
        c = 0.7978845608028654
        m = 0.5 * m * (1.0 + jnp.tanh(c * (m + 0.044715 * m ** 3)))
        t = t + m @ blk['w2'] + blk['b2']
        if i != DEPTH - 1:
            outs[i] = t
    outs[DEPTH - 1] = ln(t, params['norm_g'], params['norm_b'])
    outs['pos_embed_x'] = params['pos_embed_x']
    return outs


# ----------------------------------- main ------------------------------------
if __name__ == "__main__":
    key = jax.random.PRNGKey(0)
    k_params, k_x, k_z = jax.random.split(key, 3)

    params = init_params(k_params)
    packed = pack_params(params)

    x = jax.random.normal(k_x, (2, IN_CH, IMG, IMG), jnp.float32)   # search image (NCHW)
    z = jax.random.normal(k_z, (2, IN_CH, IMG, IMG), jnp.float32)   # template image (NCHW)

    outs = backbone_forward(packed, x, z, outlayer=None)
    jax.block_until_ready(outs[DEPTH - 1])

    assert outs['input_embeding'].shape == (2, SEQ, EMBED)
    for i in range(DEPTH):
        assert outs[i].shape == (2, SEQ, EMBED)
    assert outs['pos_embed_x'].shape == (1, N_PATCH, EMBED)

    # numerics sanity check vs. plain-JAX reference (loose tol: kernel uses the
    # EUP approximate reciprocal for the softmax normalization).
    with jax.default_matmul_precision("highest"):
        ref = reference_forward(params, x, z)
        jax.block_until_ready(ref[DEPTH - 1])
    for kk in ['input_embeding', 0, DEPTH - 1]:
        err = float(jnp.max(jnp.abs(outs[kk] - ref[kk])))
        assert err < 5e-2, f"mismatch at {kk}: {err}"

    print("KERNEL_OK")
</pallas_src>

<mosaic_0001>
module attributes {stable_mosaic.version = 11 : i64} {
  func.func @fused_backbone_kernel(%arg0: i32, %arg1: memref<1x16x48xf32, #tpu.memory_space<vmem>>, %arg2: memref<1x16x48xf32, #tpu.memory_space<vmem>>, %arg3: memref<48x32xf32, #tpu.memory_space<vmem>>, %arg4: memref<1x32xf32, #tpu.memory_space<vmem>>, %arg5: memref<16x32xf32, #tpu.memory_space<vmem>>, %arg6: memref<12x32x16xf32, #tpu.memory_space<vmem>>, %arg7: memref<2x6x16xf32, #tpu.memory_space<vmem>>, %arg8: memref<2x32x32xf32, #tpu.memory_space<vmem>>, %arg9: memref<2x6x32xf32, #tpu.memory_space<vmem>>, %arg10: memref<2x32x128xf32, #tpu.memory_space<vmem>>, %arg11: memref<2x1x128xf32, #tpu.memory_space<vmem>>, %arg12: memref<2x128x32xf32, #tpu.memory_space<vmem>>, %arg13: memref<2x32xf32, #tpu.memory_space<vmem>>, %arg14: memref<1x32x32xf32, #tpu.memory_space<vmem>>, %arg15: memref<1x1x32x32xf32, #tpu.memory_space<vmem>>, %arg16: memref<1x32x32xf32, #tpu.memory_space<vmem>>) attributes {dimension_semantics = [#tpu.dimension_semantics<parallel>], iteration_bounds = array<i64: 2>, scalar_prefetch = 0 : i64, scratch_operands = 0 : i64, tpu.core_type = #tpu.core_type<tc>, window_params = [{transform_indices = @transform_0, window_bounds = array<i64: 1, 16, 48>}, {transform_indices = @transform_1, window_bounds = array<i64: 1, 16, 48>}, {pipeline_mode = #tpu.pipeline_mode<synchronous>, transform_indices = @transform_2, window_bounds = array<i64: 48, 32>}, {pipeline_mode = #tpu.pipeline_mode<synchronous>, transform_indices = @transform_3, window_bounds = array<i64: 1, 32>}, {pipeline_mode = #tpu.pipeline_mode<synchronous>, transform_indices = @transform_4, window_bounds = array<i64: 16, 32>}, {pipeline_mode = #tpu.pipeline_mode<synchronous>, transform_indices = @transform_5, window_bounds = array<i64: 12, 32, 16>}, {pipeline_mode = #tpu.pipeline_mode<synchronous>, transform_indices = @transform_6, window_bounds = array<i64: 2, 6, 16>}, {pipeline_mode = #tpu.pipeline_mode<synchronous>, transform_indices = @transform_7, window_bounds = array<i64: 2, 32, 32>}, {pipeline_mode = #tpu.pipeline_mode<synchronous>, transform_indices = @transform_8, window_bounds = array<i64: 2, 6, 32>}, {pipeline_mode = #tpu.pipeline_mode<synchronous>, transform_indices = @transform_9, window_bounds = array<i64: 2, 32, 128>}, {pipeline_mode = #tpu.pipeline_mode<synchronous>, transform_indices = @transform_10, window_bounds = array<i64: 2, 1, 128>}, {pipeline_mode = #tpu.pipeline_mode<synchronous>, transform_indices = @transform_11, window_bounds = array<i64: 2, 128, 32>}, {pipeline_mode = #tpu.pipeline_mode<synchronous>, transform_indices = @transform_12, window_bounds = array<i64: 2, 32>}, {transform_indices = @transform_13, window_bounds = array<i64: 1, 32, 32>}, {transform_indices = @transform_14, window_bounds = array<i64: 1, 1, 32, 32>}, {transform_indices = @transform_15, window_bounds = array<i64: 1, 32, 32>}]} {
    %c0 = arith.constant 0 : index
    %c0_0 = arith.constant 0 : index
    %c0_1 = arith.constant 0 : index
    %0 = vector.load %arg1[%c0, %c0_0, %c0_1] : memref<1x16x48xf32, #tpu.memory_space<vmem>>, vector<1x16x48xf32>
    %1 = vector.shape_cast %0 : vector<1x16x48xf32> to vector<16x48xf32>
    %c0_2 = arith.constant 0 : index
    %c0_3 = arith.constant 0 : index
    %c0_4 = arith.constant 0 : index
    %2 = vector.load %arg2[%c0_2, %c0_3, %c0_4] : memref<1x16x48xf32, #tpu.memory_space<vmem>>, vector<1x16x48xf32>
    %3 = vector.shape_cast %2 : vector<1x16x48xf32> to vector<16x48xf32>
    %4 = tpu.concatenate %1, %3 in 0 : vector<16x48xf32>, vector<16x48xf32> -> vector<32x48xf32>
    %c0_5 = arith.constant 0 : index
    %c0_6 = arith.constant 0 : index
    %5 = vector.load %arg5[%c0_5, %c0_6] : memref<16x32xf32, #tpu.memory_space<vmem>>, vector<16x32xf32>
    %6 = tpu.concatenate %5, %5 in 0 : vector<16x32xf32>, vector<16x32xf32> -> vector<32x32xf32>
    %c0_7 = arith.constant 0 : index
    %c0_8 = arith.constant 0 : index
    %7 = vector.load %arg3[%c0_7, %c0_8] : memref<48x32xf32, #tpu.memory_space<vmem>>, vector<48x32xf32>
    %cst = arith.constant dense<0.000000e+00> : vector<32x32xf32>
    %8 = tpu.matmul %4, %7, %cst {dimension_numbers = #tpu.dot_dimension_numbers<[1], [0], [0], [1], [0, 0, 1, 1], [], []>} : vector<32x48xf32>, vector<48x32xf32>, vector<32x32xf32> -> vector<32x32xf32>
    %c0_9 = arith.constant 0 : index
    %c0_10 = arith.constant 0 : index
    %9 = vector.load %arg4[%c0_9, %c0_10] : memref<1x32xf32, #tpu.memory_space<vmem>>, vector<1x32xf32>
    %10 = vector.broadcast %9 : vector<1x32xf32> to vector<32x32xf32>
    %11 = arith.addf %8, %10 : vector<32x32xf32>
    %12 = arith.addf %11, %6 : vector<32x32xf32>
    %c0_11 = arith.constant 0 : index
    %c0_12 = arith.constant 0 : index
    %c0_13 = arith.constant 0 : index
    %13 = vector.load %arg14[%c0_11, %c0_12, %c0_13] : memref<1x32x32xf32, #tpu.memory_space<vmem>>, vector<1x32x32xf32>
    %14 = vector.shape_cast %13 : vector<1x32x32xf32> to vector<32x32xf32>
    %15 = vector.shape_cast %12 : vector<32x32xf32> to vector<1x32x32xf32>
    tpu.vector_store %arg14[%c0_11, %c0_12, %c0_13], %15 {strides = array<i32>} : memref<1x32x32xf32, #tpu.memory_space<vmem>>, vector<1x32x32xf32>,
    %c0_14 = arith.constant 0 : index
    %c0_15 = arith.constant 0 : index
    %c0_16 = arith.constant 0 : index
    %16 = vector.load %arg9[%c0_14, %c0_15, %c0_16] : memref<2x6x32xf32, #tpu.memory_space<vmem>>, vector<1x6x32xf32>
    %17 = vector.shape_cast %16 : vector<1x6x32xf32> to vector<6x32xf32>
    %c0_17 = arith.constant 0 : index
    %c0_18 = arith.constant 0 : index
    %c0_19 = arith.constant 0 : index
    %18 = vector.load %arg7[%c0_17, %c0_18, %c0_19] : memref<2x6x16xf32, #tpu.memory_space<vmem>>, vector<1x6x16xf32>
    %19 = vector.shape_cast %18 : vector<1x6x16xf32> to vector<6x16xf32>
    %20 = vector.extract_strided_slice %17 {offsets = [0, 0], sizes = [1, 32], strides = [1, 1]} : vector<6x32xf32> to vector<1x32xf32>
    %21 = vector.extract_strided_slice %17 {offsets = [1, 0], sizes = [1, 32], strides = [1, 1]} : vector<6x32xf32> to vector<1x32xf32>
    %cst_20 = arith.constant dense<0.000000e+00> : vector<32xf32>
    %22 = vector.multi_reduction <add>, %12, %cst_20 [1] : vector<32x32xf32> to vector<32xf32>
    %23 = vector.shape_cast %22 : vector<32xf32> to vector<32x1xf32>
    %cst_21 = arith.constant 3.200000e+01 : f32
    %24 = vector.broadcast %cst_21 : f32 to vector<32x1xf32>
    %25 = arith.divf %23, %24 : vector<32x1xf32>
    %26 = vector.broadcast %25 : vector<32x1xf32> to vector<32x32xf32>
    %27 = arith.subf %12, %26 : vector<32x32xf32>
    %28 = arith.mulf %27, %27 : vector<32x32xf32>
    %cst_22 = arith.constant dense<0.000000e+00> : vector<32xf32>
    %29 = vector.multi_reduction <add>, %28, %cst_22 [1] : vector<32x32xf32> to vector<32xf32>
    %30 = vector.shape_cast %29 : vector<32xf32> to vector<32x1xf32>
    %cst_23 = arith.constant 3.200000e+01 : f32
    %31 = vector.broadcast %cst_23 : f32 to vector<32x1xf32>
    %32 = arith.divf %30, %31 : vector<32x1xf32>
    %33 = vector.broadcast %25 : vector<32x1xf32> to vector<32x32xf32>
    %34 = arith.subf %12, %33 : vector<32x32xf32>
    %cst_24 = arith.constant 9.99999997E-7 : f32
    %35 = vector.broadcast %cst_24 : f32 to vector<32x1xf32>
    %36 = arith.addf %32, %35 : vector<32x1xf32>
    %37 = math.rsqrt %36 : vector<32x1xf32>
    %38 = vector.broadcast %37 : vector<32x1xf32> to vector<32x32xf32>
    %39 = arith.mulf %34, %38 : vector<32x32xf32>
    %40 = vector.broadcast %20 : vector<1x32xf32> to vector<32x32xf32>
    %41 = arith.mulf %39, %40 : vector<32x32xf32>
    %42 = vector.broadcast %21 : vector<1x32xf32> to vector<32x32xf32>
    %43 = arith.addf %41, %42 : vector<32x32xf32>
    %c0_25 = arith.constant 0 : index
    %c0_26 = arith.constant 0 : index
    %c0_27 = arith.constant 0 : index
    %44 = vector.load %arg6[%c0_25, %c0_26, %c0_27] : memref<12x32x16xf32, #tpu.memory_space<vmem>>, vector<1x32x16xf32>
    %45 = vector.shape_cast %44 : vector<1x32x16xf32> to vector<32x16xf32>
    %46 = vector.extract_strided_slice %19 {offsets = [0, 0], sizes = [1, 16], strides = [1, 1]} : vector<6x16xf32> to vector<1x16xf32>
    %cst_28 = arith.constant dense<0.000000e+00> : vector<32x16xf32>
    %47 = tpu.matmul %43, %45, %cst_28 {dimension_numbers = #tpu.dot_dimension_numbers<[1], [0], [0], [1], [0, 0, 1, 1], [], []>} : vector<32x32xf32>, vector<32x16xf32>, vector<32x16xf32> -> vector<32x16xf32>
    %48 = vector.broadcast %46 : vector<1x16xf32> to vector<32x16xf32>
    %49 = arith.addf %47, %48 : vector<32x16xf32>
    %c1 = arith.constant 1 : index
    %c0_29 = arith.constant 0 : index
    %c0_30 = arith.constant 0 : index
    %50 = vector.load %arg6[%c1, %c0_29, %c0_30] : memref<12x32x16xf32, #tpu.memory_space<vmem>>, vector<1x32x16xf32>
    %51 = vector.shape_cast %50 : vector<1x32x16xf32> to vector<32x16xf32>
    %52 = vector.extract_strided_slice %19 {offsets = [1, 0], sizes = [1, 16], strides = [1, 1]} : vector<6x16xf32> to vector<1x16xf32>
    %cst_31 = arith.constant dense<0.000000e+00> : vector<32x16xf32>
    %53 = tpu.matmul %43, %51, %cst_31 {dimension_numbers = #tpu.dot_dimension_numbers<[1], [0], [0], [1], [0, 0, 1, 1], [], []>} : vector<32x32xf32>, vector<32x16xf32>, vector<32x16xf32> -> vector<32x16xf32>
    %54 = vector.broadcast %52 : vector<1x16xf32> to vector<32x16xf32>
    %55 = arith.addf %53, %54 : vector<32x16xf32>
    %56 = vector.shape_cast %49 : vector<32x16xf32> to vector<1x32x16xf32>
    %57 = vector.shape_cast %55 : vector<32x16xf32> to vector<1x32x16xf32>
    %58 = tpu.concatenate %56, %57 in 0 : vector<1x32x16xf32>, vector<1x32x16xf32> -> vector<2x32x16xf32>
    %c2 = arith.constant 2 : index
    %c0_32 = arith.constant 0 : index
    %c0_33 = arith.constant 0 : index
    %59 = vector.load %arg6[%c2, %c0_32, %c0_33] : memref<12x32x16xf32, #tpu.memory_space<vmem>>, vector<1x32x16xf32>
    %60 = vector.shape_cast %59 : vector<1x32x16xf32> to vector<32x16xf32>
    %61 = vector.extract_strided_slice %19 {offsets = [2, 0], sizes = [1, 16], strides = [1, 1]} : vector<6x16xf32> to vector<1x16xf32>
    %cst_34 = arith.constant dense<0.000000e+00> : vector<32x16xf32>
    %62 = tpu.matmul %43, %60, %cst_34 {dimension_numbers = #tpu.dot_dimension_numbers<[1], [0], [0], [1], [0, 0, 1, 1], [], []>} : vector<32x32xf32>, vector<32x16xf32>, vector<32x16xf32> -> vector<32x16xf32>
    %63 = vector.broadcast %61 : vector<1x16xf32> to vector<32x16xf32>
    %64 = arith.addf %62, %63 : vector<32x16xf32>
    %c3 = arith.constant 3 : index
    %c0_35 = arith.constant 0 : index
    %c0_36 = arith.constant 0 : index
    %65 = vector.load %arg6[%c3, %c0_35, %c0_36] : memref<12x32x16xf32, #tpu.memory_space<vmem>>, vector<1x32x16xf32>
    %66 = vector.shape_cast %65 : vector<1x32x16xf32> to vector<32x16xf32>
    %67 = vector.extract_strided_slice %19 {offsets = [3, 0], sizes = [1, 16], strides = [1, 1]} : vector<6x16xf32> to vector<1x16xf32>
    %cst_37 = arith.constant dense<0.000000e+00> : vector<32x16xf32>
    %68 = tpu.matmul %43, %66, %cst_37 {dimension_numbers = #tpu.dot_dimension_numbers<[1], [0], [0], [1], [0, 0, 1, 1], [], []>} : vector<32x32xf32>, vector<32x16xf32>, vector<32x16xf32> -> vector<32x16xf32>
    %69 = vector.broadcast %67 : vector<1x16xf32> to vector<32x16xf32>
    %70 = arith.addf %68, %69 : vector<32x16xf32>
    %71 = vector.shape_cast %64 : vector<32x16xf32> to vector<1x32x16xf32>
    %72 = vector.shape_cast %70 : vector<32x16xf32> to vector<1x32x16xf32>
    %73 = tpu.concatenate %71, %72 in 0 : vector<1x32x16xf32>, vector<1x32x16xf32> -> vector<2x32x16xf32>
    %c4 = arith.constant 4 : index
    %c0_38 = arith.constant 0 : index
    %c0_39 = arith.constant 0 : index
    %74 = vector.load %arg6[%c4, %c0_38, %c0_39] : memref<12x32x16xf32, #tpu.memory_space<vmem>>, vector<1x32x16xf32>
    %75 = vector.shape_cast %74 : vector<1x32x16xf32> to vector<32x16xf32>
    %76 = vector.extract_strided_slice %19 {offsets = [4, 0], sizes = [1, 16], strides = [1, 1]} : vector<6x16xf32> to vector<1x16xf32>
    %cst_40 = arith.constant dense<0.000000e+00> : vector<32x16xf32>
    %77 = tpu.matmul %43, %75, %cst_40 {dimension_numbers = #tpu.dot_dimension_numbers<[1], [0], [0], [1], [0, 0, 1, 1], [], []>} : vector<32x32xf32>, vector<32x16xf32>, vector<32x16xf32> -> vector<32x16xf32>
    %78 = vector.broadcast %76 : vector<1x16xf32> to vector<32x16xf32>
    %79 = arith.addf %77, %78 : vector<32x16xf32>
    %c5 = arith.constant 5 : index
    %c0_41 = arith.constant 0 : index
    %c0_42 = arith.constant 0 : index
    %80 = vector.load %arg6[%c5, %c0_41, %c0_42] : memref<12x32x16xf32, #tpu.memory_space<vmem>>, vector<1x32x16xf32>
    %81 = vector.shape_cast %80 : vector<1x32x16xf32> to vector<32x16xf32>
    %82 = vector.extract_strided_slice %19 {offsets = [5, 0], sizes = [1, 16], strides = [1, 1]} : vector<6x16xf32> to vector<1x16xf32>
    %cst_43 = arith.constant dense<0.000000e+00> : vector<32x16xf32>
    %83 = tpu.matmul %43, %81, %cst_43 {dimension_numbers = #tpu.dot_dimension_numbers<[1], [0], [0], [1], [0, 0, 1, 1], [], []>} : vector<32x32xf32>, vector<32x16xf32>, vector<32x16xf32> -> vector<32x16xf32>
    %84 = vector.broadcast %82 : vector<1x16xf32> to vector<32x16xf32>
    %85 = arith.addf %83, %84 : vector<32x16xf32>
    %86 = vector.shape_cast %79 : vector<32x16xf32> to vector<1x32x16xf32>
    %87 = vector.shape_cast %85 : vector<32x16xf32> to vector<1x32x16xf32>
    %88 = tpu.concatenate %86, %87 in 0 : vector<1x32x16xf32>, vector<1x32x16xf32> -> vector<2x32x16xf32>
    "tpu.trace_start"() <{level = 10 : i32, message = "hqd,hkd->hqk"}> : () -> ()
    %cst_44 = arith.constant dense<0.000000e+00> : vector<2x32x32xf32>
    %89 = tpu.matmul %58, %73, %cst_44 {dimension_numbers = #tpu.dot_dimension_numbers<[2], [2], [1], [1], [0, 0, 0, 1, 1, 1], [0], [0]>} : vector<2x32x16xf32>, vector<2x32x16xf32>, vector<2x32x32xf32> -> vector<2x32x32xf32>
    "tpu.trace_stop"() : () -> ()
    %cst_45 = arith.constant 2.500000e-01 : f32
    %90 = vector.broadcast %cst_45 : f32 to vector<2x32x32xf32>
    %91 = arith.mulf %89, %90 : vector<2x32x32xf32>
    %cst_46 = arith.constant dense<0xFF800000> : vector<2x32xf32>
    %92 = vector.multi_reduction <maximumf>, %91, %cst_46 [2] : vector<2x32x32xf32> to vector<2x32xf32>
    %93 = vector.shape_cast %92 : vector<2x32xf32> to vector<2x32x1xf32>
    %94 = vector.broadcast %93 : vector<2x32x1xf32> to vector<2x32x32xf32>
    %95 = arith.subf %91, %94 : vector<2x32x32xf32>
    %96 = math.exp %95 : vector<2x32x32xf32>
    %cst_47 = arith.constant dense<0.000000e+00> : vector<2x32xf32>
    %97 = vector.multi_reduction <add>, %96, %cst_47 [2] : vector<2x32x32xf32> to vector<2x32xf32>
    %98 = vector.shape_cast %97 : vector<2x32xf32> to vector<2x32x1xf32>
    %99 = tpu.reciprocal %98 {approx = true} : vector<2x32x1xf32> -> vector<2x32x1xf32>
    %100 = vector.broadcast %99 : vector<2x32x1xf32> to vector<2x32x32xf32>
    %101 = arith.mulf %96, %100 : vector<2x32x32xf32>
    "tpu.trace_start"() <{level = 10 : i32, message = "hqk,hkd->hqd"}> : () -> ()
    %cst_48 = arith.constant dense<0.000000e+00> : vector<2x32x16xf32>
    %102 = tpu.matmul %101, %88, %cst_48 {dimension_numbers = #tpu.dot_dimension_numbers<[2], [1], [1], [2], [0, 0, 0, 1, 1, 2], [0], [0]>} : vector<2x32x32xf32>, vector<2x32x16xf32>, vector<2x32x16xf32> -> vector<2x32x16xf32>
    "tpu.trace_stop"() : () -> ()
    %103 = vector.extract_strided_slice %102 {offsets = [0, 0, 0], sizes = [1, 32, 16], strides = [1, 1, 1]} : vector<2x32x16xf32> to vector<1x32x16xf32>
    %104 = vector.shape_cast %103 : vector<1x32x16xf32> to vector<32x16xf32>
    %105 = vector.extract_strided_slice %102 {offsets = [1, 0, 0], sizes = [1, 32, 16], strides = [1, 1, 1]} : vector<2x32x16xf32> to vector<1x32x16xf32>
    %106 = vector.shape_cast %105 : vector<1x32x16xf32> to vector<32x16xf32>
    %107 = tpu.concatenate %104, %106 in 1 : vector<32x16xf32>, vector<32x16xf32> -> vector<32x32xf32>
    %c0_49 = arith.constant 0 : index
    %c0_50 = arith.constant 0 : index
    %c0_51 = arith.constant 0 : index
    %108 = vector.load %arg8[%c0_49, %c0_50, %c0_51] : memref<2x32x32xf32, #tpu.memory_space<vmem>>, vector<1x32x32xf32>
    %109 = vector.shape_cast %108 : vector<1x32x32xf32> to vector<32x32xf32>
    %cst_52 = arith.constant dense<0.000000e+00> : vector<32x32xf32>
    %110 = tpu.matmul %107, %109, %cst_52 {dimension_numbers = #tpu.dot_dimension_numbers<[1], [0], [0], [1], [0, 0, 1, 1], [], []>} : vector<32x32xf32>, vector<32x32xf32>, vector<32x32xf32> -> vector<32x32xf32>
    %111 = arith.addf %12, %110 : vector<32x32xf32>
    %112 = vector.extract_strided_slice %17 {offsets = [2, 0], sizes = [1, 32], strides = [1, 1]} : vector<6x32xf32> to vector<1x32xf32>
    %113 = vector.broadcast %112 : vector<1x32xf32> to vector<32x32xf32>
    %114 = arith.addf %111, %113 : vector<32x32xf32>
    %115 = vector.extract_strided_slice %17 {offsets = [3, 0], sizes = [1, 32], strides = [1, 1]} : vector<6x32xf32> to vector<1x32xf32>
    %116 = vector.extract_strided_slice %17 {offsets = [4, 0], sizes = [1, 32], strides = [1, 1]} : vector<6x32xf32> to vector<1x32xf32>
    %cst_53 = arith.constant dense<0.000000e+00> : vector<32xf32>
    %117 = vector.multi_reduction <add>, %114, %cst_53 [1] : vector<32x32xf32> to vector<32xf32>
    %118 = vector.shape_cast %117 : vector<32xf32> to vector<32x1xf32>
    %cst_54 = arith.constant 3.200000e+01 : f32
    %119 = vector.broadcast %cst_54 : f32 to vector<32x1xf32>
    %120 = arith.divf %118, %119 : vector<32x1xf32>
    %121 = vector.broadcast %120 : vector<32x1xf32> to vector<32x32xf32>
    %122 = arith.subf %114, %121 : vector<32x32xf32>
    %123 = arith.mulf %122, %122 : vector<32x32xf32>
    %cst_55 = arith.constant dense<0.000000e+00> : vector<32xf32>
    %124 = vector.multi_reduction <add>, %123, %cst_55 [1] : vector<32x32xf32> to vector<32xf32>
    %125 = vector.shape_cast %124 : vector<32xf32> to vector<32x1xf32>
    %cst_56 = arith.constant 3.200000e+01 : f32
    %126 = vector.broadcast %cst_56 : f32 to vector<32x1xf32>
    %127 = arith.divf %125, %126 : vector<32x1xf32>
    %128 = vector.broadcast %120 : vector<32x1xf32> to vector<32x32xf32>
    %129 = arith.subf %114, %128 : vector<32x32xf32>
    %cst_57 = arith.constant 9.99999997E-7 : f32
    %130 = vector.broadcast %cst_57 : f32 to vector<32x1xf32>
    %131 = arith.addf %127, %130 : vector<32x1xf32>
    %132 = math.rsqrt %131 : vector<32x1xf32>
    %133 = vector.broadcast %132 : vector<32x1xf32> to vector<32x32xf32>
    %134 = arith.mulf %129, %133 : vector<32x32xf32>
    %135 = vector.broadcast %115 : vector<1x32xf32> to vector<32x32xf32>
    %136 = arith.mulf %134, %135 : vector<32x32xf32>
    %137 = vector.broadcast %116 : vector<1x32xf32> to vector<32x32xf32>
    %138 = arith.addf %136, %137 : vector<32x32xf32>
    %c0_58 = arith.constant 0 : index
    %c0_59 = arith.constant 0 : index
    %c0_60 = arith.constant 0 : index
    %139 = vector.load %arg10[%c0_58, %c0_59, %c0_60] : memref<2x32x128xf32, #tpu.memory_space<vmem>>, vector<1x32x128xf32>
    %140 = vector.shape_cast %139 : vector<1x32x128xf32> to vector<32x128xf32>
    %cst_61 = arith.constant dense<0.000000e+00> : vector<32x128xf32>
    %141 = tpu.matmul %138, %140, %cst_61 {dimension_numbers = #tpu.dot_dimension_numbers<[1], [0], [0], [1], [0, 0, 1, 1], [], []>} : vector<32x32xf32>, vector<32x128xf32>, vector<32x128xf32> -> vector<32x128xf32>
    %c0_62 = arith.constant 0 : index
    %c0_63 = arith.constant 0 : index
    %c0_64 = arith.constant 0 : index
    %142 = vector.load %arg11[%c0_62, %c0_63, %c0_64] : memref<2x1x128xf32, #tpu.memory_space<vmem>>, vector<1x1x128xf32>
    %143 = vector.shape_cast %142 : vector<1x1x128xf32> to vector<1x128xf32>
    %144 = vector.broadcast %143 : vector<1x128xf32> to vector<32x128xf32>
    %145 = arith.addf %141, %144 : vector<32x128xf32>
    %cst_65 = arith.constant 5.000000e-01 : f32
    %146 = vector.broadcast %cst_65 : f32 to vector<32x128xf32>
    %147 = arith.mulf %146, %145 : vector<32x128xf32>
    %cst_66 = arith.constant 4.471500e-02 : f32
    %148 = vector.broadcast %cst_66 : f32 to vector<32x128xf32>
    %149 = arith.mulf %148, %145 : vector<32x128xf32>
    %150 = arith.mulf %149, %145 : vector<32x128xf32>
    %151 = arith.mulf %150, %145 : vector<32x128xf32>
    %152 = arith.addf %145, %151 : vector<32x128xf32>
    %cst_67 = arith.constant 0.797884583 : f32
    %153 = vector.broadcast %cst_67 : f32 to vector<32x128xf32>
    %154 = arith.mulf %153, %152 : vector<32x128xf32>
    %155 = math.tanh %154 : vector<32x128xf32>
    %cst_68 = arith.constant 1.000000e+00 : f32
    %156 = vector.broadcast %cst_68 : f32 to vector<32x128xf32>
    %157 = arith.addf %156, %155 : vector<32x128xf32>
    %158 = arith.mulf %147, %157 : vector<32x128xf32>
    %c0_69 = arith.constant 0 : index
    %c0_70 = arith.constant 0 : index
    %c0_71 = arith.constant 0 : index
    %159 = vector.load %arg12[%c0_69, %c0_70, %c0_71] : memref<2x128x32xf32, #tpu.memory_space<vmem>>, vector<1x128x32xf32>
    %160 = vector.shape_cast %159 : vector<1x128x32xf32> to vector<128x32xf32>
    %cst_72 = arith.constant dense<0.000000e+00> : vector<32x32xf32>
    %161 = tpu.matmul %158, %160, %cst_72 {dimension_numbers = #tpu.dot_dimension_numbers<[1], [0], [0], [1], [0, 0, 1, 1], [], []>} : vector<32x128xf32>, vector<128x32xf32>, vector<32x32xf32> -> vector<32x32xf32>
    %162 = arith.addf %114, %161 : vector<32x32xf32>
    %163 = vector.extract_strided_slice %17 {offsets = [5, 0], sizes = [1, 32], strides = [1, 1]} : vector<6x32xf32> to vector<1x32xf32>
    %164 = vector.broadcast %163 : vector<1x32xf32> to vector<32x32xf32>
    %165 = arith.addf %162, %164 : vector<32x32xf32>
    %c0_73 = arith.constant 0 : index
    %c0_74 = arith.constant 0 : index
    %c0_75 = arith.constant 0 : index
    %c0_76 = arith.constant 0 : index
    %166 = vector.load %arg15[%c0_73, %c0_74, %c0_75, %c0_76] : memref<1x1x32x32xf32, #tpu.memory_space<vmem>>, vector<1x1x32x32xf32>
    %167 = vector.shape_cast %166 : vector<1x1x32x32xf32> to vector<32x32xf32>
    %168 = vector.shape_cast %165 : vector<32x32xf32> to vector<1x1x32x32xf32>
    tpu.vector_store %arg15[%c0_73, %c0_74, %c0_75, %c0_76], %168 {strides = array<i32>} : memref<1x1x32x32xf32, #tpu.memory_space<vmem>>, vector<1x1x32x32xf32>,
    %c1_77 = arith.constant 1 : index
    %c0_78 = arith.constant 0 : index
    %c0_79 = arith.constant 0 : index
    %169 = vector.load %arg9[%c1_77, %c0_78, %c0_79] : memref<2x6x32xf32, #tpu.memory_space<vmem>>, vector<1x6x32xf32>
    %170 = vector.shape_cast %169 : vector<1x6x32xf32> to vector<6x32xf32>
    %c1_80 = arith.constant 1 : index
    %c0_81 = arith.constant 0 : index
    %c0_82 = arith.constant 0 : index
    %171 = vector.load %arg7[%c1_80, %c0_81, %c0_82] : memref<2x6x16xf32, #tpu.memory_space<vmem>>, vector<1x6x16xf32>
    %172 = vector.shape_cast %171 : vector<1x6x16xf32> to vector<6x16xf32>
    %173 = vector.extract_strided_slice %170 {offsets = [0, 0], sizes = [1, 32], strides = [1, 1]} : vector<6x32xf32> to vector<1x32xf32>
    %174 = vector.extract_strided_slice %170 {offsets = [1, 0], sizes = [1, 32], strides = [1, 1]} : vector<6x32xf32> to vector<1x32xf32>
    %cst_83 = arith.constant dense<0.000000e+00> : vector<32xf32>
    %175 = vector.multi_reduction <add>, %165, %cst_83 [1] : vector<32x32xf32> to vector<32xf32>
    %176 = vector.shape_cast %175 : vector<32xf32> to vector<32x1xf32>
    %cst_84 = arith.constant 3.200000e+01 : f32
    %177 = vector.broadcast %cst_84 : f32 to vector<32x1xf32>
    %178 = arith.divf %176, %177 : vector<32x1xf32>
    %179 = vector.broadcast %178 : vector<32x1xf32> to vector<32x32xf32>
    %180 = arith.subf %165, %179 : vector<32x32xf32>
    %181 = arith.mulf %180, %180 : vector<32x32xf32>
    %cst_85 = arith.constant dense<0.000000e+00> : vector<32xf32>
    %182 = vector.multi_reduction <add>, %181, %cst_85 [1] : vector<32x32xf32> to vector<32xf32>
    %183 = vector.shape_cast %182 : vector<32xf32> to vector<32x1xf32>
    %cst_86 = arith.constant 3.200000e+01 : f32
    %184 = vector.broadcast %cst_86 : f32 to vector<32x1xf32>
    %185 = arith.divf %183, %184 : vector<32x1xf32>
    %186 = vector.broadcast %178 : vector<32x1xf32> to vector<32x32xf32>
    %187 = arith.subf %165, %186 : vector<32x32xf32>
    %cst_87 = arith.constant 9.99999997E-7 : f32
    %188 = vector.broadcast %cst_87 : f32 to vector<32x1xf32>
    %189 = arith.addf %185, %188 : vector<32x1xf32>
    %190 = math.rsqrt %189 : vector<32x1xf32>
    %191 = vector.broadcast %190 : vector<32x1xf32> to vector<32x32xf32>
    %192 = arith.mulf %187, %191 : vector<32x32xf32>
    %193 = vector.broadcast %173 : vector<1x32xf32> to vector<32x32xf32>
    %194 = arith.mulf %192, %193 : vector<32x32xf32>
    %195 = vector.broadcast %174 : vector<1x32xf32> to vector<32x32xf32>
    %196 = arith.addf %194, %195 : vector<32x32xf32>
    %c6 = arith.constant 6 : index
    %c0_88 = arith.constant 0 : index
    %c0_89 = arith.constant 0 : index
    %197 = vector.load %arg6[%c6, %c0_88, %c0_89] : memref<12x32x16xf32, #tpu.memory_space<vmem>>, vector<1x32x16xf32>
    %198 = vector.shape_cast %197 : vector<1x32x16xf32> to vector<32x16xf32>
    %199 = vector.extract_strided_slice %172 {offsets = [0, 0], sizes = [1, 16], strides = [1, 1]} : vector<6x16xf32> to vector<1x16xf32>
    %cst_90 = arith.constant dense<0.000000e+00> : vector<32x16xf32>
    %200 = tpu.matmul %196, %198, %cst_90 {dimension_numbers = #tpu.dot_dimension_numbers<[1], [0], [0], [1], [0, 0, 1, 1], [], []>} : vector<32x32xf32>, vector<32x16xf32>, vector<32x16xf32> -> vector<32x16xf32>
    %201 = vector.broadcast %199 : vector<1x16xf32> to vector<32x16xf32>
    %202 = arith.addf %200, %201 : vector<32x16xf32>
    %c7 = arith.constant 7 : index
    %c0_91 = arith.constant 0 : index
    %c0_92 = arith.constant 0 : index
    %203 = vector.load %arg6[%c7, %c0_91, %c0_92] : memref<12x32x16xf32, #tpu.memory_space<vmem>>, vector<1x32x16xf32>
    %204 = vector.shape_cast %203 : vector<1x32x16xf32> to vector<32x16xf32>
    %205 = vector.extract_strided_slice %172 {offsets = [1, 0], sizes = [1, 16], strides = [1, 1]} : vector<6x16xf32> to vector<1x16xf32>
    %cst_93 = arith.constant dense<0.000000e+00> : vector<32x16xf32>
    %206 = tpu.matmul %196, %204, %cst_93 {dimension_numbers = #tpu.dot_dimension_numbers<[1], [0], [0], [1], [0, 0, 1, 1], [], []>} : vector<32x32xf32>, vector<32x16xf32>, vector<32x16xf32> -> vector<32x16xf32>
    %207 = vector.broadcast %205 : vector<1x16xf32> to vector<32x16xf32>
    %208 = arith.addf %206, %207 : vector<32x16xf32>
    %209 = vector.shape_cast %202 : vector<32x16xf32> to vector<1x32x16xf32>
    %210 = vector.shape_cast %208 : vector<32x16xf32> to vector<1x32x16xf32>
    %211 = tpu.concatenate %209, %210 in 0 : vector<1x32x16xf32>, vector<1x32x16xf32> -> vector<2x32x16xf32>
    %c8 = arith.constant 8 : index
    %c0_94 = arith.constant 0 : index
    %c0_95 = arith.constant 0 : index
    %212 = vector.load %arg6[%c8, %c0_94, %c0_95] : memref<12x32x16xf32, #tpu.memory_space<vmem>>, vector<1x32x16xf32>
    %213 = vector.shape_cast %212 : vector<1x32x16xf32> to vector<32x16xf32>
    %214 = vector.extract_strided_slice %172 {offsets = [2, 0], sizes = [1, 16], strides = [1, 1]} : vector<6x16xf32> to vector<1x16xf32>
    %cst_96 = arith.constant dense<0.000000e+00> : vector<32x16xf32>
    %215 = tpu.matmul %196, %213, %cst_96 {dimension_numbers = #tpu.dot_dimension_numbers<[1], [0], [0], [1], [0, 0, 1, 1], [], []>} : vector<32x32xf32>, vector<32x16xf32>, vector<32x16xf32> -> vector<32x16xf32>
    %216 = vector.broadcast %214 : vector<1x16xf32> to vector<32x16xf32>
    %217 = arith.addf %215, %216 : vector<32x16xf32>
    %c9 = arith.constant 9 : index
    %c0_97 = arith.constant 0 : index
    %c0_98 = arith.constant 0 : index
    %218 = vector.load %arg6[%c9, %c0_97, %c0_98] : memref<12x32x16xf32, #tpu.memory_space<vmem>>, vector<1x32x16xf32>
    %219 = vector.shape_cast %218 : vector<1x32x16xf32> to vector<32x16xf32>
    %220 = vector.extract_strided_slice %172 {offsets = [3, 0], sizes = [1, 16], strides = [1, 1]} : vector<6x16xf32> to vector<1x16xf32>
    %cst_99 = arith.constant dense<0.000000e+00> : vector<32x16xf32>
    %221 = tpu.matmul %196, %219, %cst_99 {dimension_numbers = #tpu.dot_dimension_numbers<[1], [0], [0], [1], [0, 0, 1, 1], [], []>} : vector<32x32xf32>, vector<32x16xf32>, vector<32x16xf32> -> vector<32x16xf32>
    %222 = vector.broadcast %220 : vector<1x16xf32> to vector<32x16xf32>
    %223 = arith.addf %221, %222 : vector<32x16xf32>
    %224 = vector.shape_cast %217 : vector<32x16xf32> to vector<1x32x16xf32>
    %225 = vector.shape_cast %223 : vector<32x16xf32> to vector<1x32x16xf32>
    %226 = tpu.concatenate %224, %225 in 0 : vector<1x32x16xf32>, vector<1x32x16xf32> -> vector<2x32x16xf32>
    %c10 = arith.constant 10 : index
    %c0_100 = arith.constant 0 : index
    %c0_101 = arith.constant 0 : index
    %227 = vector.load %arg6[%c10, %c0_100, %c0_101] : memref<12x32x16xf32, #tpu.memory_space<vmem>>, vector<1x32x16xf32>
    %228 = vector.shape_cast %227 : vector<1x32x16xf32> to vector<32x16xf32>
    %229 = vector.extract_strided_slice %172 {offsets = [4, 0], sizes = [1, 16], strides = [1, 1]} : vector<6x16xf32> to vector<1x16xf32>
    %cst_102 = arith.constant dense<0.000000e+00> : vector<32x16xf32>
    %230 = tpu.matmul %196, %228, %cst_102 {dimension_numbers = #tpu.dot_dimension_numbers<[1], [0], [0], [1], [0, 0, 1, 1], [], []>} : vector<32x32xf32>, vector<32x16xf32>, vector<32x16xf32> -> vector<32x16xf32>
    %231 = vector.broadcast %229 : vector<1x16xf32> to vector<32x16xf32>
    %232 = arith.addf %230, %231 : vector<32x16xf32>
    %c11 = arith.constant 11 : index
    %c0_103 = arith.constant 0 : index
    %c0_104 = arith.constant 0 : index
    %233 = vector.load %arg6[%c11, %c0_103, %c0_104] : memref<12x32x16xf32, #tpu.memory_space<vmem>>, vector<1x32x16xf32>
    %234 = vector.shape_cast %233 : vector<1x32x16xf32> to vector<32x16xf32>
    %235 = vector.extract_strided_slice %172 {offsets = [5, 0], sizes = [1, 16], strides = [1, 1]} : vector<6x16xf32> to vector<1x16xf32>
    %cst_105 = arith.constant dense<0.000000e+00> : vector<32x16xf32>
    %236 = tpu.matmul %196, %234, %cst_105 {dimension_numbers = #tpu.dot_dimension_numbers<[1], [0], [0], [1], [0, 0, 1, 1], [], []>} : vector<32x32xf32>, vector<32x16xf32>, vector<32x16xf32> -> vector<32x16xf32>
    %237 = vector.broadcast %235 : vector<1x16xf32> to vector<32x16xf32>
    %238 = arith.addf %236, %237 : vector<32x16xf32>
    %239 = vector.shape_cast %232 : vector<32x16xf32> to vector<1x32x16xf32>
    %240 = vector.shape_cast %238 : vector<32x16xf32> to vector<1x32x16xf32>
    %241 = tpu.concatenate %239, %240 in 0 : vector<1x32x16xf32>, vector<1x32x16xf32> -> vector<2x32x16xf32>
    "tpu.trace_start"() <{level = 10 : i32, message = "hqd,hkd->hqk"}> : () -> ()
    %cst_106 = arith.constant dense<0.000000e+00> : vector<2x32x32xf32>
    %242 = tpu.matmul %211, %226, %cst_106 {dimension_numbers = #tpu.dot_dimension_numbers<[2], [2], [1], [1], [0, 0, 0, 1, 1, 1], [0], [0]>} : vector<2x32x16xf32>, vector<2x32x16xf32>, vector<2x32x32xf32> -> vector<2x32x32xf32>
    "tpu.trace_stop"() : () -> ()
    %cst_107 = arith.constant 2.500000e-01 : f32
    %243 = vector.broadcast %cst_107 : f32 to vector<2x32x32xf32>
    %244 = arith.mulf %242, %243 : vector<2x32x32xf32>
    %cst_108 = arith.constant dense<0xFF800000> : vector<2x32xf32>
    %245 = vector.multi_reduction <maximumf>, %244, %cst_108 [2] : vector<2x32x32xf32> to vector<2x32xf32>
    %246 = vector.shape_cast %245 : vector<2x32xf32> to vector<2x32x1xf32>
    %247 = vector.broadcast %246 : vector<2x32x1xf32> to vector<2x32x32xf32>
    %248 = arith.subf %244, %247 : vector<2x32x32xf32>
    %249 = math.exp %248 : vector<2x32x32xf32>
    %cst_109 = arith.constant dense<0.000000e+00> : vector<2x32xf32>
    %250 = vector.multi_reduction <add>, %249, %cst_109 [2] : vector<2x32x32xf32> to vector<2x32xf32>
    %251 = vector.shape_cast %250 : vector<2x32xf32> to vector<2x32x1xf32>
    %252 = tpu.reciprocal %251 {approx = true} : vector<2x32x1xf32> -> vector<2x32x1xf32>
    %253 = vector.broadcast %252 : vector<2x32x1xf32> to vector<2x32x32xf32>
    %254 = arith.mulf %249, %253 : vector<2x32x32xf32>
    "tpu.trace_start"() <{level = 10 : i32, message = "hqk,hkd->hqd"}> : () -> ()
    %cst_110 = arith.constant dense<0.000000e+00> : vector<2x32x16xf32>
    %255 = tpu.matmul %254, %241, %cst_110 {dimension_numbers = #tpu.dot_dimension_numbers<[2], [1], [1], [2], [0, 0, 0, 1, 1, 2], [0], [0]>} : vector<2x32x32xf32>, vector<2x32x16xf32>, vector<2x32x16xf32> -> vector<2x32x16xf32>
    "tpu.trace_stop"() : () -> ()
    %256 = vector.extract_strided_slice %255 {offsets = [0, 0, 0], sizes = [1, 32, 16], strides = [1, 1, 1]} : vector<2x32x16xf32> to vector<1x32x16xf32>
    %257 = vector.shape_cast %256 : vector<1x32x16xf32> to vector<32x16xf32>
    %258 = vector.extract_strided_slice %255 {offsets = [1, 0, 0], sizes = [1, 32, 16], strides = [1, 1, 1]} : vector<2x32x16xf32> to vector<1x32x16xf32>
    %259 = vector.shape_cast %258 : vector<1x32x16xf32> to vector<32x16xf32>
    %260 = tpu.concatenate %257, %259 in 1 : vector<32x16xf32>, vector<32x16xf32> -> vector<32x32xf32>
    %c1_111 = arith.constant 1 : index
    %c0_112 = arith.constant 0 : index
    %c0_113 = arith.constant 0 : index
    %261 = vector.load %arg8[%c1_111, %c0_112, %c0_113] : memref<2x32x32xf32, #tpu.memory_space<vmem>>, vector<1x32x32xf32>
    %262 = vector.shape_cast %261 : vector<1x32x32xf32> to vector<32x32xf32>
    %cst_114 = arith.constant dense<0.000000e+00> : vector<32x32xf32>
    %263 = tpu.matmul %260, %262, %cst_114 {dimension_numbers = #tpu.dot_dimension_numbers<[1], [0], [0], [1], [0, 0, 1, 1], [], []>} : vector<32x32xf32>, vector<32x32xf32>, vector<32x32xf32> -> vector<32x32xf32>
    %264 = arith.addf %165, %263 : vector<32x32xf32>
    %265 = vector.extract_strided_slice %170 {offsets = [2, 0], sizes = [1, 32], strides = [1, 1]} : vector<6x32xf32> to vector<1x32xf32>
    %266 = vector.broadcast %265 : vector<1x32xf32> to vector<32x32xf32>
    %267 = arith.addf %264, %266 : vector<32x32xf32>
    %268 = vector.extract_strided_slice %170 {offsets = [3, 0], sizes = [1, 32], strides = [1, 1]} : vector<6x32xf32> to vector<1x32xf32>
    %269 = vector.extract_strided_slice %170 {offsets = [4, 0], sizes = [1, 32], strides = [1, 1]} : vector<6x32xf32> to vector<1x32xf32>
    %cst_115 = arith.constant dense<0.000000e+00> : vector<32xf32>
    %270 = vector.multi_reduction <add>, %267, %cst_115 [1] : vector<32x32xf32> to vector<32xf32>
    %271 = vector.shape_cast %270 : vector<32xf32> to vector<32x1xf32>
    %cst_116 = arith.constant 3.200000e+01 : f32
    %272 = vector.broadcast %cst_116 : f32 to vector<32x1xf32>
    %273 = arith.divf %271, %272 : vector<32x1xf32>
    %274 = vector.broadcast %273 : vector<32x1xf32> to vector<32x32xf32>
    %275 = arith.subf %267, %274 : vector<32x32xf32>
    %276 = arith.mulf %275, %275 : vector<32x32xf32>
    %cst_117 = arith.constant dense<0.000000e+00> : vector<32xf32>
    %277 = vector.multi_reduction <add>, %276, %cst_117 [1] : vector<32x32xf32> to vector<32xf32>
    %278 = vector.shape_cast %277 : vector<32xf32> to vector<32x1xf32>
    %cst_118 = arith.constant 3.200000e+01 : f32
    %279 = vector.broadcast %cst_118 : f32 to vector<32x1xf32>
    %280 = arith.divf %278, %279 : vector<32x1xf32>
    %281 = vector.broadcast %273 : vector<32x1xf32> to vector<32x32xf32>
    %282 = arith.subf %267, %281 : vector<32x32xf32>
    %cst_119 = arith.constant 9.99999997E-7 : f32
    %283 = vector.broadcast %cst_119 : f32 to vector<32x1xf32>
    %284 = arith.addf %280, %283 : vector<32x1xf32>
    %285 = math.rsqrt %284 : vector<32x1xf32>
    %286 = vector.broadcast %285 : vector<32x1xf32> to vector<32x32xf32>
    %287 = arith.mulf %282, %286 : vector<32x32xf32>
    %288 = vector.broadcast %268 : vector<1x32xf32> to vector<32x32xf32>
    %289 = arith.mulf %287, %288 : vector<32x32xf32>
    %290 = vector.broadcast %269 : vector<1x32xf32> to vector<32x32xf32>
    %291 = arith.addf %289, %290 : vector<32x32xf32>
    %c1_120 = arith.constant 1 : index
    %c0_121 = arith.constant 0 : index
    %c0_122 = arith.constant 0 : index
    %292 = vector.load %arg10[%c1_120, %c0_121, %c0_122] : memref<2x32x128xf32, #tpu.memory_space<vmem>>, vector<1x32x128xf32>
    %293 = vector.shape_cast %292 : vector<1x32x128xf32> to vector<32x128xf32>
    %cst_123 = arith.constant dense<0.000000e+00> : vector<32x128xf32>
    %294 = tpu.matmul %291, %293, %cst_123 {dimension_numbers = #tpu.dot_dimension_numbers<[1], [0], [0], [1], [0, 0, 1, 1], [], []>} : vector<32x32xf32>, vector<32x128xf32>, vector<32x128xf32> -> vector<32x128xf32>
    %c1_124 = arith.constant 1 : index
    %c0_125 = arith.constant 0 : index
    %c0_126 = arith.constant 0 : index
    %295 = vector.load %arg11[%c1_124, %c0_125, %c0_126] : memref<2x1x128xf32, #tpu.memory_space<vmem>>, vector<1x1x128xf32>
    %296 = vector.shape_cast %295 : vector<1x1x128xf32> to vector<1x128xf32>
    %297 = vector.broadcast %296 : vector<1x128xf32> to vector<32x128xf32>
    %298 = arith.addf %294, %297 : vector<32x128xf32>
    %cst_127 = arith.constant 5.000000e-01 : f32
    %299 = vector.broadcast %cst_127 : f32 to vector<32x128xf32>
    %300 = arith.mulf %299, %298 : vector<32x128xf32>
    %cst_128 = arith.constant 4.471500e-02 : f32
    %301 = vector.broadcast %cst_128 : f32 to vector<32x128xf32>
    %302 = arith.mulf %301, %298 : vector<32x128xf32>
    %303 = arith.mulf %302, %298 : vector<32x128xf32>
    %304 = arith.mulf %303, %298 : vector<32x128xf32>
    %305 = arith.addf %298, %304 : vector<32x128xf32>
    %cst_129 = arith.constant 0.797884583 : f32
    %306 = vector.broadcast %cst_129 : f32 to vector<32x128xf32>
    %307 = arith.mulf %306, %305 : vector<32x128xf32>
    %308 = math.tanh %307 : vector<32x128xf32>
    %cst_130 = arith.constant 1.000000e+00 : f32
    %309 = vector.broadcast %cst_130 : f32 to vector<32x128xf32>
    %310 = arith.addf %309, %308 : vector<32x128xf32>
    %311 = arith.mulf %300, %310 : vector<32x128xf32>
    %c1_131 = arith.constant 1 : index
    %c0_132 = arith.constant 0 : index
    %c0_133 = arith.constant 0 : index
    %312 = vector.load %arg12[%c1_131, %c0_132, %c0_133] : memref<2x128x32xf32, #tpu.memory_space<vmem>>, vector<1x128x32xf32>
    %313 = vector.shape_cast %312 : vector<1x128x32xf32> to vector<128x32xf32>
    %cst_134 = arith.constant dense<0.000000e+00> : vector<32x32xf32>
    %314 = tpu.matmul %311, %313, %cst_134 {dimension_numbers = #tpu.dot_dimension_numbers<[1], [0], [0], [1], [0, 0, 1, 1], [], []>} : vector<32x128xf32>, vector<128x32xf32>, vector<32x32xf32> -> vector<32x32xf32>
    %315 = arith.addf %267, %314 : vector<32x32xf32>
    %316 = vector.extract_strided_slice %170 {offsets = [5, 0], sizes = [1, 32], strides = [1, 1]} : vector<6x32xf32> to vector<1x32xf32>
    %317 = vector.broadcast %316 : vector<1x32xf32> to vector<32x32xf32>
    %318 = arith.addf %315, %317 : vector<32x32xf32>
    %c0_135 = arith.constant 0 : index
    %c0_136 = arith.constant 0 : index
    %319 = vector.load %arg13[%c0_135, %c0_136] : memref<2x32xf32, #tpu.memory_space<vmem>>, vector<2x32xf32>
    %320 = vector.extract_strided_slice %319 {offsets = [0, 0], sizes = [1, 32], strides = [1, 1]} : vector<2x32xf32> to vector<1x32xf32>
    %321 = vector.extract_strided_slice %319 {offsets = [1, 0], sizes = [1, 32], strides = [1, 1]} : vector<2x32xf32> to vector<1x32xf32>
    %cst_137 = arith.constant dense<0.000000e+00> : vector<32xf32>
    %322 = vector.multi_reduction <add>, %318, %cst_137 [1] : vector<32x32xf32> to vector<32xf32>
    %323 = vector.shape_cast %322 : vector<32xf32> to vector<32x1xf32>
    %cst_138 = arith.constant 3.200000e+01 : f32
    %324 = vector.broadcast %cst_138 : f32 to vector<32x1xf32>
    %325 = arith.divf %323, %324 : vector<32x1xf32>
    %326 = vector.broadcast %325 : vector<32x1xf32> to vector<32x32xf32>
    %327 = arith.subf %318, %326 : vector<32x32xf32>
    %328 = arith.mulf %327, %327 : vector<32x32xf32>
    %cst_139 = arith.constant dense<0.000000e+00> : vector<32xf32>
    %329 = vector.multi_reduction <add>, %328, %cst_139 [1] : vector<32x32xf32> to vector<32xf32>
    %330 = vector.shape_cast %329 : vector<32xf32> to vector<32x1xf32>
    %cst_140 = arith.constant 3.200000e+01 : f32
    %331 = vector.broadcast %cst_140 : f32 to vector<32x1xf32>
    %332 = arith.divf %330, %331 : vector<32x1xf32>
    %333 = vector.broadcast %325 : vector<32x1xf32> to vector<32x32xf32>
    %334 = arith.subf %318, %333 : vector<32x32xf32>
    %cst_141 = arith.constant 9.99999997E-7 : f32
    %335 = vector.broadcast %cst_141 : f32 to vector<32x1xf32>
    %336 = arith.addf %332, %335 : vector<32x1xf32>
    %337 = math.rsqrt %336 : vector<32x1xf32>
    %338 = vector.broadcast %337 : vector<32x1xf32> to vector<32x32xf32>
    %339 = arith.mulf %334, %338 : vector<32x32xf32>
    %340 = vector.broadcast %320 : vector<1x32xf32> to vector<32x32xf32>
    %341 = arith.mulf %339, %340 : vector<32x32xf32>
    %342 = vector.broadcast %321 : vector<1x32xf32> to vector<32x32xf32>
    %343 = arith.addf %341, %342 : vector<32x32xf32>
    %c0_142 = arith.constant 0 : index
    %c0_143 = arith.constant 0 : index
    %c0_144 = arith.constant 0 : index
    %344 = vector.load %arg16[%c0_142, %c0_143, %c0_144] : memref<1x32x32xf32, #tpu.memory_space<vmem>>, vector<1x32x32xf32>
    %345 = vector.shape_cast %344 : vector<1x32x32xf32> to vector<32x32xf32>
    %346 = vector.shape_cast %343 : vector<32x32xf32> to vector<1x32x32xf32>
    tpu.vector_store %arg16[%c0_142, %c0_143, %c0_144], %346 {strides = array<i32>} : memref<1x32x32xf32, #tpu.memory_space<vmem>>, vector<1x32x32xf32>,
    return
  }
  func.func @transform_0(%arg0: i32) -> (i32, i32, i32) {
    %c0_i32 = arith.constant 0 : i32
    %c0_i32_0 = arith.constant 0 : i32
    %c0_i32_1 = arith.constant 0 : i32
    return %arg0, %c0_i32, %c0_i32_0 : i32, i32, i32
  }
  func.func @transform_1(%arg0: i32) -> (i32, i32, i32) {
    %c0_i32 = arith.constant 0 : i32
    %c0_i32_0 = arith.constant 0 : i32
    %c0_i32_1 = arith.constant 0 : i32
    return %arg0, %c0_i32, %c0_i32_0 : i32, i32, i32
  }
  func.func @transform_2(%arg0: i32) -> (i32, i32) {
    %c0_i32 = arith.constant 0 : i32
    %c0_i32_0 = arith.constant 0 : i32
    %c0_i32_1 = arith.constant 0 : i32
    return %c0_i32, %c0_i32_0 : i32, i32
  }
  func.func @transform_3(%arg0: i32) -> (i32, i32) {
    %c0_i32 = arith.constant 0 : i32
    %c0_i32_0 = arith.constant 0 : i32
    %c0_i32_1 = arith.constant 0 : i32
    return %c0_i32, %c0_i32_0 : i32, i32
  }
  func.func @transform_4(%arg0: i32) -> (i32, i32) {
    %c0_i32 = arith.constant 0 : i32
    %c0_i32_0 = arith.constant 0 : i32
    %c0_i32_1 = arith.constant 0 : i32
    return %c0_i32, %c0_i32_0 : i32, i32
  }
  func.func @transform_5(%arg0: i32) -> (i32, i32, i32) {
    %c0_i32 = arith.constant 0 : i32
    %c0_i32_0 = arith.constant 0 : i32
    %c0_i32_1 = arith.constant 0 : i32
    %c0_i32_2 = arith.constant 0 : i32
    return %c0_i32, %c0_i32_0, %c0_i32_1 : i32, i32, i32
  }
  func.func @transform_6(%arg0: i32) -> (i32, i32, i32) {
    %c0_i32 = arith.constant 0 : i32
    %c0_i32_0 = arith.constant 0 : i32
    %c0_i32_1 = arith.constant 0 : i32
    %c0_i32_2 = arith.constant 0 : i32
    return %c0_i32, %c0_i32_0, %c0_i32_1 : i32, i32, i32
  }
  func.func @transform_7(%arg0: i32) -> (i32, i32, i32) {
    %c0_i32 = arith.constant 0 : i32
    %c0_i32_0 = arith.constant 0 : i32
    %c0_i32_1 = arith.constant 0 : i32
    %c0_i32_2 = arith.constant 0 : i32
    return %c0_i32, %c0_i32_0, %c0_i32_1 : i32, i32, i32
  }
  func.func @transform_8(%arg0: i32) -> (i32, i32, i32) {
    %c0_i32 = arith.constant 0 : i32
    %c0_i32_0 = arith.constant 0 : i32
    %c0_i32_1 = arith.constant 0 : i32
    %c0_i32_2 = arith.constant 0 : i32
    return %c0_i32, %c0_i32_0, %c0_i32_1 : i32, i32, i32
  }
  func.func @transform_9(%arg0: i32) -> (i32, i32, i32) {
    %c0_i32 = arith.constant 0 : i32
    %c0_i32_0 = arith.constant 0 : i32
    %c0_i32_1 = arith.constant 0 : i32
    %c0_i32_2 = arith.constant 0 : i32
    return %c0_i32, %c0_i32_0, %c0_i32_1 : i32, i32, i32
  }
  func.func @transform_10(%arg0: i32) -> (i32, i32, i32) {
    %c0_i32 = arith.constant 0 : i32
    %c0_i32_0 = arith.constant 0 : i32
    %c0_i32_1 = arith.constant 0 : i32
    %c0_i32_2 = arith.constant 0 : i32
    return %c0_i32, %c0_i32_0, %c0_i32_1 : i32, i32, i32
  }
  func.func @transform_11(%arg0: i32) -> (i32, i32, i32) {
    %c0_i32 = arith.constant 0 : i32
    %c0_i32_0 = arith.constant 0 : i32
    %c0_i32_1 = arith.constant 0 : i32
    %c0_i32_2 = arith.constant 0 : i32
    return %c0_i32, %c0_i32_0, %c0_i32_1 : i32, i32, i32
  }
  func.func @transform_12(%arg0: i32) -> (i32, i32) {
    %c0_i32 = arith.constant 0 : i32
    %c0_i32_0 = arith.constant 0 : i32
    %c0_i32_1 = arith.constant 0 : i32
    return %c0_i32, %c0_i32_0 : i32, i32
  }
  func.func @transform_13(%arg0: i32) -> (i32, i32, i32) {
    %c0_i32 = arith.constant 0 : i32
    %c0_i32_0 = arith.constant 0 : i32
    %c0_i32_1 = arith.constant 0 : i32
    return %arg0, %c0_i32, %c0_i32_0 : i32, i32, i32
  }
  func.func @transform_14(%arg0: i32) -> (i32, i32, i32, i32) {
    %c0_i32 = arith.constant 0 : i32
    %c0_i32_0 = arith.constant 0 : i32
    %c0_i32_1 = arith.constant 0 : i32
    %c0_i32_2 = arith.constant 0 : i32
    return %c0_i32, %arg0, %c0_i32_0, %c0_i32_1 : i32, i32, i32, i32
  }
  func.func @transform_15(%arg0: i32) -> (i32, i32, i32) {
    %c0_i32 = arith.constant 0 : i32
    %c0_i32_0 = arith.constant 0 : i32
    %c0_i32_1 = arith.constant 0 : i32
    return %arg0, %c0_i32, %c0_i32_0 : i32, i32, i32
  }
}

</mosaic_0001>

<bundles_post_ra>
// kernel: _forward_impl.1
= control target key start
LH: loop header
LB: loop body
LE: loop exit
PB: predicated region body
PF: predicated region fallthrough
CT: control target
= control target key end

     0   :  { %s6751_s0 = inlined_call_operand.vmem [shape: f32[2,16,48], index: 0, kind: input, shape index: {}]   ;;  %s6752_s1 = inlined_call_operand.vmem [shape: f32[2,16,48], index: 1, kind: input, shape index: {}]   ;;  %s6753_s2 = inlined_call_operand.vmem [shape: f32[48,32], index: 2, kind: input, shape index: {}]   ;;  %s6754_s3 = inlined_call_operand.vmem [shape: f32[1,32], index: 3, kind: input, shape index: {}]   ;;  %s6755_s4 = inlined_call_operand.vmem [shape: f32[16,32], index: 4, kind: input, shape index: {}]   ;;  %s6756_s5 = inlined_call_operand.vmem [shape: f32[12,32,16], index: 5, kind: input, shape index: {}]   ;;  %s6757_s6 = inlined_call_operand.vmem [shape: f32[2,6,16], index: 6, kind: input, shape index: {}]   ;;  %s6758_s7 = inlined_call_operand.vmem [shape: f32[2,32,32], index: 7, kind: input, shape index: {}]   ;;  %s6759_s8 = inlined_call_operand.vmem [shape: f32[2,6,32], index: 8, kind: input, shape index: {}]   ;;  %s6760_s9 = inlined_call_operand.vmem [shape: f32[2,32,128], index: 9, kind: input, shape index: {}]   ;;  %s6761_s10 = inlined_call_operand.vmem [shape: f32[2,1,128], index: 10, kind: input, shape index: {}]   ;;  %s6762_s11 = inlined_call_operand.vmem [shape: f32[2,128,32], index: 11, kind: input, shape index: {}]   ;;  %s6763_s12 = inlined_call_operand.vmem [shape: f32[2,32], index: 12, kind: input, shape index: {}]   ;;  %s6764_s13 = inlined_call_operand.hbm [shape: f32[2,32,32], index: 13, kind: output, shape index: {0}]   ;;  %s6765_s14 = inlined_call_operand.hbm [shape: f32[1,2,32,32], index: 14, kind: output, shape index: {1}]   ;;  %s6766_s15 = inlined_call_operand.hbm [shape: f32[2,32,32], index: 15, kind: output, shape index: {2}]  }
   0x1   :  { %6777 = sst [smem:[#allocation13_spill]] %s6751_s0 }
   0x2   :  { %6778 = sst [smem:[#allocation14_spill]] %s6752_s1 }
   0x3   :  { %6779 = sst [smem:[#allocation15_spill]] %s6753_s2 }
   0x4   :  { %6780 = sst [smem:[#allocation16_spill]] %s6754_s3 }
   0x5   :  { %21 = vsyncpa [#allocation3], 0 }
   0x6   :  { %23 = vsyncpa [#allocation3 + $0x1], 0 }
   0x7   :  { %24 = vsyncpa [#allocation5], 0 }
   0x8   :  { %26 = vsyncpa [#allocation5 + $0x1], 0  ;;  %s5713_s18 = smov 0   ;;  %s5715_s19 = smov 0  }
   0x9   :  { %s5717_s20 = smov 0   ;;  %s5719_s21 = smov 0  }
   0xa LB: > { %6781 = sst [smem:[#allocation9_spill]] %s5621_s20  ;;  %s5734_s22 = sadd.s32 4294967295, %s5625_s21   ;;  %s5625_s21 = sphi %s5719_s21, %s6798_s21   ;;  %s5621_s20 = sphi %s5717_s20, %s6800_s20   ;;  %s5617_s19 = sphi %s5715_s19, %s6802_s19   ;;  %s5613_s18 = sphi %s5713_s18, %s6801_s18  }
   0xb   : > { %s6767_s23 = sadd.s32 4294967294, %s5625_s21   ;;  %s5738_s24 = sadd.s32 1, %s5625_s21  }
   0xc   : > { %6782 = sst [smem:[#allocation10_spill]] %s5738_s24  ;;  %s322_s25 = sadd.s32 1, %s5621_s20 }
   0xd   : > { %s319_s26 = ssub.s32 %s5625_s21, %s5738_s24  ;;  %p332_p0 = scmp.ne.s32.totalorder %s5621_s20, %s5617_s19 }
   0xe   : > { %p320_p1 = scmp.eq.s32.totalorder %s319_s26, 0  ;;  %p333_p2 = scmp.eq.s32.totalorder %s5734_s22, 1 }
   0xf   : > { %p338_p3 = scmp.ne.s32.totalorder %s5617_s19, %s5613_s18  ;;  %p339_p4 = scmp.eq.s32.totalorder %s6767_s23, 1 }
  0x10   : > { %s5751_s27 = scalar_select %p320_p1, %s5621_s20, %s322_s25  }
  0x11   : > { %p5753_p5 = por %p333_p2, %p332_p0  ;;  %p5757_p6 = por %p339_p4, %p338_p3 }
  0x12   : > { %6783 = sst [smem:[#allocation11_spill]] %s5751_s27  ;;  %p4159_p7 = scmp.ge.s32.totalorder %s5625_s21, 1 }
  0x13   : > { %s6785_s29 = scalar_select %p5757_p6, 1, 0 }
  0x14   : > { %p458_p8 = scmp.lt.s32.totalorder %s5625_s21, 3 }
  0x15   : > { %6786 = sst [smem:[#allocation12_spill]] %s6785_s29 }
  0x16   : > { %p459_p9 = pnand %p4159_p7, %p458_p8 }
  0x17   : > { %s6787_s2 = sld [smem:[#allocation15_spill]] (!%p459_p9)  ;;  %p521_p10 = scmp.lt.s32.totalorder (!%p459_p9), %s5734_s22, 1  ;;  %vm550_vm0 = vcmask (!%p459_p9), 392192   ;;  %v536_v14 = vld [vmem:[%s6755_s4 + $0x8] sm:$0xff] (!%p459_p9)  ;;  %v535_v17 = vld [vmem:[%s6755_s4] sm:$0xff] (!%p459_p9)  ;;  %vm652_vm1 = vcmask (!%p459_p9), 261120  }
  0x18   : > { %462 = sbr.rel (%p459_p9) target bundleno = 5439 (0x153f), region = 72  ;;  %s6788_s0 = sld [smem:[#allocation13_spill]] (!%p459_p9)  ;;  %v728_v52 = vld [vmem:[%s6756_s5] sm:$0xff] (!%p459_p9)  ;;  %v729_v53 = vld [vmem:[%s6756_s5 + $0x8] sm:$0xff] (!%p459_p9)  ;;  %v730_v58 = vld [vmem:[%s6756_s5 + $0x10] sm:$0xff] (!%p459_p9)  ;;  %vm1303_vm2 = vcmask (!%p459_p9), 130048  }
  0x19   : > { %s6789_s1 = sld [smem:[#allocation14_spill]] (!%p459_p9)  ;;  %s6772_s30 = sand.u32 (!%p459_p9), 1, %s5617_s19   ;;  %v4184_v54 = vld [vmem:[%s6756_s5 + $0x40] sm:$0xff] (!%p459_p9)  ;;  %v5057_v55 = vpack.c.bf16 (!%p459_p9), %v729_v53, %v728_v52  ;;  %v4185_v56 = vld [vmem:[%s6756_s5 + $0x48] sm:$0xff] (!%p459_p9)  ;;  %v731_v59 = vld [vmem:[%s6756_s5 + $0x18] sm:$0xff] (!%p459_p9) }
  0x1a   : > { %s6790_s3 = sld [smem:[#allocation16_spill]] (!%p459_p9)  ;;  %s5795_s25 = sshll.u32 (!%p459_p9), %s6772_s30, 5  ;;  %v5073_v57 = vpack.c.bf16 (!%p459_p9), %v4185_v56, %v4184_v54  ;;  %v4186_v60 = vld [vmem:[%s6756_s5 + $0x50] sm:$0xff] (!%p459_p9)  ;;  %v5061_v61 = vpack.c.bf16 (!%p459_p9), %v731_v59, %v730_v58  ;;  %v4187_v62 = vld [vmem:[%s6756_s5 + $0x58] sm:$0xff] (!%p459_p9)  ;;  %v4193_v52 = vld [vmem:[%s6756_s5 + $0x68] sm:$0xff] (!%p459_p9) }
  0x1b   : > { %s5808_s24 = scalar_lea.vmem (!%p459_p9), [#allocation2], %s5795_s25  ;;  %v5077_v63 = vpack.c.bf16 (!%p459_p9), %v4187_v62, %v4186_v60  ;;  %v4194_v54 = vld [vmem:[%s6756_s5 + $0x70] sm:$0xff] (!%p459_p9)  ;;  %v4209_v58 = vld [vmem:[%s6756_s5 + $0xa8] sm:$0xff] (!%p459_p9)  ;;  %vm5996_vm3 = vmpackc.low (!%p459_p9), %vm1303_vm2, %vm1303_vm2  ;;  %s6200_s30 = scalar_lea.vmem (!%p459_p9), [#allocation4], %s5795_s25 }
  0x1c   : > { %5074 = vmatprep.subr.bf16.mxu0 (!%p459_p9), %v5073_v57  ;;  %v4210_v60 = vld [vmem:[%s6756_s5 + $0xb0] sm:$0xff] (!%p459_p9)  ;;  %s3970_s16 = sand.u32 (!%p459_p9), 1, %s5734_s22  }
  0x1d   : > { %v537_v0 = vld [vmem:[%s6787_s2] sm:$0xff] (!%p459_p9)  ;;  %v538_v1 = vld [vmem:[%s6787_s2 + $0x8] sm:$0xff] (!%p459_p9)  ;;  %v539_v2 = vld [vmem:[%s6787_s2 + $0x10] sm:$0xff] (!%p459_p9)  ;;  %5076 = vmatpush3.bf16.msra.mxu0 (!%p459_p9), %v5073_v57 }
  0x1e   : > { %v5045_v3 = vpack.c.bf16 (!%p459_p9), %v538_v1, %v537_v0  ;;  %v540_v4 = vld [vmem:[%s6787_s2 + $0x18] sm:$0xff] (!%p459_p9)  ;;  %v541_v6 = vld [vmem:[%s6787_s2 + $0x20] sm:$0xff] (!%p459_p9)  ;;  %v542_v7 = vld [vmem:[%s6787_s2 + $0x28] sm:$0xff] (!%p459_p9)  ;;  %5078 = vmatprep.subr.bf16.mxu0 (!%p459_p9), %v5077_v63  ;;  %s6620_s2 = scalar_lea.sflag (!%p459_p9), [#allocation5], %s3970_s16 }
  0x1f   : > { %v5049_v5 = vpack.c.bf16 %v540_v4, %v539_v2  ;;  %s522_s17 = scalar_select %p521_p10, %s5734_s22, 1  ;;  %v5053_v8 = vpack.c.bf16 %v542_v7, %v541_v6  ;;  %v4176_v0 = vld [vmem:[%s6756_s5 + $0x20] sm:$0xff]  ;;  %v4177_v1 = vld [vmem:[%s6756_s5 + $0x28] sm:$0xff] }
  0x20   : > { %5046 = vmatprep.subr.bf16.mxu1 %v5045_v3  ;;  %v4167_v13 = vld [vmem:[%s6790_s3] ss:$0 sm:$0xff]  ;;  %v4201_v4 = vld [vmem:[%s6756_s5 + $0x88] sm:$0xff] }
  0x21   : > { %5048 = vmatpush3.bf16.msra.mxu1 %v5045_v3  ;;  %s4368_s23 = sshll.u32 %s522_s17, 4  ;;  %v4200_v2 = vld [vmem:[%s6756_s5 + $0x80] sm:$0xff]  ;;  %5080 = vmatpush3.bf16.msra.mxu0 %v5077_v63  ;;  %v5065_v3 = vpack.c.bf16 %v4177_v1, %v4176_v0 }
  0x22   : > { %5050 = vmatprep.subr.bf16.mxu1 %v5049_v5  ;;  %s525_s27 = scalar_lea.vmem %s6788_s0, %s4368_s23  ;;  %s530_s26 = scalar_lea.vmem %s6789_s1, %s4368_s23  ;;  %v4208_v57 = vld [vmem:[%s6756_s5 + $0xa0] sm:$0xff] }
  0x23   : > { %v531_v9 = vld [vmem:[%s525_s27] sm:$0xff]  ;;  %v532_v10 = vld [vmem:[%s525_s27 + $0x8] sm:$0xff]  ;;  %v5097_v59 = vpack.c.bf16 %v4209_v58, %v4208_v57  ;;  %s6773_s23 = smov 16   ;;  %s6609_s1 = sshll.u32 %s5734_s22, 9 }
  0x24   : > { %4627 = vmatprep.mubr.msk.f32.mxu1 %vm550_vm0, %v531_v9  ;;  %v533_v11 = vld [vmem:[%s530_s26] sm:$0xff]  ;;  %v534_v12 = vld [vmem:[%s530_s26 + $0x8] sm:$0xff]  ;;  %s6615_s20 = scalar_lea.hbm %s6765_s14, %s6609_s1  ;;  %s4005_s27 = sshll.u32 %s6200_s30, 4  ;;  %s6618_s27 = int_to_ptr.vmem [resolvable:$true] %s4005_s27 }
  0x25   : > { %5052 = vmatpush3.bf16.msra.mxu1 %v5049_v5  ;;  %v5089_v5 = vpack.c.bf16 %v4201_v4, %v4200_v2  ;;  %v658_v0 = vld [vmem:[%s6757_s6] sm:$0x3f]  ;;  %s5503_s0 = scalar_lea.vmem %s6618_s27, 512  ;;  %s5628_s22 = smov [#allocation4]  }
  0x26   : > { %5054 = vmatprep.subr.bf16.mxu1 %v5053_v8  ;;  %p5504_p11 = scmp.ne.s32.totalorder %s6618_s27, %s5503_s0  ;;  %s5507_s29 = sshll.u32 %s5628_s22, 4  ;;  %s5508_s29 = int_to_ptr.vmem [resolvable:$false] %s5507_s29 }
  0x27   : > { %5090 = vmatprep.subr.bf16.mxu0 %v5089_v5  ;;  %s5509_s26 = scalar_lea.vmem %s5508_s29, 1024  ;;  %p5510_p0 = scmp.lt.s32.totalorder %s6618_s27, %s5508_s29 }
  0x28   : > { %p5505_p12 = pnand %p5504_p11, %p5753_p5  ;;  %p5511_p1 = scmp.lt.s32.totalorder %s5509_s26, %s5503_s0 }
  0x29   : > { %5056 = vmatpush3.bf16.msra.mxu1 %v5053_v8  ;;  %v712_v8 = vlaneseq }
  0x2a   : > { %5058 = vmatprep.subr.bf16.mxu1 %v5057_v55  ;;  %p5506_p13 = pneg %p5505_p12  ;;  %p5512_p2 = por %p5511_p1, %p5510_p0 }
  0x2c   : > { %4628 = vmatmul.mubr.msk.f32.vlgmr.msra.gmra.mrb[0].mxu1 %vm550_vm0, %v532_v10  ;;  %p5513_p3 = pnand %p5512_p2, %p5506_p13 }
  0x2d   : > { %4630 = vmatprep.mubr.msk.f32.mxu1 %vm550_vm0, %v533_v11  ;;  %5060 = vmatpush3.bf16.msra.mxu1 %v5057_v55  ;;  %v4195_v55 = vld [vmem:[%s6756_s5 + $0x78] sm:$0xff] }
  0x2e   : > { %5062 = vmatprep.subr.bf16.mxu1 %v5061_v61  ;;  %v5085_v56 = vpack.c.bf16 %v4195_v55, %v4194_v54 }
  0x30   : > { %4631 = vmatmul.mubr.msk.f32.gmra.mrb[2].mxu1 %vm550_vm0, %v534_v12 }
  0x31   : > { %5064 = vmatpush3.bf16.msra.mxu1 %v5061_v61  ;;  %v4211_v61 = vld [vmem:[%s6756_s5 + $0xb8] sm:$0xff] }
  0x32   : > { %5066 = vmatprep.subr.bf16.mxu1 %v5065_v3  ;;  %v5101_v62 = vpack.c.bf16 %v4211_v61, %v4210_v60 }
  0xff   : > { %v4629_v15 = vpop.f32.mrb[0].mxu1 }
 0x100   : > { %v635_v16 = vadd.f32 %v4629_v15, %v4167_v13  ;;  %v629_v18 = vpop.f32.mrb[1].mxu1 }
 0x101   : > { %v630_v19 = vadd.f32 %v4167_v13, %v629_v18 }
 0x102   : > { %v5803_v20 = vadd.f32 %v635_v16, %v536_v14 }
 0x103   : > { %v5805_v21 = vadd.f32 %v630_v19, %v535_v17  ;;  %v4632_v22 = vpop.f32.mrb[2].mxu1 }
 0x104   : > { %654 = vst.msk [vmem:[%s5808_s24 + $0x8] sm:$0xff] %vm652_vm1, %v5803_v20  ;;  %v645_v23 = vadd.f32 %v4632_v22, %v4167_v13  ;;  %v639_v24 = vpop.f32.mrb[3].mxu1  ;;  %v662_v30 = vsel %vm652_vm1, %v5803_v20, 0.0  ;;  %v5902_v22 = vld [vmem:[%s6759_s8] sm:$0x3f] }
 0x105   : > { %653 = vst.msk [vmem:[%s5808_s24] sm:$0xff] %vm652_vm1, %v5805_v21  ;;  %v640_v25 = vadd.f32 %v4167_v13, %v639_v24  ;;  %v659_v26 = vsel %vm652_vm1, %v5805_v21, 0.0 }
 0x106   : > { %v5818_v27 = vadd.f32 %v645_v23, %v536_v14  ;;  %660 = vadd.xlane.f32.xlu0 %v659_v26  ;;  %v5894_v14 = vshrl.u32 %v712_v8, 7 }
 0x107   : > { %v5820_v28 = vadd.f32 %v640_v25, %v535_v17 }
 0x108   : > { %656 = vst.msk [vmem:[%s5808_s24 + $0x18] sm:$0xff] %vm652_vm1, %v5818_v27  ;;  %v668_v31 = vsel %vm652_vm1, %v5818_v27, 0.0  ;;  %v5897_v19 = vsub.s32 0, %v5894_v14  ;;  %v5905_v24 = vsub.s32 1, %v5894_v14  ;;  %v5984_v63 = vsub.s32 2, %v5894_v14 }
 0x109   : > { %655 = vst.msk [vmem:[%s5808_s24 + $0x10] sm:$0xff] %vm652_vm1, %v5820_v28  ;;  %v665_v29 = vsel %vm652_vm1, %v5820_v28, 0.0 }
 0x10a   : > { %666 = vadd.xlane.f32.xlu1 %v665_v29  ;;  %663 = vadd.xlane.f32.xlu0 %v662_v30  ;;  %v715_v25 = vrot.slane %v5902_v22, %v5897_v19  ;;  %v723_v29 = vrot.slane %v5902_v22, %v5905_v24  ;;  %v935_v1 = vrot.slane %v658_v0, %v5984_v63 }
 0x10b   : > { %v735_v2 = vrot.slane %v658_v0, %v5897_v19 }
 0x10e   : > { %669 = vadd.xlane.f32.xlu1 %v668_v31 }
 0x193   : > { %v661_v32 = vpop.xlane.xlu0 %660 }
 0x194   : > { %v672_v33 = vmul.f32 0.03125, %v661_v32 }
 0x196   : > { %v5835_v34 = vsub.f32 %v5805_v21, %v672_v33 }
 0x197   : > { %v667_v35 = vpop.xlane.xlu1 %666  ;;  %v664_v36 = vpop.xlane.xlu0 %663 }
 0x198   : > { %v674_v37 = vmul.f32 0.03125, %v667_v35  ;;  %v673_v38 = vmul.f32 0.03125, %v664_v36  ;;  %v680_v39 = vmul.f32 %v5835_v34, %v5835_v34 }
 0x19a   : > { %v5840_v40 = vsub.f32 %v5820_v28, %v674_v37  ;;  %v5843_v41 = vsub.f32 %v5803_v20, %v673_v38  ;;  %v684_v42 = vsel %vm652_vm1, %v680_v39, 0.0  ;;  %v4178_v38 = vld [vmem:[%s6756_s5 + $0x30] sm:$0xff] }
 0x19b   : > { %v670_v43 = vpop.xlane.xlu1 %669  ;;  %685 = vadd.xlane.f32.xlu0 %v684_v42 }
 0x19c   : > { %v675_v44 = vmul.f32 0.03125, %v670_v43  ;;  %v682_v45 = vmul.f32 %v5840_v40, %v5840_v40  ;;  %v681_v46 = vmul.f32 %v5843_v41, %v5843_v41 }
 0x19e   : > { %v5851_v47 = vsub.f32 %v5818_v27, %v675_v44  ;;  %v690_v48 = vsel %vm652_vm1, %v682_v45, 0.0  ;;  %v687_v49 = vsel %vm652_vm1, %v681_v46, 0.0 }
 0x19f   : > { %691 = vadd.xlane.f32.xlu0 %v690_v48  ;;  %688 = vadd.xlane.f32.xlu1 %v687_v49 }
 0x1a0   : > { %v683_v50 = vmul.f32 %v5851_v47, %v5851_v47 }
 0x1a2   : > { %v693_v51 = vsel %vm652_vm1, %v683_v50, 0.0 }
 0x1a3   : > { %694 = vadd.xlane.f32.xlu1 %v693_v51  ;;  %v4192_v51 = vld [vmem:[%s6756_s5 + $0x60] sm:$0xff] }
 0x1a4   : > { %v5081_v53 = vpack.c.bf16 %v4193_v52, %v4192_v51  ;;  %v6020_v51 = vsub.s32 5, %v5894_v14 }
 0x1a6   : > { %v1217_v58 = vrot.slane %v658_v0, %v6020_v51 }
 0x228   : > { %v686_v6 = vpop.xlane.xlu0 %685 }
 0x229   : > { %v696_v7 = vmul.f32 0.03125, %v686_v6 }
 0x22b   : > { %v700_v9 = vadd.f32 1e-06, %v696_v7 }
 0x22c   : > { %v689_v10 = vpop.xlane.xlu1 %688  ;;  %v692_v11 = vpop.xlane.xlu0 %691 }
 0x22d   : > { %5381 = vrsqrt.f32 %v700_v9  ;;  %v697_v12 = vmul.f32 0.03125, %v689_v10  ;;  %v698_v13 = vmul.f32 0.03125, %v692_v11  ;;  %v5992_v10 = vsub.s32 4, %v5894_v14 }
 0x22f   : > { %v701_v15 = vadd.f32 1e-06, %v697_v12  ;;  %v702_v16 = vadd.f32 1e-06, %v698_v13 }
 0x230   : > { %v695_v17 = vpop.xlane.xlu1 %694 }
 0x231   : > { %5383 = vrsqrt.f32 %v701_v15  ;;  %v699_v18 = vmul.f32 0.03125, %v695_v17 }
 0x232   : > { %5385 = vrsqrt.f32 %v702_v16 }
 0x233   : > { %v703_v23 = vadd.f32 1e-06, %v699_v18 }
 0x235   : > { %5387 = vrsqrt.f32 %v703_v23 }
 0x237   : > { %v5382_v26 = vpop.eup %5381 }
 0x238   : > { %v708_v30 = vmul.f32 %v5382_v26, %v5835_v34  ;;  %v4179_v34 = vld [vmem:[%s6756_s5 + $0x38] sm:$0xff]  ;;  %v1123_v26 = vrot.slane %v658_v0, %v5992_v10 }
 0x239   : > { %v5069_v48 = vpack.c.bf16 %v4179_v34, %v4178_v38 }
 0x23a   : > { %v716_v31 = vmul.f32 %v715_v25, %v708_v30 }
 0x23b   : > { %v5384_v32 = vpop.eup %5383 }
 0x23c   : > { %v5386_v33 = vpop.eup %5385  ;;  %v5912_v35 = vadd.f32 %v723_v29, %v716_v31  ;;  %v709_v36 = vmul.f32 %v5384_v32, %v5843_v41  ;;  %v4202_v41 = vld [vmem:[%s6756_s5 + $0x90] sm:$0xff] }
 0x23d   : > { %v710_v37 = vmul.f32 %v5386_v33, %v5840_v40  ;;  %v4203_v40 = vld [vmem:[%s6756_s5 + $0x98] sm:$0xff]  ;;  %v6010_v33 = vsub.s32 3, %v5894_v14 }
 0x23e   : > { %v717_v39 = vmul.f32 %v715_v25, %v709_v36  ;;  %4641 = vmatprep.mubr.msk.f32.mxu1 %vm652_vm1, %v5912_v35  ;;  %4669 = vmatprep.mubr.msk.f32.mxu0 %vm652_vm1, %v5912_v35  ;;  %v5093_v49 = vpack.c.bf16 %v4203_v40, %v4202_v41 }
 0x23f   : > { %v5388_v42 = vpop.eup %5387  ;;  %v718_v43 = vmul.f32 %v715_v25, %v710_v37 }
 0x240   : > { %v725_v44 = vadd.f32 %v723_v29, %v717_v39  ;;  %v711_v45 = vmul.f32 %v5388_v42, %v5851_v47  ;;  %v1029_v42 = vrot.slane %v658_v0, %v6010_v33 }
 0x241   : > { %v726_v46 = vadd.f32 %v723_v29, %v718_v43 }
 0x242   : > { %v719_v50 = vmul.f32 %v715_v25, %v711_v45  ;;  %4642 = vmatmul.mubr.msk.f32.vlgmr.msra.gmra.mrb[4].mxu1 %vm652_vm1, %v725_v44  ;;  %4670 = vmatmul.mubr.msk.f32.vlgmr.msra.gmra.mrb[0].mxu0 %vm652_vm1, %v725_v44  ;;  %v6004_v25 = vrot.slane %v658_v0, %v5905_v24 }
 0x243   : > { %5068 = vmatpush3.bf16.msra.mxu1 %v5065_v3  ;;  %4644 = vmatprep.mubr.msk.f32.mxu1 %vm652_vm1, %v726_v46 }
 0x244   : > { %v727_v47 = vadd.f32 %v723_v29, %v719_v50  ;;  %4672 = vmatprep.mubr.msk.f32.mxu0 %vm652_vm1, %v726_v46  ;;  %5092 = vmatpush3.bf16.msra.mxu0 %v5089_v5 }
 0x245   : > { %5070 = vmatprep.subr.bf16.mxu1 %v5069_v48  ;;  %5094 = vmatprep.subr.bf16.mxu0 %v5093_v49 }
 0x246   : > { %4645 = vmatmul.mubr.msk.f32.gmra.mrb[6].mxu1 %vm652_vm1, %v727_v47  ;;  %4673 = vmatmul.mubr.msk.f32.gmra.mrb[2].mxu0 %vm652_vm1, %v727_v47 }
 0x247   : > { %5072 = vmatpush3.bf16.msra.mxu1 %v5069_v48  ;;  %4655 = vmatprep.mubr.msk.f32.mxu1 %vm652_vm1, %v5912_v35 }
 0x248   : > { %5096 = vmatpush3.bf16.msra.mxu0 %v5093_v49  ;;  %4697 = vmatprep.mubr.msk.f32.mxu0 %vm652_vm1, %v5912_v35 }
 0x249   : > { %5082 = vmatprep.subr.bf16.mxu1 %v5081_v53 }
 0x24a   : > { %4656 = vmatmul.mubr.msk.f32.vlgmr.msra.gmra.mrb[8].mxu1 %vm652_vm1, %v725_v44 }
 0x24b   : > { %5084 = vmatpush3.bf16.msra.mxu1 %v5081_v53  ;;  %4698 = vmatmul.mubr.msk.f32.vlgmr.msra.gmra.mrb[4].mxu0 %vm652_vm1, %v725_v44 }
 0x24c   : > { %4658 = vmatprep.mubr.msk.f32.mxu1 %vm652_vm1, %v726_v46  ;;  %4700 = vmatprep.mubr.msk.f32.mxu0 %vm652_vm1, %v726_v46 }
 0x24d   : > { %5086 = vmatprep.subr.bf16.mxu1 %v5085_v56 }
 0x24e   : > { %4659 = vmatmul.mubr.msk.f32.gmra.mrb[10].mxu1 %vm652_vm1, %v727_v47 }
 0x24f   : > { %5088 = vmatpush3.bf16.msra.mxu1 %v5085_v56  ;;  %4701 = vmatmul.mubr.msk.f32.gmra.mrb[6].mxu0 %vm652_vm1, %v727_v47 }
 0x250   : > { %4683 = vmatprep.mubr.msk.f32.mxu1 %vm652_vm1, %v5912_v35  ;;  %5098 = vmatprep.subr.bf16.mxu1 %v5097_v59 }
 0x252   : > { %4684 = vmatmul.mubr.msk.f32.vlgmr.msra.gmra.mrb[12].mxu1 %vm652_vm1, %v725_v44 }
 0x253   : > { %4686 = vmatprep.mubr.msk.f32.mxu1 %vm652_vm1, %v726_v46  ;;  %5100 = vmatpush3.bf16.msra.mxu1 %v5097_v59 }
 0x254   : > { %5102 = vmatprep.subr.bf16.mxu1 %v5101_v62 }
 0x256   : > { %4687 = vmatmul.mubr.msk.f32.gmra.mrb[14].mxu1 %vm652_vm1, %v727_v47 }
 0x257   : > { %5104 = vmatpush3.bf16.msra.mxu1 %v5101_v62  ;;  %4711 = vmatprep.mubr.msk.f32.mxu1 %vm652_vm1, %v5912_v35 }
 0x25a   : > { %4712 = vmatmul.mubr.msk.f32.vlgmr.msra.gmra.mrb[16].mxu1 %vm652_vm1, %v725_v44 }
 0x25b   : > { %4714 = vmatprep.mubr.msk.f32.mxu1 %vm652_vm1, %v726_v46 }
 0x25e   : > { %4715 = vmatmul.mubr.msk.f32.gmra.mrb[18].mxu1 %vm652_vm1, %v727_v47 }
 0x315   : > { %v4643_v3 = vpop.f32.mrb[4].mxu1  ;;  %v4671_v4 = vpop.f32.mrb[0].mxu0 }
 0x316   : > { %v1008_v5 = vadd.f32 %v4671_v4, %v935_v1  ;;  %v814_v6 = vpop.f32.mrb[5].mxu1  ;;  %v1002_v7 = vpop.f32.mrb[1].mxu0  ;;  %v820_v47 = vadd.f32 %v4643_v3, %v735_v2 }
 0x317   : > { %v815_v8 = vadd.f32 %v814_v6, %v735_v2  ;;  %v1003_v9 = vadd.f32 %v1002_v7, %v935_v1 }
 0x319   : > { %v5105_v12 = vpack.c.bf16 %v1008_v5, %v1003_v9  ;;  %v4646_v13 = vpop.f32.mrb[6].mxu1  ;;  %v4674_v15 = vpop.f32.mrb[2].mxu0  ;;  %4725 = vmatprep.mubr.msk.f32.mxu0 %vm1303_vm2, %v815_v8 }
 0x31a   : > { %v1018_v16 = vadd.f32 %v4674_v15, %v935_v1  ;;  %v824_v17 = vpop.f32.mrb[7].mxu1  ;;  %v1012_v18 = vpop.f32.mrb[3].mxu0  ;;  %v830_v14 = vadd.f32 %v4646_v13, %v735_v2 }
 0x31b   : > { %v1013_v23 = vadd.f32 %v1012_v18, %v935_v1  ;;  %5107 = vmatprep.subr.msk.bf16.mxu0 %vm5996_vm3, %v5105_v12  ;;  %v825_v55 = vadd.f32 %v824_v17, %v735_v2 }
 0x31c   : > { %5110 = vmatpush3.bf16.xpose.msk.msra.mxu0 %vm5996_vm3, %v5105_v12 }
 0x31d   : > { %v5111_v29 = vpack.c.bf16 %v1018_v16, %v1013_v23  ;;  %v4657_v30 = vpop.f32.mrb[8].mxu1 }
 0x31e   : > { %v4699_v31 = vpop.f32.mrb[4].mxu0  ;;  %v908_v32 = vpop.f32.mrb[9].mxu1  ;;  %v914_v8 = vadd.f32 %v4657_v30, %v6004_v25 }
 0x31f   : > { %v1196_v35 = vadd.f32 %v4699_v31, %v1123_v26  ;;  %v909_v36 = vadd.f32 %v908_v32, %v6004_v25  ;;  %v1190_v37 = vpop.f32.mrb[5].mxu0  ;;  %5113 = vmatprep.subr.msk.bf16.mxu0 %vm5996_vm3, %v5111_v29 }
 0x320   : > { %v1191_v38 = vadd.f32 %v1190_v37, %v1123_v26 }
 0x321   : > { %v4660_v39 = vpop.f32.mrb[10].mxu1  ;;  %4739 = vmatprep.mubr.msk.f32.mxu1 %vm1303_vm2, %v909_v36 }
 0x322   : > { %v5129_v34 = vpack.c.bf16 %v1196_v35, %v1191_v38  ;;  %v4702_v41 = vpop.f32.mrb[6].mxu0  ;;  %v918_v40 = vpop.f32.mrb[11].mxu1  ;;  %v924_v12 = vadd.f32 %v4660_v39, %v6004_v25 }
 0x323   : > { %v1206_v43 = vadd.f32 %v4702_v41, %v1123_v26  ;;  %v1200_v44 = vpop.f32.mrb[7].mxu0  ;;  %v919_v9 = vadd.f32 %v918_v40, %v6004_v25 }
 0x324   : > { %v1201_v45 = vadd.f32 %v1200_v44, %v1123_v26  ;;  %5116 = vmatpush3.bf16.xpose.msk.msra.mxu0 %vm5996_vm3, %v5111_v29 }
 0x325   : > { %v4685_v46 = vpop.f32.mrb[12].mxu1  ;;  %5130 = vmatprep.subr.bf16.mxu0 %v5129_v34 }
 0x326   : > { %v5133_v48 = vpack.c.bf16 %v1206_v43, %v1201_v45  ;;  %v1102_v49 = vadd.f32 %v4685_v46, %v1029_v42  ;;  %v1096_v50 = vpop.f32.mrb[13].mxu1 }
 0x327   : > { %v1097_v52 = vadd.f32 %v1096_v50, %v1029_v42 }
 0x329   : > { %v5117_v53 = vpack.c.bf16 %v1102_v49, %v1097_v52  ;;  %v4688_v54 = vpop.f32.mrb[14].mxu1 }
 0x32a   : > { %v1112_v56 = vadd.f32 %v4688_v54, %v1029_v42  ;;  %v1106_v57 = vpop.f32.mrb[15].mxu1 }
 0x32b   : > { %v1107_v59 = vadd.f32 %v1106_v57, %v1029_v42  ;;  %4726 = vmatmul.mubr.msk.f32.vlgmr.msra.gmra.mrb[8].mxu0 %vm1303_vm2, %v820_v47  ;;  %5119 = vmatprep.subr.msk.bf16.mxu1 %vm5996_vm3, %v5117_v53 }
 0x32c   : > { %4728 = vmatprep.mubr.msk.f32.mxu0 %vm1303_vm2, %v825_v55  ;;  %5122 = vmatpush3.bf16.xpose.msk.msra.mxu1 %vm5996_vm3, %v5117_v53 }
 0x32d   : > { %v5123_v60 = vpack.c.bf16 %v1112_v56, %v1107_v59  ;;  %5132 = vmatpush3.bf16.msra.mxu0 %v5129_v34  ;;  %v4713_v61 = vpop.f32.mrb[16].mxu1 }
 0x32e   : > { %v1290_v62 = vadd.f32 %v4713_v61, %v1217_v58  ;;  %5134 = vmatprep.subr.bf16.mxu0 %v5133_v48  ;;  %v1284_v1 = vpop.f32.mrb[17].mxu1 }
 0x32f   : > { %v1285_v3 = vadd.f32 %v1284_v1, %v1217_v58  ;;  %4729 = vmatmul.mubr.msk.f32.gmra.mrb[10].mxu0 %vm1303_vm2, %v830_v14  ;;  %5125 = vmatprep.subr.msk.bf16.mxu1 %vm5996_vm3, %v5123_v60 }
 0x331   : > { %v5137_v0 = vpack.c.bf16 %v1290_v62, %v1285_v3  ;;  %5136 = vmatpush3.bf16.msra.mxu0 %v5133_v48  ;;  %v4716_v4 = vpop.f32.mrb[18].mxu1 }
 0x332   : > { %v1300_v5 = vadd.f32 %v4716_v4, %v1217_v58  ;;  %v1294_v6 = vpop.f32.mrb[19].mxu1 }
 0x333   : > { %v1295_v7 = vadd.f32 %v1294_v6, %v1217_v58 }
 0x334   : > { %5128 = vmatpush3.bf16.xpose.msk.msra.mxu1 %vm5996_vm3, %v5123_v60 }
 0x335   : > { %v5141_v2 = vpack.c.bf16 %v1300_v5, %v1295_v7  ;;  %5138 = vmatprep.subr.bf16.mxu1 %v5137_v0 }
 0x33b   : > { %4740 = vmatmul.mubr.msk.f32.vlgmr.msra.gmra.mrb[20].mxu1 %vm1303_vm2, %v914_v8 }
 0x33c   : > { %4742 = vmatprep.mubr.msk.f32.mxu1 %vm1303_vm2, %v919_v9  ;;  %5140 = vmatpush3.bf16.msra.mxu1 %v5137_v0 }
 0x33d   : > { %5142 = vmatprep.subr.bf16.mxu1 %v5141_v2 }
 0x33f   : > { %4743 = vmatmul.mubr.msk.f32.gmra.mrb[22].mxu1 %vm1303_vm2, %v924_v12 }
 0x340   : > { %5144 = vmatpush3.bf16.msra.mxu1 %v5141_v2 }
 0x3fe   : > { %v4727_v13 = vpop.f32.mrb[8].mxu0 }
 0x3ff   : > { %v1394_v15 = vpop.f32.mrb[9].mxu0  ;;  %v1523_v37 = vmul.f32 0.25, %v4727_v13 }
 0x400   : > { %v1522_v39 = vmul.f32 0.25, %v1394_v15 }
 0x401   : > { %v1533_v40 = vsel %vm652_vm1, %v1523_v37, -inf }
 0x402   : > { %v4730_v16 = vpop.f32.mrb[10].mxu0  ;;  %v1530_v43 = vsel %vm652_vm1, %v1522_v39, -inf }
 0x403   : > { %v1404_v17 = vpop.f32.mrb[11].mxu0  ;;  %v1525_v41 = vmul.f32 0.25, %v4730_v16 }
 0x404   : > { %v1524_v42 = vmul.f32 0.25, %v1404_v17 }
 0x405   : > { %v1539_v44 = vsel %vm652_vm1, %v1525_v41, -inf }
 0x406   : > { %v1536_v45 = vsel %vm652_vm1, %v1524_v42, -inf }
 0x40e   : > { %v4741_v18 = vpop.f32.mrb[20].mxu1 }
 0x40f   : > { %v1527_v23 = vmul.f32 0.25, %v4741_v18  ;;  %v1503_v26 = vpop.f32.mrb[21].mxu1 }
 0x410   : > { %v1526_v29 = vmul.f32 0.25, %v1503_v26 }
 0x411   : > { %v1545_v30 = vsel %vm652_vm1, %v1527_v23, -inf }
 0x412   : > { %1546 = vmax.xlane.f32.xlu1 %v1545_v30  ;;  %v4744_v31 = vpop.f32.mrb[22].mxu1  ;;  %v1542_v32 = vsel %vm652_vm1, %v1526_v29, -inf }
 0x413   : > { %v1529_v35 = vmul.f32 0.25, %v4744_v31  ;;  %1543 = vmax.xlane.f32.xlu0 %v1542_v32  ;;  %v1513_v25 = vpop.f32.mrb[23].mxu1 }
 0x414   : > { %v1528_v36 = vmul.f32 0.25, %v1513_v25 }
 0x415   : > { %v1551_v38 = vsel %vm652_vm1, %v1529_v35, -inf }
 0x416   : > { %1552 = vmax.xlane.f32.xlu1 %v1551_v38  ;;  %v1548_v34 = vsel %vm652_vm1, %v1528_v36, -inf }
 0x417   : > { %1549 = vmax.xlane.f32.xlu0 %v1548_v34 }
 0x41a   : > { %1534 = vmax.xlane.f32.xlu1 %v1533_v40 }
 0x41b   : > { %1531 = vmax.xlane.f32.xlu0 %v1530_v43 }
 0x41e   : > { %1540 = vmax.xlane.f32.xlu1 %v1539_v44 }
 0x41f   : > { %1537 = vmax.xlane.f32.xlu0 %v1536_v45 }
 0x49f   : > { %v1547_v46 = vpop.xlane.xlu1 %1546 }
 0x4a0   : > { %v1559_v48 = vsub.f32 %v1527_v23, %v1547_v46  ;;  %v1544_v49 = vpop.xlane.xlu0 %1543 }
 0x4a1   : > { %v1558_v50 = vsub.f32 %v1526_v29, %v1544_v49 }
 0x4a2   : > { %v1572_v52 = vmul.f32 1.442695, %v1559_v48 }
 0x4a3   : > { %v1570_v47 = vmul.f32 1.442695, %v1558_v50  ;;  %v1553_v53 = vpop.xlane.xlu1 %1552 }
 0x4a4   : > { %5389 = vpow2.f32 %v1572_v52  ;;  %v1561_v54 = vsub.f32 %v1529_v35, %v1553_v53  ;;  %v1550_v55 = vpop.xlane.xlu0 %1549 }
 0x4a5   : > { %5391 = vpow2.f32 %v1570_v47  ;;  %v1560_v56 = vsub.f32 %v1528_v36, %v1550_v55 }
 0x4a6   : > { %v1576_v57 = vmul.f32 1.442695, %v1561_v54 }
 0x4a7   : > { %v1574_v58 = vmul.f32 1.442695, %v1560_v56  ;;  %v1535_v59 = vpop.xlane.xlu1 %1534 }
 0x4a8   : > { %5393 = vpow2.f32 %v1576_v57  ;;  %v1555_v14 = vsub.f32 %v1523_v37, %v1535_v59  ;;  %v1532_v60 = vpop.xlane.xlu0 %1531  ;;  %v1832_v59 = vld [vmem:[%s6758_s7] sm:$0xff] }
 0x4a9   : > { %5395 = vpow2.f32 %v1574_v58  ;;  %v1554_v61 = vsub.f32 %v1522_v39, %v1532_v60 }
 0x4aa   : > { %v1564_v62 = vmul.f32 1.442695, %v1555_v14  ;;  %v1833_v14 = vld [vmem:[%s6758_s7 + $0x8] sm:$0xff] }
 0x4ab   : > { %v1562_v1 = vmul.f32 1.442695, %v1554_v61  ;;  %v1541_v3 = vpop.xlane.xlu1 %1540  ;;  %v5145_v60 = vpack.c.bf16 %v1833_v14, %v1832_v59  ;;  %v1834_v61 = vld [vmem:[%s6758_s7 + $0x10] sm:$0xff] }
 0x4ac   : > { %5397 = vpow2.f32 %v1564_v62  ;;  %v1557_v0 = vsub.f32 %v1525_v41, %v1541_v3  ;;  %v1538_v4 = vpop.xlane.xlu0 %1537  ;;  %v1835_v62 = vld [vmem:[%s6758_s7 + $0x18] sm:$0xff] }
 0x4ad   : > { %5399 = vpow2.f32 %v1562_v1  ;;  %v1556_v5 = vsub.f32 %v1524_v42, %v1538_v4  ;;  %5146 = vmatprep.subr.bf16.mxu0 %v5145_v60  ;;  %v5149_v1 = vpack.c.bf16 %v1835_v62, %v1834_v61  ;;  %v2013_v61 = vld [vmem:[%s6760_s9] sm:$0xff]  ;;  %v2014_v62 = vld [vmem:[%s6760_s9 + $0x8] sm:$0xff] }
 0x4ae   : > { %v5390_v6 = vpop.eup %5389  ;;  %v1568_v7 = vmul.f32 1.442695, %v1557_v0 }
 0x4af   : > { %v5392_v2 = vpop.eup %5391  ;;  %v1566_v8 = vmul.f32 1.442695, %v1556_v5  ;;  %v1593_v9 = vsel %vm652_vm1, %v5390_v6, 0.0 }
 0x4b0   : > { %5401 = vpow2.f32 %v1568_v7  ;;  %1594 = vadd.xlane.f32.xlu1 %v1593_v9  ;;  %v1590_v12 = vsel %vm652_vm1, %v5392_v2, 0.0 }
 0x4b1   : > { %5403 = vpow2.f32 %v1566_v8  ;;  %1591 = vadd.xlane.f32.xlu0 %v1590_v12 }
 0x4b2   : > { %v5394_v13 = vpop.eup %5393 }
 0x4b3   : > { %v5396_v15 = vpop.eup %5395  ;;  %v1599_v16 = vsel %vm652_vm1, %v5394_v13, 0.0 }
 0x4b4   : > { %1600 = vadd.xlane.f32.xlu1 %v1599_v16  ;;  %v1596_v17 = vsel %vm652_vm1, %v5396_v15, 0.0 }
 0x4b5   : > { %1597 = vadd.xlane.f32.xlu0 %v1596_v17 }
 0x4b6   : > { %v5398_v18 = vpop.eup %5397 }
 0x4b7   : > { %v5400_v23 = vpop.eup %5399  ;;  %v1581_v26 = vsel %vm652_vm1, %v5398_v18, 0.0 }
 0x4b8   : > { %1582 = vadd.xlane.f32.xlu1 %v1581_v26  ;;  %v1578_v29 = vsel %vm652_vm1, %v5400_v23, 0.0  ;;  %v1940_v26 = vrot.slane %v5902_v22, %v5984_v63 }
 0x4b9   : > { %1579 = vadd.xlane.f32.xlu0 %v1578_v29 }
 0x4ba   : > { %v5402_v30 = vpop.eup %5401 }
 0x4bb   : > { %v5404_v31 = vpop.eup %5403  ;;  %v1587_v32 = vsel %vm652_vm1, %v5402_v30, 0.0 }
 0x4bc   : > { %1588 = vadd.xlane.f32.xlu1 %v1587_v32  ;;  %v1584_v35 = vsel %vm652_vm1, %v5404_v31, 0.0 }
 0x4bd   : > { %1585 = vadd.xlane.f32.xlu0 %v1584_v35 }
 0x53d   : > { %v1595_v25 = vpop.xlane.xlu1 %1594 }
 0x53e   : > { %5405 = vrcp.f32 %v1595_v25  ;;  %v1592_v36 = vpop.xlane.xlu0 %1591 }
 0x53f   : > { %5407 = vrcp.f32 %v1592_v36 }
 0x541   : > { %v1601_v37 = vpop.xlane.xlu1 %1600 }
 0x542   : > { %5409 = vrcp.f32 %v1601_v37  ;;  %v1598_v38 = vpop.xlane.xlu0 %1597 }
 0x543   : > { %5411 = vrcp.f32 %v1598_v38 }
 0x545   : > { %v1583_v39 = vpop.xlane.xlu1 %1582 }
 0x546   : > { %5413 = vrcp.f32 %v1583_v39  ;;  %v1580_v34 = vpop.xlane.xlu0 %1579 }
 0x547   : > { %5415 = vrcp.f32 %v1580_v34 }
 0x548   : > { %v5406_v41 = vpop.eup %5405 }
 0x549   : > { %v5408_v40 = vpop.eup %5407  ;;  %v1589_v42 = vpop.xlane.xlu1 %1588  ;;  %v1615_v45 = vmul.f32 %v5406_v41, %v5390_v6 }
 0x54a   : > { %5417 = vrcp.f32 %v1589_v42  ;;  %v1586_v43 = vpop.xlane.xlu0 %1585  ;;  %v1614_v44 = vmul.f32 %v5408_v40, %v5392_v2 }
 0x54b   : > { %5419 = vrcp.f32 %v1586_v43 }
 0x54c   : > { %v5410_v46 = vpop.eup %5409  ;;  %4767 = vmatprep.mubr.msk.f32.mxu1 %vm652_vm1, %v1614_v44 }
 0x54d   : > { %v5412_v48 = vpop.eup %5411  ;;  %4768 = vmatmul.mubr.msk.f32.vlgmr.msra.gmra.mrb[24].mxu1 %vm652_vm1, %v1615_v45  ;;  %v1617_v50 = vmul.f32 %v5410_v46, %v5394_v13 }
 0x54e   : > { %v1616_v49 = vmul.f32 %v5412_v48, %v5396_v15 }
 0x550   : > { %v5414_v52 = vpop.eup %5413  ;;  %4770 = vmatprep.mubr.msk.f32.mxu1 %vm652_vm1, %v1616_v49 }
 0x551   : > { %v5416_v47 = vpop.eup %5415  ;;  %4771 = vmatmul.mubr.msk.f32.gmra.mrb[26].mxu1 %vm652_vm1, %v1617_v50  ;;  %v1611_v54 = vmul.f32 %v5414_v52, %v5398_v18 }
 0x552   : > { %v1610_v53 = vmul.f32 %v5416_v47, %v5400_v23 }
 0x554   : > { %v5418_v55 = vpop.eup %5417  ;;  %4753 = vmatprep.mubr.msk.f32.mxu0 %vm652_vm1, %v1610_v53 }
 0x555   : > { %v5420_v56 = vpop.eup %5419  ;;  %4754 = vmatmul.mubr.msk.f32.vlgmr.msra.gmra.mrb[12].mxu0 %vm652_vm1, %v1611_v54  ;;  %v1613_v58 = vmul.f32 %v5418_v55, %v5402_v30 }
 0x556   : > { %v1612_v57 = vmul.f32 %v5420_v56, %v5404_v31  ;;  %5148 = vmatpush3.bf16.msra.mxu0 %v5145_v60 }
 0x557   : > { %5150 = vmatprep.subr.bf16.mxu0 %v5149_v1 }
 0x558   : > { %4756 = vmatprep.mubr.msk.f32.mxu0 %vm652_vm1, %v1612_v57 }
 0x559   : > { %4757 = vmatmul.mubr.msk.f32.gmra.mrb[14].mxu0 %vm652_vm1, %v1613_v58 }
 0x55a   : > { %5152 = vmatpush3.bf16.msra.mxu0 %v5149_v1  ;;  %v5153_v1 = vpack.c.bf16 %v2014_v62, %v2013_v61  ;;  %v2169_v61 = vld [vmem:[%s6762_s11 + $0x60] sm:$0xff] }
 0x55c   : > { %5154 = vmatprep.subr.bf16.mxu1 %v5153_v1 }
 0x55d   : > { %5156 = vmatpush3.bf16.msra.mxu1 %v5153_v1  ;;  %v2170_v1 = vld [vmem:[%s6762_s11 + $0x68] sm:$0xff] }
 0x620   : > { %v4769_v3 = vpop.f32.mrb[24].mxu1 }
 0x621   : > { %1818 = vrot.lane.b32.xlu1 %v4769_v3, %s6773_s23  ;;  %v1793_v0 = vpop.f32.mrb[25].mxu1  ;;  %v2015_v3 = vld [vmem:[%s6760_s9 + $0x10] sm:$0xff] }
 0x622   : > { %1816 = vrot.lane.b32.xlu0 %v1793_v0, %s6773_s23  ;;  %v2016_v0 = vld [vmem:[%s6760_s9 + $0x18] sm:$0xff] }
 0x624   : > { %v4772_v4 = vpop.f32.mrb[26].mxu1 }
 0x625   : > { %v1803_v5 = vpop.f32.mrb[27].mxu1 }
 0x626   : > { %1820 = vrot.lane.b32.xlu1 %v1803_v5, %s6773_s23  ;;  %v2157_v5 = vld [vmem:[%s6762_s11] sm:$0xff] }
 0x628   : > { %v4755_v6 = vpop.f32.mrb[12].mxu0 }
 0x629   : > { %v1696_v7 = vpop.f32.mrb[13].mxu0 }
 0x62a   : > { %1822 = vrot.lane.b32.xlu1 %v4772_v4, %s6773_s23  ;;  %v5157_v4 = vpack.c.bf16 %v2016_v0, %v2015_v3  ;;  %v5185_v3 = vpack.c.bf16 %v2170_v1, %v2169_v61  ;;  %v2171_v0 = vld [vmem:[%s6762_s11 + $0x70] sm:$0xff]  ;;  %s6793_s23 = smov 16  }
 0x62c   : > { %v4758_v2 = vpop.f32.mrb[14].mxu0  ;;  %5158 = vmatprep.subr.bf16.mxu1 %v5157_v4 }
 0x62d   : > { %v1706_v8 = vpop.f32.mrb[15].mxu0  ;;  %5160 = vmatpush3.bf16.msra.mxu1 %v5157_v4  ;;  %v2172_v4 = vld [vmem:[%s6762_s11 + $0x78] sm:$0xff] }
 0x693   : > { %v1819_v9 = vpop.permute.xlu1 %1818 }
 0x694   : > { %v1817_v12 = vpop.permute.xlu0 %1816  ;;  %v1829_v15 = vsel %vm1303_vm2, %v4755_v6, %v1819_v9  ;;  %v2158_v6 = vld [vmem:[%s6762_s11 + $0x8] sm:$0xff] }
 0x695   : > { %v1828_v13 = vsel %vm1303_vm2, %v1696_v7, %v1817_v12  ;;  %v5161_v7 = vpack.c.bf16 %v2158_v6, %v2157_v5  ;;  %v5189_v5 = vpack.c.bf16 %v2172_v4, %v2171_v0  ;;  %v4244_v6 = vld [vmem:[%s6761_s10] ss:$0 sm:$0xff] }
 0x696   : > { %4781 = vmatprep.mubr.msk.f32.mxu0 %vm652_vm1, %v1828_v13 }
 0x697   : > { %4782 = vmatmul.mubr.msk.f32.vlgmr.msra.gmra.mrb[16].mxu0 %vm652_vm1, %v1829_v15  ;;  %5162 = vmatprep.subr.bf16.mxu0 %v5161_v7 }
 0x698   : > { %v1821_v16 = vpop.permute.xlu1 %1820  ;;  %5164 = vmatpush3.bf16.msra.mxu0 %v5161_v7 }
 0x699   : > { %v1830_v17 = vsel %vm1303_vm2, %v1706_v8, %v1821_v16 }
 0x69a   : > { %4784 = vmatprep.mubr.msk.f32.mxu0 %vm652_vm1, %v1830_v17 }
 0x69c   : > { %v1823_v18 = vpop.permute.xlu1 %1822 }
 0x69d   : > { %v1831_v23 = vsel %vm1303_vm2, %v4758_v2, %v1823_v18 }
 0x69e   : > { %4785 = vmatmul.mubr.msk.f32.gmra.mrb[18].mxu0 %vm652_vm1, %v1831_v23 }
 0x76a   : > { %v4783_v29 = vpop.f32.mrb[16].mxu0 }
 0x76b   : > { %v1934_v30 = vadd.f32 %v4783_v29, %v5803_v20  ;;  %v1914_v31 = vpop.f32.mrb[17].mxu0  ;;  %v2000_v29 = vrot.slane %v5902_v22, %v6010_v33 }
 0x76c   : > { %v1933_v32 = vadd.f32 %v1914_v31, %v5805_v21 }
 0x76d   : > { %v6092_v35 = vadd.f32 %v1940_v26, %v1934_v30 }
 0x76e   : > { %v6094_v25 = vadd.f32 %v1940_v26, %v1933_v32 }
 0x76f   : > { %v1948_v36 = vsel %vm652_vm1, %v6092_v35, 0.0 }
 0x770   : > { %1949 = vadd.xlane.f32.xlu1 %v1948_v36  ;;  %v1945_v37 = vsel %vm652_vm1, %v6094_v25, 0.0 }
 0x771   : > { %1946 = vadd.xlane.f32.xlu0 %v1945_v37  ;;  %v4786_v38 = vpop.f32.mrb[18].mxu0 }
 0x772   : > { %v1924_v39 = vpop.f32.mrb[19].mxu0  ;;  %v1936_v34 = vadd.f32 %v4786_v38, %v5818_v27  ;;  %v2008_v38 = vrot.slane %v5902_v22, %v5992_v10  ;;  %v2159_v22 = vld [vmem:[%s6762_s11 + $0x10] sm:$0xff] }
 0x773   : > { %v1935_v20 = vadd.f32 %v1924_v39, %v5820_v28 }
 0x774   : > { %v6104_v21 = vadd.f32 %v1940_v26, %v1936_v34 }
 0x775   : > { %v6102_v41 = vadd.f32 %v1940_v26, %v1935_v20 }
 0x776   : > { %v1954_v42 = vsel %vm652_vm1, %v6104_v21, 0.0 }
 0x777   : > { %v1951_v40 = vsel %vm652_vm1, %v6102_v41, 0.0 }
 0x778   : > { %1952 = vadd.xlane.f32.xlu0 %v1951_v40 }
 0x77c   : > { %1955 = vadd.xlane.f32.xlu0 %v1954_v42 }
 0x7fd   : > { %v1950_v43 = vpop.xlane.xlu1 %1949 }
 0x7fe   : > { %v1958_v44 = vmul.f32 0.03125, %v1950_v43  ;;  %v1947_v45 = vpop.xlane.xlu0 %1946 }
 0x7ff   : > { %v1957_v46 = vmul.f32 0.03125, %v1947_v45 }
 0x800   : > { %v1962_v27 = vsub.f32 %v6092_v35, %v1958_v44 }
 0x801   : > { %v1961_v28 = vsub.f32 %v6094_v25, %v1957_v46 }
 0x802   : > { %v1966_v48 = vmul.f32 %v1962_v27, %v1962_v27 }
 0x803   : > { %v1965_v49 = vmul.f32 %v1961_v28, %v1961_v28 }
 0x804   : > { %v1972_v50 = vsel %vm652_vm1, %v1966_v48, 0.0 }
 0x805   : > { %1973 = vadd.xlane.f32.xlu1 %v1972_v50  ;;  %v1953_v52 = vpop.xlane.xlu0 %1952  ;;  %v1969_v47 = vsel %vm652_vm1, %v1965_v49, 0.0  ;;  %v2160_v49 = vld [vmem:[%s6762_s11 + $0x18] sm:$0xff] }
 0x806   : > { %v1959_v53 = vmul.f32 0.03125, %v1953_v52  ;;  %1970 = vadd.xlane.f32.xlu0 %v1969_v47  ;;  %v5165_v50 = vpack.c.bf16 %v2160_v49, %v2159_v22  ;;  %v2161_v52 = vld [vmem:[%s6762_s11 + $0x20] sm:$0xff]  ;;  %v2162_v47 = vld [vmem:[%s6762_s11 + $0x28] sm:$0xff] }
 0x808   : > { %v1963_v54 = vsub.f32 %v6102_v41, %v1959_v53  ;;  %5166 = vmatprep.subr.bf16.mxu0 %v5165_v50  ;;  %v5169_v53 = vpack.c.bf16 %v2162_v47, %v2161_v52 }
 0x809   : > { %v1956_v55 = vpop.xlane.xlu0 %1955  ;;  %5168 = vmatpush3.bf16.msra.mxu0 %v5165_v50 }
 0x80a   : > { %v1960_v56 = vmul.f32 0.03125, %v1956_v55  ;;  %v1967_v57 = vmul.f32 %v1963_v54, %v1963_v54  ;;  %5170 = vmatprep.subr.bf16.mxu0 %v5169_v53  ;;  %v2164_v55 = vld [vmem:[%s6762_s11 + $0x38] sm:$0xff] }
 0x80c   : > { %v1964_v58 = vsub.f32 %v6104_v21, %v1960_v56  ;;  %v1975_v59 = vsel %vm652_vm1, %v1967_v57, 0.0  ;;  %v2165_v57 = vld [vmem:[%s6762_s11 + $0x40] sm:$0xff] }
 0x80d   : > { %1976 = vadd.xlane.f32.xlu0 %v1975_v59  ;;  %5172 = vmatpush3.bf16.msra.mxu0 %v5169_v53 }
 0x80e   : > { %v1968_v14 = vmul.f32 %v1964_v58, %v1964_v58 }
 0x810   : > { %v1978_v60 = vsel %vm652_vm1, %v1968_v14, 0.0  ;;  %v2167_v14 = vld [vmem:[%s6762_s11 + $0x50] sm:$0xff] }
 0x811   : > { %1979 = vadd.xlane.f32.xlu1 %v1978_v60  ;;  %v2168_v60 = vld [vmem:[%s6762_s11 + $0x58] sm:$0xff] }
 0x812   : > { %v5181_v62 = vpack.c.bf16 %v2168_v60, %v2167_v14  ;;  %v5501_v60 = vld [vmem:[%s6759_s8] sm:$0x3f] }
 0x813   : > { %v2265_v61 = vrot.slane %v5501_v60, %v6020_v51 }
 0x892   : > { %v1974_v2 = vpop.xlane.xlu1 %1973 }
 0x893   : > { %v1982_v8 = vmul.f32 0.03125, %v1974_v2  ;;  %v1971_v9 = vpop.xlane.xlu0 %1970 }
 0x894   : > { %v1981_v12 = vmul.f32 0.03125, %v1971_v9 }
 0x895   : > { %v1986_v13 = vadd.f32 1e-06, %v1982_v8 }
 0x896   : > { %v1985_v15 = vadd.f32 1e-06, %v1981_v12 }
 0x897   : > { %5421 = vrsqrt.f32 %v1986_v13 }
 0x898   : > { %5423 = vrsqrt.f32 %v1985_v15 }
 0x89a   : > { %v1977_v16 = vpop.xlane.xlu0 %1976 }
 0x89b   : > { %v1983_v17 = vmul.f32 0.03125, %v1977_v16 }
 0x89d   : > { %v1987_v18 = vadd.f32 1e-06, %v1983_v17 }
 0x89e   : > { %v1980_v23 = vpop.xlane.xlu1 %1979 }
 0x89f   : > { %5425 = vrsqrt.f32 %v1987_v18  ;;  %v1984_v26 = vmul.f32 0.03125, %v1980_v23 }
 0x8a1   : > { %v5422_v30 = vpop.eup %5421  ;;  %v1988_v31 = vadd.f32 1e-06, %v1984_v26 }
 0x8a2   : > { %v5424_v32 = vpop.eup %5423  ;;  %v1994_v36 = vmul.f32 %v5422_v30, %v1962_v27 }
 0x8a3   : > { %5427 = vrsqrt.f32 %v1988_v31  ;;  %v1993_v37 = vmul.f32 %v5424_v32, %v1961_v28 }
 0x8a4   : > { %v2002_v39 = vmul.f32 %v2000_v29, %v1994_v36 }
 0x8a5   : > { %v2001_v34 = vmul.f32 %v2000_v29, %v1993_v37 }
 0x8a6   : > { %v2010_v40 = vadd.f32 %v2008_v38, %v2002_v39 }
 0x8a7   : > { %v2009_v20 = vadd.f32 %v2008_v38, %v2001_v34 }
 0x8a9   : > { %v5426_v42 = vpop.eup %5425  ;;  %4795 = vmatprep.mubr.msk.f32.mxu1 %vm652_vm1, %v2009_v20 }
 0x8aa   : > { %4796 = vmatmul.mubr.msk.f32.vlgmr.msra.gmra.mrb[28].mxu1 %vm652_vm1, %v2010_v40  ;;  %v1995_v43 = vmul.f32 %v5426_v42, %v1963_v54  ;;  %v2163_v54 = vld [vmem:[%s6762_s11 + $0x30] sm:$0xff] }
 0x8ab   : > { %v5173_v56 = vpack.c.bf16 %v2164_v55, %v2163_v54 }
 0x8ac   : > { %v2003_v44 = vmul.f32 %v2000_v29, %v1995_v43 }
 0x8ad   : > { %v5428_v45 = vpop.eup %5427  ;;  %5174 = vmatprep.subr.bf16.mxu0 %v5173_v56 }
 0x8ae   : > { %v2011_v46 = vadd.f32 %v2008_v38, %v2003_v44  ;;  %v1996_v48 = vmul.f32 %v5428_v45, %v1964_v58  ;;  %5176 = vmatpush3.bf16.msra.mxu0 %v5173_v56  ;;  %v2166_v58 = vld [vmem:[%s6762_s11 + $0x48] sm:$0xff] }
 0x8af   : > { %v5177_v59 = vpack.c.bf16 %v2166_v58, %v2165_v57 }
 0x8b0   : > { %4798 = vmatprep.mubr.msk.f32.mxu1 %vm652_vm1, %v2011_v46  ;;  %v2004_v27 = vmul.f32 %v2000_v29, %v1996_v48 }
 0x8b1   : > { %5178 = vmatprep.subr.bf16.mxu0 %v5177_v59 }
 0x8b2   : > { %v2012_v28 = vadd.f32 %v2008_v38, %v2004_v27  ;;  %5180 = vmatpush3.bf16.msra.mxu0 %v5177_v59 }
 0x8b3   : > { %5182 = vmatprep.subr.bf16.mxu0 %v5181_v62 }
 0x8b4   : > { %4799 = vmatmul.mubr.msk.f32.gmra.mrb[30].mxu1 %vm652_vm1, %v2012_v28 }
 0x8b6   : > { %5184 = vmatpush3.bf16.msra.mxu0 %v5181_v62 }
 0x8b7   : > { %5186 = vmatprep.subr.bf16.mxu0 %v5185_v3 }
 0x8ba   : > { %5188 = vmatpush3.bf16.msra.mxu0 %v5185_v3 }
 0x8bb   : > { %5190 = vmatprep.subr.bf16.mxu0 %v5189_v5 }
 0x8be   : > { %5192 = vmatpush3.bf16.msra.mxu0 %v5189_v5 }
 0x97d   : > { %v4797_v7 = vpop.f32.mrb[28].mxu1 }
 0x97e   : > { %v2108_v2 = vadd.f32 %v4797_v7, %v4244_v6  ;;  %v2102_v8 = vpop.f32.mrb[29].mxu1 }
 0x97f   : > { %v2103_v9 = vadd.f32 %v4244_v6, %v2102_v8 }
 0x980   : > { %v2126_v12 = vmul.f32 0.044715, %v2108_v2  ;;  %v2122_v50 = vmul.f32 0.5, %v2108_v2 }
 0x981   : > { %v2125_v13 = vmul.f32 0.044715, %v2103_v9  ;;  %v2121_v22 = vmul.f32 0.5, %v2103_v9 }
 0x982   : > { %v2130_v15 = vmul.f32 %v2126_v12, %v2108_v2 }
 0x983   : > { %v2129_v16 = vmul.f32 %v2125_v13, %v2103_v9 }
 0x984   : > { %v2134_v17 = vmul.f32 %v2130_v15, %v2108_v2 }
 0x985   : > { %v2133_v18 = vmul.f32 %v2129_v16, %v2103_v9 }
 0x986   : > { %v2138_v23 = vadd.f32 %v2134_v17, %v2108_v2 }
 0x987   : > { %v4800_v26 = vpop.f32.mrb[30].mxu1  ;;  %v2137_v29 = vadd.f32 %v2133_v18, %v2103_v9 }
 0x988   : > { %v2142_v30 = vmul.f32 0.7978846, %v2138_v23  ;;  %v2118_v31 = vadd.f32 %v4800_v26, %v4244_v6  ;;  %v2112_v32 = vpop.f32.mrb[31].mxu1 }
 0x989   : > { %v2113_v36 = vadd.f32 %v4244_v6, %v2112_v32  ;;  %v2141_v37 = vmul.f32 0.7978846, %v2137_v29 }
 0x98a   : > { %5429 = vtanh.f32 %v2142_v30  ;;  %v2128_v38 = vmul.f32 0.044715, %v2118_v31  ;;  %v2124_v58 = vmul.f32 0.5, %v2118_v31 }
 0x98b   : > { %v2127_v39 = vmul.f32 0.044715, %v2113_v36  ;;  %5431 = vtanh.f32 %v2141_v37  ;;  %v2123_v56 = vmul.f32 0.5, %v2113_v36 }
 0x98c   : > { %v2132_v34 = vmul.f32 %v2128_v38, %v2118_v31 }
 0x98d   : > { %v2131_v20 = vmul.f32 %v2127_v39, %v2113_v36 }
 0x98e   : > { %v2136_v40 = vmul.f32 %v2132_v34, %v2118_v31 }
 0x98f   : > { %v2135_v42 = vmul.f32 %v2131_v20, %v2113_v36 }
 0x990   : > { %v2140_v43 = vadd.f32 %v2136_v40, %v2118_v31 }
 0x991   : > { %v2139_v44 = vadd.f32 %v2135_v42, %v2113_v36 }
 0x992   : > { %v2144_v45 = vmul.f32 0.7978846, %v2140_v43 }
 0x993   : > { %v2143_v46 = vmul.f32 0.7978846, %v2139_v44  ;;  %v4251_v44 = vld [vmem:[%s6756_s5 + $0xc0] sm:$0xff] }
 0x994   : > { %v5430_v48 = vpop.eup %5429  ;;  %5433 = vtanh.f32 %v2144_v45  ;;  %v4252_v45 = vld [vmem:[%s6756_s5 + $0xc8] sm:$0xff] }
 0x995   : > { %v5432_v27 = vpop.eup %5431  ;;  %v2150_v28 = vadd.f32 1.0, %v5430_v48  ;;  %5435 = vtanh.f32 %v2143_v46  ;;  %v4283_v46 = vld [vmem:[%s6756_s5 + $0x140] sm:$0xff]  ;;  %v5193_v48 = vpack.c.bf16 %v4252_v45, %v4251_v44  ;;  %v4269_v45 = vld [vmem:[%s6756_s5 + $0x110] sm:$0xff] }
 0x996   : > { %v2149_v49 = vadd.f32 1.0, %v5432_v27  ;;  %v4284_v27 = vld [vmem:[%s6756_s5 + $0x148] sm:$0xff] }
 0x997   : > { %v2154_v47 = vmul.f32 %v2150_v28, %v2122_v50  ;;  %v5225_v28 = vpack.c.bf16 %v4284_v27, %v4283_v46  ;;  %5194 = vmatprep.subr.bf16.mxu1 %v5193_v48  ;;  %v4285_v50 = vld [vmem:[%s6756_s5 + $0x150] sm:$0xff]  ;;  %v4275_v46 = vld [vmem:[%s6756_s5 + $0x120] sm:$0xff] }
 0x998   : > { %v2153_v52 = vmul.f32 %v2149_v49, %v2121_v22  ;;  %5196 = vmatpush3.bf16.msra.mxu1 %v5193_v48  ;;  %v4253_v22 = vld [vmem:[%s6756_s5 + $0xd0] sm:$0xff]  ;;  %v4254_v49 = vld [vmem:[%s6756_s5 + $0xd8] sm:$0xff]  ;;  %v4276_v48 = vld [vmem:[%s6756_s5 + $0x128] sm:$0xff] }
 0x999   : > { %5226 = vmatprep.subr.bf16.mxu0 %v5225_v28  ;;  %v5217_v27 = vpack.c.bf16 %v4276_v48, %v4275_v46 }
 0x99a   : > { %4833 = vmatprep.mubr.f32.mxu0 %v2153_v52  ;;  %v5197_v52 = vpack.c.bf16 %v4254_v49, %v4253_v22  ;;  %v4278_v22 = vld [vmem:[%s6756_s5 + $0x138] sm:$0xff] }
 0x99b   : > { %4834 = vmatmul.mubr.f32.vlgmr.msra.gmra.mrb[20].mxu0 %v2154_v47  ;;  %v4286_v47 = vld [vmem:[%s6756_s5 + $0x158] sm:$0xff] }
 0x99c   : > { %5228 = vmatpush3.bf16.msra.mxu0 %v5225_v28  ;;  %5198 = vmatprep.subr.bf16.mxu1 %v5197_v52  ;;  %v4277_v28 = vld [vmem:[%s6756_s5 + $0x130] sm:$0xff] }
 0x99d   : > { %5200 = vmatpush3.bf16.msra.mxu1 %v5197_v52  ;;  %v5221_v49 = vpack.c.bf16 %v4278_v22, %v4277_v28  ;;  %v4292_v52 = vld [vmem:[%s6756_s5 + $0x168] sm:$0xff] }
 0x99e   : > { %v5434_v53 = vpop.eup %5433 }
 0x99f   : > { %v5436_v54 = vpop.eup %5435  ;;  %v2152_v55 = vadd.f32 1.0, %v5434_v53  ;;  %v5229_v53 = vpack.c.bf16 %v4286_v47, %v4285_v50  ;;  %v4291_v50 = vld [vmem:[%s6756_s5 + $0x160] sm:$0xff] }
 0x9a0   : > { %v2151_v57 = vadd.f32 1.0, %v5436_v54  ;;  %v4259_v54 = vld [vmem:[%s6756_s5 + $0xe0] sm:$0xff]  ;;  %v5233_v47 = vpack.c.bf16 %v4292_v52, %v4291_v50 }
 0x9a1   : > { %v2156_v14 = vmul.f32 %v2152_v55, %v2124_v58  ;;  %5230 = vmatprep.subr.bf16.mxu0 %v5229_v53  ;;  %v4260_v55 = vld [vmem:[%s6756_s5 + $0xe8] sm:$0xff] }
 0x9a2   : > { %v2155_v59 = vmul.f32 %v2151_v57, %v2123_v56  ;;  %5232 = vmatpush3.bf16.msra.mxu0 %v5229_v53  ;;  %v5201_v56 = vpack.c.bf16 %v4260_v55, %v4259_v54  ;;  %v4293_v53 = vld [vmem:[%s6756_s5 + $0x170] sm:$0xff]  ;;  %v4294_v54 = vld [vmem:[%s6756_s5 + $0x178] sm:$0xff] }
 0x9a3   : > { %v5237_v55 = vpack.c.bf16 %v4294_v54, %v4293_v53 }
 0x9a4   : > { %4836 = vmatprep.mubr.f32.mxu0 %v2155_v59  ;;  %5202 = vmatprep.subr.bf16.mxu1 %v5201_v56 }
 0x9a5   : > { %4837 = vmatmul.mubr.f32.gmra.mrb[22].mxu0 %v2156_v14 }
 0xa6e   : > { %v4835_v62 = vpop.f32.mrb[20].mxu0 }
 0xa6f   : > { %v2259_v1 = vadd.f32 %v4835_v62, %v6092_v35  ;;  %v2239_v3 = vpop.f32.mrb[21].mxu0 }
 0xa70   : > { %v2258_v0 = vadd.f32 %v2239_v3, %v6094_v25 }
 0xa71   : > { %v6195_v4 = vadd.f32 %v2265_v61, %v2259_v1  ;;  %v6285_v1 = vld [vmem:[%s6759_s8 + $0x8] sm:$0x3f] }
 0xa72   : > { %v6197_v5 = vadd.f32 %v2265_v61, %v2258_v0 }
 0xa73   : > { %2271 = vst.msk [vmem:[%s6200_s30 + $0x8] sm:$0xff] %vm652_vm1, %v6195_v4  ;;  %v2281_v6 = vsel %vm652_vm1, %v6195_v4, 0.0 }
 0xa74   : > { %2270 = vst.msk [vmem:[%s6200_s30] sm:$0xff] %vm652_vm1, %v6197_v5  ;;  %2282 = vadd.xlane.f32.xlu1 %v2281_v6  ;;  %v2278_v35 = vsel %vm652_vm1, %v6197_v5, 0.0 }
 0xa75   : > { %2279 = vadd.xlane.f32.xlu0 %v2278_v35 }
 0xa78   : > { %v4838_v25 = vpop.f32.mrb[22].mxu0 }
 0xa79   : > { %v2261_v7 = vadd.f32 %v4838_v25, %v6104_v21  ;;  %v2249_v2 = vpop.f32.mrb[23].mxu0  ;;  %v2333_v25 = vrot.slane %v6285_v1, %v5897_v19 }
 0xa7a   : > { %v2260_v8 = vadd.f32 %v2249_v2, %v6102_v41 }
 0xa7b   : > { %v6214_v9 = vadd.f32 %v2265_v61, %v2261_v7 }
 0xa7c   : > { %v6216_v12 = vadd.f32 %v2265_v61, %v2260_v8 }
 0xa7d   : > { %2273 = vst.msk [vmem:[%s6200_s30 + $0x18] sm:$0xff] %vm652_vm1, %v6214_v9  ;;  %v2287_v13 = vsel %vm652_vm1, %v6214_v9, 0.0 }
 0xa7e   : > { %2272 = vst.msk [vmem:[%s6200_s30 + $0x10] sm:$0xff] %vm652_vm1, %v6216_v12  ;;  %2288 = vadd.xlane.f32.xlu1 %v2287_v13  ;;  %v2284_v21 = vsel %vm652_vm1, %v6216_v12, 0.0 }
 0xa7f   : > { %2285 = vadd.xlane.f32.xlu0 %v2284_v21  ;;  %v2341_v21 = vrot.slane %v6285_v1, %v5905_v24 }
 0xb01   : > { %v2283_v15 = vpop.xlane.xlu1 %2282 }
 0xb02   : > { %v2291_v41 = vmul.f32 0.03125, %v2283_v15  ;;  %v2280_v16 = vpop.xlane.xlu0 %2279 }
 0xb03   : > { %v2290_v17 = vmul.f32 0.03125, %v2280_v16 }
 0xb04   : > { %v6229_v18 = vsub.f32 %v6195_v4, %v2291_v41 }
 0xb05   : > { %v6232_v23 = vsub.f32 %v6197_v5, %v2290_v17  ;;  %v4261_v17 = vld [vmem:[%s6756_s5 + $0xf0] sm:$0xff] }
 0xb06   : > { %v2299_v26 = vmul.f32 %v6229_v18, %v6229_v18 }
 0xb07   : > { %v2298_v29 = vmul.f32 %v6232_v23, %v6232_v23 }
 0xb08   : > { %v2305_v30 = vsel %vm652_vm1, %v2299_v26, 0.0  ;;  %v4262_v26 = vld [vmem:[%s6756_s5 + $0xf8] sm:$0xff] }
 0xb09   : > { %2306 = vadd.xlane.f32.xlu1 %v2305_v30  ;;  %v2302_v31 = vsel %vm652_vm1, %v2298_v29, 0.0 }
 0xb0a   : > { %2303 = vadd.xlane.f32.xlu0 %v2302_v31  ;;  %v4268_v31 = vld [vmem:[%s6756_s5 + $0x108] sm:$0xff] }
 0xb0b   : > { %v2289_v32 = vpop.xlane.xlu1 %2288 }
 0xb0c   : > { %v2293_v36 = vmul.f32 0.03125, %v2289_v32  ;;  %v2286_v37 = vpop.xlane.xlu0 %2285 }
 0xb0d   : > { %v2292_v38 = vmul.f32 0.03125, %v2286_v37 }
 0xb0e   : > { %v6241_v39 = vsub.f32 %v6214_v9, %v2293_v36 }
 0xb0f   : > { %v6244_v34 = vsub.f32 %v6216_v12, %v2292_v38 }
 0xb10   : > { %v2301_v20 = vmul.f32 %v6241_v39, %v6241_v39 }
 0xb11   : > { %v2300_v40 = vmul.f32 %v6244_v34, %v6244_v34 }
 0xb12   : > { %v2311_v42 = vsel %vm652_vm1, %v2301_v20, 0.0 }
 0xb13   : > { %2312 = vadd.xlane.f32.xlu1 %v2311_v42  ;;  %v2308_v43 = vsel %vm652_vm1, %v2300_v40, 0.0 }
 0xb14   : > { %2309 = vadd.xlane.f32.xlu0 %v2308_v43 }
 0xb96   : > { %v2307_v57 = vpop.xlane.xlu1 %2306 }
 0xb97   : > { %v2315_v58 = vmul.f32 0.03125, %v2307_v57  ;;  %v2304_v59 = vpop.xlane.xlu0 %2303 }
 0xb98   : > { %v2314_v14 = vmul.f32 0.03125, %v2304_v59 }
 0xb99   : > { %v2319_v60 = vadd.f32 1e-06, %v2315_v58 }
 0xb9a   : > { %v2318_v61 = vadd.f32 1e-06, %v2314_v14 }
 0xb9b   : > { %5437 = vrsqrt.f32 %v2319_v60 }
 0xb9c   : > { %5439 = vrsqrt.f32 %v2318_v61 }
 0xba0   : > { %v2313_v62 = vpop.xlane.xlu1 %2312 }
 0xba1   : > { %v2317_v3 = vmul.f32 0.03125, %v2313_v62  ;;  %v2310_v0 = vpop.xlane.xlu0 %2309 }
 0xba2   : > { %v2316_v6 = vmul.f32 0.03125, %v2310_v0 }
 0xba3   : > { %v2321_v35 = vadd.f32 1e-06, %v2317_v3 }
 0xba4   : > { %v2320_v7 = vadd.f32 1e-06, %v2316_v6 }
 0xba5   : > { %v5438_v2 = vpop.eup %5437  ;;  %5441 = vrsqrt.f32 %v2321_v35 }
 0xba6   : > { %v5440_v8 = vpop.eup %5439  ;;  %v2327_v13 = vmul.f32 %v5438_v2, %v6229_v18  ;;  %5443 = vrsqrt.f32 %v2320_v7  ;;  %v5205_v18 = vpack.c.bf16 %v4262_v26, %v4261_v17 }
 0xba7   : > { %v2326_v15 = vmul.f32 %v5440_v8, %v6232_v23  ;;  %v4267_v23 = vld [vmem:[%s6756_s5 + $0x100] sm:$0xff] }
 0xba8   : > { %v2335_v41 = vmul.f32 %v2333_v25, %v2327_v13  ;;  %v5209_v38 = vpack.c.bf16 %v4268_v31, %v4267_v23 }
 0xba9   : > { %v2334_v16 = vmul.f32 %v2333_v25, %v2326_v15 }
 0xbaa   : > { %v6301_v30 = vadd.f32 %v2341_v21, %v2335_v41 }
 0xbab   : > { %v6299_v29 = vadd.f32 %v2341_v21, %v2334_v16 }
 0xbad   : > { %4847 = vmatprep.mubr.msk.f32.mxu1 %vm652_vm1, %v6299_v29  ;;  %4903 = vmatprep.mubr.msk.f32.mxu0 %vm652_vm1, %v6299_v29 }
 0xbae   : > { %4848 = vmatmul.mubr.msk.f32.vlgmr.msra.gmra.mrb[32].mxu1 %vm652_vm1, %v6301_v30  ;;  %4904 = vmatmul.mubr.msk.f32.vlgmr.msra.gmra.mrb[24].mxu0 %vm652_vm1, %v6301_v30 }
 0xbaf   : > { %v5442_v32 = vpop.eup %5441  ;;  %5204 = vmatpush3.bf16.msra.mxu1 %v5201_v56  ;;  %v4250_v56 = vld [vmem:[%s6757_s6 + $0x8] sm:$0x3f] }
 0xbb0   : > { %v5444_v36 = vpop.eup %5443  ;;  %v2329_v37 = vmul.f32 %v5442_v32, %v6241_v39  ;;  %5206 = vmatprep.subr.bf16.mxu1 %v5205_v18  ;;  %v4270_v39 = vld [vmem:[%s6756_s5 + $0x118] sm:$0xff]  ;;  %v2742_v57 = vrot.slane %v4250_v56, %v5992_v10  ;;  %v6382_v58 = vrot.slane %v4250_v56, %v5897_v19  ;;  %v2836_v22 = vrot.slane %v4250_v56, %v6020_v51 }
 0xbb1   : > { %v2328_v20 = vmul.f32 %v5444_v36, %v6244_v34  ;;  %v5213_v34 = vpack.c.bf16 %v4270_v39, %v4269_v45 }
 0xbb2   : > { %v2337_v40 = vmul.f32 %v2333_v25, %v2329_v37 }
 0xbb3   : > { %v2336_v42 = vmul.f32 %v2333_v25, %v2328_v20  ;;  %5208 = vmatpush3.bf16.msra.mxu1 %v5205_v18 }
 0xbb4   : > { %5210 = vmatprep.subr.bf16.mxu1 %v5209_v38  ;;  %v2345_v44 = vadd.f32 %v2341_v21, %v2337_v40  ;;  %v2648_v40 = vrot.slane %v4250_v56, %v6010_v33 }
 0xbb5   : > { %v2344_v43 = vadd.f32 %v2341_v21, %v2336_v42  ;;  %v6389_v21 = vrot.slane %v4250_v56, %v5905_v24 }
 0xbb7   : > { %4850 = vmatprep.mubr.msk.f32.mxu1 %vm652_vm1, %v2344_v43  ;;  %4906 = vmatprep.mubr.msk.f32.mxu0 %vm652_vm1, %v2344_v43 }
 0xbb8   : > { %4851 = vmatmul.mubr.msk.f32.gmra.mrb[34].mxu1 %vm652_vm1, %v2345_v44  ;;  %4907 = vmatmul.mubr.msk.f32.gmra.mrb[26].mxu0 %vm652_vm1, %v2345_v44 }
 0xbb9   : > { %4861 = vmatprep.mubr.msk.f32.mxu1 %vm652_vm1, %v6299_v29 }
 0xbbc   : > { %4862 = vmatmul.mubr.msk.f32.vlgmr.msra.gmra.mrb[36].mxu1 %vm652_vm1, %v6301_v30 }
 0xbbd   : > { %5212 = vmatpush3.bf16.msra.mxu1 %v5209_v38  ;;  %4864 = vmatprep.mubr.msk.f32.mxu1 %vm652_vm1, %v2344_v43 }
 0xbbe   : > { %5214 = vmatprep.subr.bf16.mxu1 %v5213_v34 }
 0xbc0   : > { %4865 = vmatmul.mubr.msk.f32.gmra.mrb[38].mxu1 %vm652_vm1, %v2345_v44 }
 0xbc1   : > { %5216 = vmatpush3.bf16.msra.mxu1 %v5213_v34  ;;  %4875 = vmatprep.mubr.msk.f32.mxu1 %vm652_vm1, %v6299_v29 }
 0xbc2   : > { %5218 = vmatprep.subr.bf16.mxu1 %v5217_v27 }
 0xbc4   : > { %4876 = vmatmul.mubr.msk.f32.vlgmr.msra.gmra.mrb[40].mxu1 %vm652_vm1, %v6301_v30 }
 0xbc5   : > { %5220 = vmatpush3.bf16.msra.mxu1 %v5217_v27  ;;  %4878 = vmatprep.mubr.msk.f32.mxu1 %vm652_vm1, %v2344_v43 }
 0xbc6   : > { %5222 = vmatprep.subr.bf16.mxu1 %v5221_v49 }
 0xbc8   : > { %4879 = vmatmul.mubr.msk.f32.gmra.mrb[42].mxu1 %vm652_vm1, %v2345_v44 }
 0xbc9   : > { %5224 = vmatpush3.bf16.msra.mxu1 %v5221_v49  ;;  %4889 = vmatprep.mubr.msk.f32.mxu1 %vm652_vm1, %v6299_v29 }
 0xbca   : > { %5234 = vmatprep.subr.bf16.mxu1 %v5233_v47 }
 0xbcc   : > { %4890 = vmatmul.mubr.msk.f32.vlgmr.msra.gmra.mrb[44].mxu1 %vm652_vm1, %v6301_v30 }
 0xbcd   : > { %4892 = vmatprep.mubr.msk.f32.mxu1 %vm652_vm1, %v2344_v43  ;;  %5236 = vmatpush3.bf16.msra.mxu1 %v5233_v47 }
 0xbce   : > { %5238 = vmatprep.subr.bf16.mxu1 %v5237_v55 }
 0xbd0   : > { %4893 = vmatmul.mubr.msk.f32.gmra.mrb[46].mxu1 %vm652_vm1, %v2345_v44 }
 0xbd1   : > { %5240 = vmatpush3.bf16.msra.mxu1 %v5237_v55  ;;  %4917 = vmatprep.mubr.msk.f32.mxu1 %vm652_vm1, %v6299_v29 }
 0xbd4   : > { %4918 = vmatmul.mubr.msk.f32.vlgmr.msra.gmra.mrb[48].mxu1 %vm652_vm1, %v6301_v30  ;;  %v2554_v30 = vrot.slane %v4250_v56, %v5984_v63 }
 0xbd5   : > { %4920 = vmatprep.mubr.msk.f32.mxu1 %vm652_vm1, %v2344_v43 }
 0xbd8   : > { %4921 = vmatmul.mubr.msk.f32.gmra.mrb[50].mxu1 %vm652_vm1, %v2345_v44 }
 0xc81   : > { %v4849_v59 = vpop.f32.mrb[32].mxu1  ;;  %v4905_v14 = vpop.f32.mrb[24].mxu0 }
 0xc82   : > { %v2815_v60 = vadd.f32 %v4905_v14, %v2742_v57  ;;  %v2433_v61 = vpop.f32.mrb[33].mxu1  ;;  %v2809_v62 = vpop.f32.mrb[25].mxu0  ;;  %v2439_v55 = vadd.f32 %v4849_v59, %v6382_v58 }
 0xc83   : > { %v2434_v3 = vadd.f32 %v2433_v61, %v6382_v58  ;;  %v2810_v0 = vadd.f32 %v2809_v62, %v2742_v57 }
 0xc85   : > { %v6385_v6 = vpack.c.bf16 %v2815_v60, %v2810_v0  ;;  %4931 = vmatprep.mubr.msk.f32.mxu0 %vm1303_vm2, %v2434_v3 }
 0xc8b   : > { %v4852_v35 = vpop.f32.mrb[34].mxu1  ;;  %v4908_v25 = vpop.f32.mrb[26].mxu0 }
 0xc8c   : > { %v2825_v7 = vadd.f32 %v4908_v25, %v2742_v57  ;;  %v2443_v2 = vpop.f32.mrb[35].mxu1  ;;  %v2819_v8 = vpop.f32.mrb[27].mxu0  ;;  %v2449_v3 = vadd.f32 %v4852_v35, %v6382_v58 }
 0xc8d   : > { %v2820_v13 = vadd.f32 %v2819_v8, %v2742_v57  ;;  %v2444_v14 = vadd.f32 %v2443_v2, %v6382_v58 }
 0xc8f   : > { %v5269_v15 = vpack.c.bf16 %v2825_v7, %v2820_v13  ;;  %v4863_v41 = vpop.f32.mrb[36].mxu1 }
 0xc90   : > { %v2527_v16 = vpop.f32.mrb[37].mxu1  ;;  %v2533_v59 = vadd.f32 %v4863_v41, %v6389_v21 }
 0xc91   : > { %v2528_v17 = vadd.f32 %v2527_v16, %v6389_v21 }
 0xc93   : > { %v4866_v26 = vpop.f32.mrb[38].mxu1  ;;  %4945 = vmatprep.mubr.msk.f32.mxu1 %vm1303_vm2, %v2528_v17 }
 0xc94   : > { %v2537_v29 = vpop.f32.mrb[39].mxu1  ;;  %v2543_v11 = vadd.f32 %v4866_v26, %v6389_v21 }
 0xc95   : > { %v2538_v25 = vadd.f32 %v2537_v29, %v6389_v21 }
 0xc97   : > { %v4877_v18 = vpop.f32.mrb[40].mxu1 }
 0xc98   : > { %v2627_v23 = vadd.f32 %v4877_v18, %v2554_v30  ;;  %v2621_v31 = vpop.f32.mrb[41].mxu1 }
 0xc99   : > { %v2622_v32 = vadd.f32 %v2621_v31, %v2554_v30 }
 0xc9b   : > { %v5241_v36 = vpack.c.bf16 %v2627_v23, %v2622_v32  ;;  %v4880_v37 = vpop.f32.mrb[42].mxu1 }
 0xc9c   : > { %v2637_v38 = vadd.f32 %v4880_v37, %v2554_v30  ;;  %v2631_v20 = vpop.f32.mrb[43].mxu1 }
 0xc9d   : > { %v2632_v42 = vadd.f32 %v2631_v20, %v2554_v30  ;;  %5243 = vmatprep.subr.msk.bf16.mxu0 %vm5996_vm3, %v5241_v36 }
 0xc9e   : > { %5246 = vmatpush3.bf16.xpose.msk.msra.mxu0 %vm5996_vm3, %v5241_v36 }
 0xc9f   : > { %v5247_v43 = vpack.c.bf16 %v2637_v38, %v2632_v42  ;;  %v4891_v44 = vpop.f32.mrb[44].mxu1 }
 0xca0   : > { %v2721_v45 = vadd.f32 %v4891_v44, %v2648_v40  ;;  %v2715_v39 = vpop.f32.mrb[45].mxu1 }
 0xca1   : > { %v2716_v34 = vadd.f32 %v2715_v39, %v2648_v40  ;;  %5249 = vmatprep.subr.msk.bf16.mxu0 %vm5996_vm3, %v5247_v43 }
 0xca3   : > { %v5253_v46 = vpack.c.bf16 %v2721_v45, %v2716_v34  ;;  %v4894_v48 = vpop.f32.mrb[46].mxu1 }
 0xca4   : > { %v2731_v27 = vadd.f32 %v4894_v48, %v2648_v40  ;;  %v2725_v28 = vpop.f32.mrb[47].mxu1 }
 0xca5   : > { %v2726_v49 = vadd.f32 %v2725_v28, %v2648_v40  ;;  %5255 = vmatprep.subr.msk.bf16.mxu1 %vm5996_vm3, %v5253_v46 }
 0xca6   : > { %5252 = vmatpush3.bf16.xpose.msk.msra.mxu0 %vm5996_vm3, %v5247_v43  ;;  %5258 = vmatpush3.bf16.xpose.msk.msra.mxu1 %vm5996_vm3, %v5253_v46 }
 0xca7   : > { %v5259_v50 = vpack.c.bf16 %v2731_v27, %v2726_v49  ;;  %v4919_v52 = vpop.f32.mrb[48].mxu1  ;;  %5266 = vmatprep.subr.bf16.mxu0 %v6385_v6 }
 0xca8   : > { %v2909_v47 = vadd.f32 %v4919_v52, %v2836_v22  ;;  %v2903_v53 = vpop.f32.mrb[49].mxu1 }
 0xca9   : > { %v2904_v54 = vadd.f32 %v2903_v53, %v2836_v22  ;;  %5261 = vmatprep.subr.msk.bf16.mxu1 %vm5996_vm3, %v5259_v50 }
 0xcab   : > { %v5273_v56 = vpack.c.bf16 %v2909_v47, %v2904_v54  ;;  %v4922_v57 = vpop.f32.mrb[50].mxu1 }
 0xcac   : > { %v2919_v60 = vadd.f32 %v4922_v57, %v2836_v22  ;;  %v2913_v61 = vpop.f32.mrb[51].mxu1 }
 0xcad   : > { %v2914_v62 = vadd.f32 %v2913_v61, %v2836_v22  ;;  %4932 = vmatmul.mubr.msk.f32.vlgmr.msra.gmra.mrb[28].mxu0 %vm1303_vm2, %v2439_v55 }
 0xcae   : > { %4934 = vmatprep.mubr.msk.f32.mxu0 %vm1303_vm2, %v2444_v14  ;;  %5264 = vmatpush3.bf16.xpose.msk.msra.mxu1 %vm5996_vm3, %v5259_v50 }
 0xcaf   : > { %v5277_v0 = vpack.c.bf16 %v2919_v60, %v2914_v62  ;;  %5268 = vmatpush3.bf16.msra.mxu0 %v6385_v6  ;;  %5274 = vmatprep.subr.bf16.mxu1 %v5273_v56 }
 0xcb0   : > { %5270 = vmatprep.subr.bf16.mxu0 %v5269_v15 }
 0xcb1   : > { %4935 = vmatmul.mubr.msk.f32.gmra.mrb[30].mxu0 %vm1303_vm2, %v2449_v3 }
 0xcb3   : > { %5272 = vmatpush3.bf16.msra.mxu0 %v5269_v15 }
 0xcb5   : > { %4946 = vmatmul.mubr.msk.f32.vlgmr.msra.gmra.mrb[52].mxu1 %vm1303_vm2, %v2533_v59 }
 0xcb6   : > { %4948 = vmatprep.mubr.msk.f32.mxu1 %vm1303_vm2, %v2538_v25  ;;  %5276 = vmatpush3.bf16.msra.mxu1 %v5273_v56 }
 0xcb7   : > { %5278 = vmatprep.subr.bf16.mxu1 %v5277_v0 }
 0xcb9   : > { %4949 = vmatmul.mubr.msk.f32.gmra.mrb[54].mxu1 %vm1303_vm2, %v2543_v11 }
 0xcba   : > { %5280 = vmatpush3.bf16.msra.mxu1 %v5277_v0 }
 0xd80   : > { %v4933_v58 = vpop.f32.mrb[28].mxu0 }
 0xd81   : > { %v3012_v6 = vpop.f32.mrb[29].mxu0  ;;  %v3141_v30 = vmul.f32 0.25, %v4933_v58 }
 0xd82   : > { %v3140_v23 = vmul.f32 0.25, %v3012_v6 }
 0xd83   : > { %v3151_v36 = vsel %vm652_vm1, %v3141_v30, -inf }
 0xd84   : > { %v4936_v35 = vpop.f32.mrb[30].mxu0  ;;  %v3148_v38 = vsel %vm652_vm1, %v3140_v23, -inf }
 0xd85   : > { %v3022_v7 = vpop.f32.mrb[31].mxu0  ;;  %v3143_v32 = vmul.f32 0.25, %v4936_v35 }
 0xd86   : > { %v3142_v37 = vmul.f32 0.25, %v3022_v7 }
 0xd87   : > { %v3157_v20 = vsel %vm652_vm1, %v3143_v32, -inf }
 0xd88   : > { %v4947_v2 = vpop.f32.mrb[52].mxu1  ;;  %v3154_v40 = vsel %vm652_vm1, %v3142_v37, -inf }
 0xd89   : > { %v3145_v8 = vmul.f32 0.25, %v4947_v2  ;;  %v3121_v13 = vpop.f32.mrb[53].mxu1 }
 0xd8a   : > { %v3144_v15 = vmul.f32 0.25, %v3121_v13 }
 0xd8b   : > { %v3163_v41 = vsel %vm652_vm1, %v3145_v8, -inf }
 0xd8c   : > { %3164 = vmax.xlane.f32.xlu1 %v3163_v41  ;;  %v4950_v16 = vpop.f32.mrb[54].mxu1  ;;  %v3160_v17 = vsel %vm652_vm1, %v3144_v15, -inf }
 0xd8d   : > { %v3147_v29 = vmul.f32 0.25, %v4950_v16  ;;  %3161 = vmax.xlane.f32.xlu0 %v3160_v17  ;;  %v3131_v21 = vpop.f32.mrb[55].mxu1 }
 0xd8e   : > { %v3146_v26 = vmul.f32 0.25, %v3131_v21 }
 0xd8f   : > { %v3169_v18 = vsel %vm652_vm1, %v3147_v29, -inf }
 0xd90   : > { %3170 = vmax.xlane.f32.xlu1 %v3169_v18  ;;  %v3166_v31 = vsel %vm652_vm1, %v3146_v26, -inf }
 0xd91   : > { %3167 = vmax.xlane.f32.xlu0 %v3166_v31 }
 0xd94   : > { %3152 = vmax.xlane.f32.xlu1 %v3151_v36 }
 0xd95   : > { %3149 = vmax.xlane.f32.xlu0 %v3148_v38 }
 0xd98   : > { %3158 = vmax.xlane.f32.xlu1 %v3157_v20 }
 0xd99   : > { %3155 = vmax.xlane.f32.xlu0 %v3154_v40 }
 0xe19   : > { %v3165_v42 = vpop.xlane.xlu1 %3164 }
 0xe1a   : > { %v3177_v43 = vsub.f32 %v3145_v8, %v3165_v42  ;;  %v3162_v44 = vpop.xlane.xlu0 %3161 }
 0xe1b   : > { %v3176_v45 = vsub.f32 %v3144_v15, %v3162_v44 }
 0xe1c   : > { %v3190_v39 = vmul.f32 1.442695, %v3177_v43 }
 0xe1d   : > { %v3188_v34 = vmul.f32 1.442695, %v3176_v45  ;;  %v3171_v46 = vpop.xlane.xlu1 %3170 }
 0xe1e   : > { %5445 = vpow2.f32 %v3190_v39  ;;  %v3179_v48 = vsub.f32 %v3147_v29, %v3171_v46  ;;  %v3168_v27 = vpop.xlane.xlu0 %3167 }
 0xe1f   : > { %5447 = vpow2.f32 %v3188_v34  ;;  %v3178_v28 = vsub.f32 %v3146_v26, %v3168_v27 }
 0xe20   : > { %v3194_v22 = vmul.f32 1.442695, %v3179_v48 }
 0xe21   : > { %v3192_v49 = vmul.f32 1.442695, %v3178_v28  ;;  %v3153_v50 = vpop.xlane.xlu1 %3152 }
 0xe22   : > { %5449 = vpow2.f32 %v3194_v22  ;;  %v3173_v52 = vsub.f32 %v3141_v30, %v3153_v50  ;;  %v3150_v47 = vpop.xlane.xlu0 %3149  ;;  %v4324_v50 = vld [vmem:[%s6758_s7 + $0x28] sm:$0xff] }
 0xe23   : > { %5451 = vpow2.f32 %v3192_v49  ;;  %v3172_v53 = vsub.f32 %v3140_v23, %v3150_v47  ;;  %v4323_v49 = vld [vmem:[%s6758_s7 + $0x20] sm:$0xff]  ;;  %v4325_v47 = vld [vmem:[%s6758_s7 + $0x30] sm:$0xff] }
 0xe24   : > { %v3182_v54 = vmul.f32 1.442695, %v3173_v52  ;;  %v5281_v52 = vpack.c.bf16 %v4324_v50, %v4323_v49  ;;  %v4331_v50 = vld [vmem:[%s6760_s9 + $0x20] sm:$0xff] }
 0xe25   : > { %v3180_v55 = vmul.f32 1.442695, %v3172_v53  ;;  %v3159_v56 = vpop.xlane.xlu1 %3158  ;;  %v4326_v53 = vld [vmem:[%s6758_s7 + $0x38] sm:$0xff] }
 0xe26   : > { %5453 = vpow2.f32 %v3182_v54  ;;  %v3175_v57 = vsub.f32 %v3143_v32, %v3159_v56  ;;  %v3156_v14 = vpop.xlane.xlu0 %3155  ;;  %5282 = vmatprep.subr.bf16.mxu0 %v5281_v52  ;;  %v5285_v54 = vpack.c.bf16 %v4326_v53, %v4325_v47  ;;  %v4333_v53 = vld [vmem:[%s6760_s9 + $0x30] sm:$0xff] }
 0xe27   : > { %5455 = vpow2.f32 %v3180_v55  ;;  %v3174_v60 = vsub.f32 %v3142_v37, %v3156_v14 }
 0xe28   : > { %v5446_v61 = vpop.eup %5445  ;;  %v3186_v62 = vmul.f32 1.442695, %v3175_v57 }
 0xe29   : > { %v5448_v3 = vpop.eup %5447  ;;  %v3184_v0 = vmul.f32 1.442695, %v3174_v60  ;;  %v3211_v59 = vsel %vm652_vm1, %v5446_v61, 0.0 }
 0xe2a   : > { %5457 = vpow2.f32 %v3186_v62  ;;  %3212 = vadd.xlane.f32.xlu1 %v3211_v59  ;;  %v3208_v25 = vsel %vm652_vm1, %v5448_v3, 0.0 }
 0xe2b   : > { %5459 = vpow2.f32 %v3184_v0  ;;  %3209 = vadd.xlane.f32.xlu0 %v3208_v25 }
 0xe2c   : > { %v5450_v11 = vpop.eup %5449 }
 0xe2d   : > { %v5452_v58 = vpop.eup %5451  ;;  %v3217_v6 = vsel %vm652_vm1, %v5450_v11, 0.0 }
 0xe2e   : > { %3218 = vadd.xlane.f32.xlu1 %v3217_v6  ;;  %v3214_v35 = vsel %vm652_vm1, %v5452_v58, 0.0 }
 0xe2f   : > { %3215 = vadd.xlane.f32.xlu0 %v3214_v35 }
 0xe30   : > { %v5454_v7 = vpop.eup %5453 }
 0xe31   : > { %v5456_v2 = vpop.eup %5455  ;;  %v3199_v8 = vsel %vm652_vm1, %v5454_v7, 0.0 }
 0xe32   : > { %3200 = vadd.xlane.f32.xlu1 %v3199_v8  ;;  %v3196_v13 = vsel %vm652_vm1, %v5456_v2, 0.0 }
 0xe33   : > { %3197 = vadd.xlane.f32.xlu0 %v3196_v13 }
 0xe34   : > { %v5458_v15 = vpop.eup %5457 }
 0xe35   : > { %v5460_v41 = vpop.eup %5459  ;;  %v3205_v16 = vsel %vm652_vm1, %v5458_v15, 0.0 }
 0xe36   : > { %3206 = vadd.xlane.f32.xlu1 %v3205_v16  ;;  %v3202_v17 = vsel %vm652_vm1, %v5460_v41, 0.0 }
 0xe37   : > { %3203 = vadd.xlane.f32.xlu0 %v3202_v17 }
 0xeb7   : > { %v3213_v29 = vpop.xlane.xlu1 %3212 }
 0xeb8   : > { %5461 = vrcp.f32 %v3213_v29  ;;  %v3210_v21 = vpop.xlane.xlu0 %3209 }
 0xeb9   : > { %5463 = vrcp.f32 %v3210_v21 }
 0xebb   : > { %v3219_v26 = vpop.xlane.xlu1 %3218 }
 0xebc   : > { %5465 = vrcp.f32 %v3219_v26  ;;  %v3216_v30 = vpop.xlane.xlu0 %3215 }
 0xebd   : > { %5467 = vrcp.f32 %v3216_v30 }
 0xebf   : > { %v3201_v18 = vpop.xlane.xlu1 %3200 }
 0xec0   : > { %5469 = vrcp.f32 %v3201_v18  ;;  %v3198_v23 = vpop.xlane.xlu0 %3197 }
 0xec1   : > { %5471 = vrcp.f32 %v3198_v23 }
 0xec2   : > { %v5462_v31 = vpop.eup %5461 }
 0xec3   : > { %v5464_v32 = vpop.eup %5463  ;;  %v3207_v36 = vpop.xlane.xlu1 %3206  ;;  %v3233_v20 = vmul.f32 %v5462_v31, %v5446_v61 }
 0xec4   : > { %5473 = vrcp.f32 %v3207_v36  ;;  %v3204_v37 = vpop.xlane.xlu0 %3203  ;;  %v3232_v38 = vmul.f32 %v5464_v32, %v5448_v3 }
 0xec5   : > { %5475 = vrcp.f32 %v3204_v37 }
 0xec6   : > { %v5466_v40 = vpop.eup %5465  ;;  %4973 = vmatprep.mubr.msk.f32.mxu1 %vm652_vm1, %v3232_v38 }
 0xec7   : > { %v5468_v42 = vpop.eup %5467  ;;  %4974 = vmatmul.mubr.msk.f32.vlgmr.msra.gmra.mrb[56].mxu1 %vm652_vm1, %v3233_v20  ;;  %v3235_v44 = vmul.f32 %v5466_v40, %v5450_v11 }
 0xec8   : > { %v3234_v43 = vmul.f32 %v5468_v42, %v5452_v58 }
 0xeca   : > { %v5470_v45 = vpop.eup %5469  ;;  %4976 = vmatprep.mubr.msk.f32.mxu1 %vm652_vm1, %v3234_v43 }
 0xecb   : > { %v5472_v39 = vpop.eup %5471  ;;  %4977 = vmatmul.mubr.msk.f32.gmra.mrb[58].mxu1 %vm652_vm1, %v3235_v44  ;;  %v3229_v46 = vmul.f32 %v5470_v45, %v5454_v7 }
 0xecc   : > { %v3228_v34 = vmul.f32 %v5472_v39, %v5456_v2  ;;  %v3559_v2 = vrot.slane %v6285_v1, %v5984_v63 }
 0xece   : > { %v5474_v48 = vpop.eup %5473  ;;  %4959 = vmatprep.mubr.msk.f32.mxu0 %vm652_vm1, %v3228_v34 }
 0xecf   : > { %v5476_v27 = vpop.eup %5475  ;;  %4960 = vmatmul.mubr.msk.f32.vlgmr.msra.gmra.mrb[32].mxu0 %vm652_vm1, %v3229_v46  ;;  %v3231_v22 = vmul.f32 %v5474_v48, %v5458_v15 }
 0xed0   : > { %v3230_v28 = vmul.f32 %v5476_v27, %v5460_v41  ;;  %5284 = vmatpush3.bf16.msra.mxu0 %v5281_v52  ;;  %v4332_v52 = vld [vmem:[%s6760_s9 + $0x28] sm:$0xff] }
 0xed1   : > { %5286 = vmatprep.subr.bf16.mxu0 %v5285_v54  ;;  %v5289_v47 = vpack.c.bf16 %v4332_v52, %v4331_v50  ;;  %v4355_v50 = vld [vmem:[%s6762_s11 + $0xf0] sm:$0xff]  ;;  %v4356_v52 = vld [vmem:[%s6762_s11 + $0xf8] sm:$0xff] }
 0xed2   : > { %4962 = vmatprep.mubr.msk.f32.mxu0 %vm652_vm1, %v3230_v28 }
 0xed3   : > { %4963 = vmatmul.mubr.msk.f32.gmra.mrb[34].mxu0 %vm652_vm1, %v3231_v22  ;;  %5290 = vmatprep.subr.bf16.mxu1 %v5289_v47 }
 0xed4   : > { %5288 = vmatpush3.bf16.msra.mxu0 %v5285_v54  ;;  %5292 = vmatpush3.bf16.msra.mxu1 %v5289_v47  ;;  %v4334_v54 = vld [vmem:[%s6760_s9 + $0x38] sm:$0xff]  ;;  %v5325_v47 = vpack.c.bf16 %v4356_v52, %v4355_v50 }
 0xf9a   : > { %v4975_v55 = vpop.f32.mrb[56].mxu1 }
 0xf9b   : > { %3436 = vrot.lane.b32.xlu1 %v4975_v55, %s6793_s23  ;;  %v3411_v56 = vpop.f32.mrb[57].mxu1  ;;  %v5293_v55 = vpack.c.bf16 %v4334_v54, %v4333_v53  ;;  %v4336_v53 = vld [vmem:[%s6761_s10 + $0x1] ss:$0 sm:$0xff] }
 0xf9c   : > { %3434 = vrot.lane.b32.xlu0 %v3411_v56, %s6793_s23  ;;  %v4341_v56 = vld [vmem:[%s6762_s11 + $0x80] sm:$0xff] }
 0xf9d   : > { %5294 = vmatprep.subr.bf16.mxu1 %v5293_v55 }
 0xf9e   : > { %v4978_v57 = vpop.f32.mrb[58].mxu1  ;;  %5296 = vmatpush3.bf16.msra.mxu1 %v5293_v55 }
 0xf9f   : > { %v3421_v14 = vpop.f32.mrb[59].mxu1 }
 0xfa0   : > { %3438 = vrot.lane.b32.xlu1 %v3421_v14, %s6793_s23 }
 0xfa2   : > { %v4961_v60 = vpop.f32.mrb[32].mxu0 }
 0xfa3   : > { %v3314_v61 = vpop.f32.mrb[33].mxu0 }
 0xfa4   : > { %3440 = vrot.lane.b32.xlu1 %v4978_v57, %s6793_s23  ;;  %v4342_v57 = vld [vmem:[%s6762_s11 + $0x88] sm:$0xff] }
 0xfa5   : > { %v5297_v14 = vpack.c.bf16 %v4342_v57, %v4341_v56 }
 0xfa6   : > { %v4964_v62 = vpop.f32.mrb[34].mxu0 }
 0xfa7   : > { %v3324_v3 = vpop.f32.mrb[35].mxu0  ;;  %5298 = vmatprep.subr.bf16.mxu0 %v5297_v14 }
0x100d   : > { %v3437_v0 = vpop.permute.xlu1 %3436 }
0x100e   : > { %v3435_v59 = vpop.permute.xlu0 %3434  ;;  %v3447_v11 = vsel %vm1303_vm2, %v4961_v60, %v3437_v0 }
0x100f   : > { %v3446_v25 = vsel %vm1303_vm2, %v3314_v61, %v3435_v59 }
0x1010   : > { %4987 = vmatprep.mubr.msk.f32.mxu0 %vm652_vm1, %v3446_v25 }
0x1011   : > { %4988 = vmatmul.mubr.msk.f32.vlgmr.msra.gmra.mrb[36].mxu0 %vm652_vm1, %v3447_v11 }
0x1012   : > { %v3439_v58 = vpop.permute.xlu1 %3438  ;;  %5300 = vmatpush3.bf16.msra.mxu0 %v5297_v14 }
0x1013   : > { %v3448_v6 = vsel %vm1303_vm2, %v3324_v3, %v3439_v58 }
0x1014   : > { %4990 = vmatprep.mubr.msk.f32.mxu0 %vm652_vm1, %v3448_v6 }
0x1016   : > { %v3441_v35 = vpop.permute.xlu1 %3440 }
0x1017   : > { %v3449_v7 = vsel %vm1303_vm2, %v4964_v62, %v3441_v35 }
0x1018   : > { %4991 = vmatmul.mubr.msk.f32.gmra.mrb[38].mxu0 %vm652_vm1, %v3449_v7  ;;  %v3619_v7 = vrot.slane %v6285_v1, %v6010_v33 }
0x10e4   : > { %v4989_v8 = vpop.f32.mrb[36].mxu0 }
0x10e5   : > { %v3553_v13 = vadd.f32 %v4989_v8, %v6195_v4  ;;  %v3533_v15 = vpop.f32.mrb[37].mxu0 }
0x10e6   : > { %v3552_v41 = vadd.f32 %v3533_v15, %v6197_v5 }
0x10e7   : > { %v6478_v16 = vadd.f32 %v3559_v2, %v3553_v13 }
0x10e8   : > { %v6480_v17 = vadd.f32 %v3559_v2, %v3552_v41 }
0x10e9   : > { %v3567_v29 = vsel %vm652_vm1, %v6478_v16, 0.0 }
0x10ea   : > { %3568 = vadd.xlane.f32.xlu1 %v3567_v29  ;;  %v3564_v21 = vsel %vm652_vm1, %v6480_v17, 0.0  ;;  %v3627_v29 = vrot.slane %v6285_v1, %v5992_v10  ;;  %v4343_v10 = vld [vmem:[%s6762_s11 + $0x90] sm:$0xff]  ;;  %v4344_v1 = vld [vmem:[%s6762_s11 + $0x98] sm:$0xff] }
0x10eb   : > { %3565 = vadd.xlane.f32.xlu0 %v3564_v21  ;;  %v4992_v26 = vpop.f32.mrb[38].mxu0 }
0x10ec   : > { %v3543_v63 = vpop.f32.mrb[39].mxu0  ;;  %v3555_v30 = vadd.f32 %v4992_v26, %v6214_v9 }
0x10ed   : > { %v3554_v4 = vadd.f32 %v3543_v63, %v6216_v12 }
0x10ee   : > { %v6490_v5 = vadd.f32 %v3559_v2, %v3555_v30 }
0x10ef   : > { %v6488_v18 = vadd.f32 %v3559_v2, %v3554_v4 }
0x10f0   : > { %v3573_v31 = vsel %vm652_vm1, %v6490_v5, 0.0 }
0x10f1   : > { %v3570_v23 = vsel %vm652_vm1, %v6488_v18, 0.0 }
0x10f2   : > { %3571 = vadd.xlane.f32.xlu0 %v3570_v23 }
0x10f6   : > { %3574 = vadd.xlane.f32.xlu0 %v3573_v31 }
0x1177   : > { %v3569_v32 = vpop.xlane.xlu1 %3568 }
0x1178   : > { %v3577_v36 = vmul.f32 0.03125, %v3569_v32  ;;  %v3566_v37 = vpop.xlane.xlu0 %3565 }
0x1179   : > { %v3576_v38 = vmul.f32 0.03125, %v3566_v37 }
0x117a   : > { %v3581_v9 = vsub.f32 %v6478_v16, %v3577_v36 }
0x117b   : > { %v3580_v12 = vsub.f32 %v6480_v17, %v3576_v38 }
0x117c   : > { %v3585_v20 = vmul.f32 %v3581_v9, %v3581_v9 }
0x117d   : > { %v3584_v40 = vmul.f32 %v3580_v12, %v3580_v12 }
0x117e   : > { %v3591_v42 = vsel %vm652_vm1, %v3585_v20, 0.0  ;;  %v4346_v20 = vld [vmem:[%s6762_s11 + $0xa8] sm:$0xff] }
0x117f   : > { %3592 = vadd.xlane.f32.xlu1 %v3591_v42  ;;  %v3572_v43 = vpop.xlane.xlu0 %3571  ;;  %v3588_v44 = vsel %vm652_vm1, %v3584_v40, 0.0  ;;  %v4347_v42 = vld [vmem:[%s6762_s11 + $0xb0] sm:$0xff] }
0x1180   : > { %v3578_v45 = vmul.f32 0.03125, %v3572_v43  ;;  %3589 = vadd.xlane.f32.xlu0 %v3588_v44  ;;  %v4348_v43 = vld [vmem:[%s6762_s11 + $0xb8] sm:$0xff] }
0x1181   : > { %v5309_v44 = vpack.c.bf16 %v4348_v43, %v4347_v42 }
0x1182   : > { %v3582_v39 = vsub.f32 %v6488_v18, %v3578_v45  ;;  %v4349_v45 = vld [vmem:[%s6762_s11 + $0xc0] sm:$0xff] }
0x1183   : > { %v3575_v34 = vpop.xlane.xlu0 %3574 }
0x1184   : > { %v3579_v46 = vmul.f32 0.03125, %v3575_v34  ;;  %v3586_v48 = vmul.f32 %v3582_v39, %v3582_v39 }
0x1186   : > { %v3583_v27 = vsub.f32 %v6490_v5, %v3579_v46  ;;  %v3594_v28 = vsel %vm652_vm1, %v3586_v48, 0.0  ;;  %v4351_v46 = vld [vmem:[%s6762_s11 + $0xd0] sm:$0xff]  ;;  %v4352_v48 = vld [vmem:[%s6762_s11 + $0xd8] sm:$0xff] }
0x1187   : > { %3595 = vadd.xlane.f32.xlu0 %v3594_v28  ;;  %v5317_v28 = vpack.c.bf16 %v4352_v48, %v4351_v46 }
0x1188   : > { %v3587_v22 = vmul.f32 %v3583_v27, %v3583_v27 }
0x118a   : > { %v3597_v49 = vsel %vm652_vm1, %v3587_v22, 0.0  ;;  %v4354_v22 = vld [vmem:[%s6762_s11 + $0xe8] sm:$0xff] }
0x118b   : > { %3598 = vadd.xlane.f32.xlu1 %v3597_v49 }
0x120c   : > { %v3593_v60 = vpop.xlane.xlu1 %3592 }
0x120d   : > { %v3601_v61 = vmul.f32 0.03125, %v3593_v60  ;;  %v3590_v62 = vpop.xlane.xlu0 %3589 }
0x120e   : > { %v3600_v3 = vmul.f32 0.03125, %v3590_v62 }
0x120f   : > { %v3605_v0 = vadd.f32 1e-06, %v3601_v61 }
0x1210   : > { %v3604_v59 = vadd.f32 1e-06, %v3600_v3 }
0x1211   : > { %5477 = vrsqrt.f32 %v3605_v0 }
0x1212   : > { %5479 = vrsqrt.f32 %v3604_v59 }
0x1214   : > { %v3596_v25 = vpop.xlane.xlu0 %3595 }
0x1215   : > { %v3602_v11 = vmul.f32 0.03125, %v3596_v25 }
0x1217   : > { %v3606_v58 = vadd.f32 1e-06, %v3602_v11 }
0x1218   : > { %v3599_v6 = vpop.xlane.xlu1 %3598 }
0x1219   : > { %5481 = vrsqrt.f32 %v3606_v58  ;;  %v3603_v35 = vmul.f32 0.03125, %v3599_v6 }
0x121b   : > { %v5478_v2 = vpop.eup %5477  ;;  %v3607_v8 = vadd.f32 1e-06, %v3603_v35 }
0x121c   : > { %v5480_v13 = vpop.eup %5479  ;;  %v3613_v15 = vmul.f32 %v5478_v2, %v3581_v9  ;;  %v5301_v9 = vpack.c.bf16 %v4344_v1, %v4343_v10 }
0x121d   : > { %5483 = vrsqrt.f32 %v3607_v8  ;;  %v3612_v41 = vmul.f32 %v5480_v13, %v3580_v12  ;;  %v4345_v12 = vld [vmem:[%s6762_s11 + $0xa0] sm:$0xff] }
0x121e   : > { %v3621_v21 = vmul.f32 %v3619_v7, %v3613_v15  ;;  %5302 = vmatprep.subr.bf16.mxu0 %v5301_v9  ;;  %v5305_v40 = vpack.c.bf16 %v4346_v20, %v4345_v12 }
0x121f   : > { %v3620_v26 = vmul.f32 %v3619_v7, %v3612_v41  ;;  %5304 = vmatpush3.bf16.msra.mxu0 %v5301_v9 }
0x1220   : > { %v3629_v30 = vadd.f32 %v3627_v29, %v3621_v21  ;;  %5306 = vmatprep.subr.bf16.mxu0 %v5305_v40 }
0x1221   : > { %v3628_v63 = vadd.f32 %v3627_v29, %v3620_v26 }
0x1223   : > { %v5482_v4 = vpop.eup %5481  ;;  %5001 = vmatprep.mubr.msk.f32.mxu1 %vm652_vm1, %v3628_v63  ;;  %5308 = vmatpush3.bf16.msra.mxu0 %v5305_v40 }
0x1224   : > { %5002 = vmatmul.mubr.msk.f32.vlgmr.msra.gmra.mrb[60].mxu1 %vm652_vm1, %v3629_v30  ;;  %v3614_v23 = vmul.f32 %v5482_v4, %v3582_v39  ;;  %5310 = vmatprep.subr.bf16.mxu0 %v5309_v44  ;;  %v4350_v39 = vld [vmem:[%s6762_s11 + $0xc8] sm:$0xff] }
0x1225   : > { %v5313_v34 = vpack.c.bf16 %v4350_v39, %v4349_v45  ;;  %v5502_v45 = vld [vmem:[%s6759_s8 + $0x8] sm:$0x3f] }
0x1226   : > { %v3622_v33 = vmul.f32 %v3619_v7, %v3614_v23  ;;  %v3887_v39 = vrot.slane %v5502_v45, %v6020_v51 }
0x1227   : > { %v5484_v31 = vpop.eup %5483  ;;  %5312 = vmatpush3.bf16.msra.mxu0 %v5309_v44 }
0x1228   : > { %v3630_v32 = vadd.f32 %v3627_v29, %v3622_v33  ;;  %v3615_v36 = vmul.f32 %v5484_v31, %v3583_v27  ;;  %5314 = vmatprep.subr.bf16.mxu0 %v5313_v34  ;;  %v4353_v27 = vld [vmem:[%s6762_s11 + $0xe0] sm:$0xff] }
0x1229   : > { %v5321_v49 = vpack.c.bf16 %v4354_v22, %v4353_v27 }
0x122a   : > { %5004 = vmatprep.mubr.msk.f32.mxu1 %vm652_vm1, %v3630_v32  ;;  %v3623_v37 = vmul.f32 %v3619_v7, %v3615_v36 }
0x122b   : > { %5316 = vmatpush3.bf16.msra.mxu0 %v5313_v34 }
0x122c   : > { %v3631_v38 = vadd.f32 %v3627_v29, %v3623_v37  ;;  %5318 = vmatprep.subr.bf16.mxu0 %v5317_v28 }
0x122e   : > { %5005 = vmatmul.mubr.msk.f32.gmra.mrb[62].mxu1 %vm652_vm1, %v3631_v38 }
0x122f   : > { %5320 = vmatpush3.bf16.msra.mxu0 %v5317_v28 }
0x1230   : > { %5322 = vmatprep.subr.bf16.mxu0 %v5321_v49 }
0x1233   : > { %5324 = vmatpush3.bf16.msra.mxu0 %v5321_v49 }
0x1234   : > { %5326 = vmatprep.subr.bf16.mxu0 %v5325_v47 }
0x1237   : > { %5328 = vmatpush3.bf16.msra.mxu0 %v5325_v47 }
0x12f7   : > { %v5003_v54 = vpop.f32.mrb[60].mxu1 }
0x12f8   : > { %v3729_v55 = vadd.f32 %v5003_v54, %v4336_v53  ;;  %v3723_v56 = vpop.f32.mrb[61].mxu1 }
0x12f9   : > { %v3724_v57 = vadd.f32 %v4336_v53, %v3723_v56 }
0x12fa   : > { %v3747_v14 = vmul.f32 0.044715, %v3729_v55  ;;  %v3743_v37 = vmul.f32 0.5, %v3729_v55 }
0x12fb   : > { %v3746_v60 = vmul.f32 0.044715, %v3724_v57  ;;  %v3742_v32 = vmul.f32 0.5, %v3724_v57 }
0x12fc   : > { %v3751_v61 = vmul.f32 %v3747_v14, %v3729_v55 }
0x12fd   : > { %v3750_v62 = vmul.f32 %v3746_v60, %v3724_v57 }
0x12fe   : > { %v3755_v3 = vmul.f32 %v3751_v61, %v3729_v55 }
0x12ff   : > { %v3754_v0 = vmul.f32 %v3750_v62, %v3724_v57 }
0x1300   : > { %v3759_v59 = vadd.f32 %v3755_v3, %v3729_v55 }
0x1301   : > { %v5006_v25 = vpop.f32.mrb[62].mxu1  ;;  %v3758_v11 = vadd.f32 %v3754_v0, %v3724_v57 }
0x1302   : > { %v3763_v58 = vmul.f32 0.7978846, %v3759_v59  ;;  %v3739_v6 = vadd.f32 %v5006_v25, %v4336_v53  ;;  %v3733_v35 = vpop.f32.mrb[63].mxu1 }
0x1303   : > { %v3734_v7 = vadd.f32 %v4336_v53, %v3733_v35  ;;  %v3762_v2 = vmul.f32 0.7978846, %v3758_v11 }
0x1304   : > { %5485 = vtanh.f32 %v3763_v58  ;;  %v3749_v8 = vmul.f32 0.044715, %v3739_v6  ;;  %v3745_v42 = vmul.f32 0.5, %v3739_v6 }
0x1305   : > { %v3748_v13 = vmul.f32 0.044715, %v3734_v7  ;;  %5487 = vtanh.f32 %v3762_v2  ;;  %v3744_v20 = vmul.f32 0.5, %v3734_v7 }
0x1306   : > { %v3753_v15 = vmul.f32 %v3749_v8, %v3739_v6 }
0x1307   : > { %v3752_v41 = vmul.f32 %v3748_v13, %v3734_v7 }
0x1308   : > { %v3757_v29 = vmul.f32 %v3753_v15, %v3739_v6 }
0x1309   : > { %v3756_v21 = vmul.f32 %v3752_v41, %v3734_v7 }
0x130a   : > { %v3761_v26 = vadd.f32 %v3757_v29, %v3739_v6 }
0x130b   : > { %v3760_v63 = vadd.f32 %v3756_v21, %v3734_v7 }
0x130c   : > { %v3765_v30 = vmul.f32 0.7978846, %v3761_v26 }
0x130d   : > { %v3764_v4 = vmul.f32 0.7978846, %v3760_v63 }
0x130e   : > { %v5486_v23 = vpop.eup %5485  ;;  %5489 = vtanh.f32 %v3765_v30 }
0x130f   : > { %v5488_v33 = vpop.eup %5487  ;;  %v3771_v31 = vadd.f32 1.0, %v5486_v23  ;;  %5491 = vtanh.f32 %v3764_v4 }
0x1310   : > { %v3770_v36 = vadd.f32 1.0, %v5488_v33 }
0x1311   : > { %v3775_v10 = vmul.f32 %v3771_v31, %v3743_v37 }
0x1312   : > { %v3774_v38 = vmul.f32 %v3770_v36, %v3742_v32 }
0x1314   : > { %5039 = vmatprep.mubr.f32.mxu0 %v3774_v38 }
0x1315   : > { %5040 = vmatmul.mubr.f32.vlgmr.msra.gmra.mrb[40].mxu0 %v3775_v10 }
0x1318   : > { %v5490_v1 = vpop.eup %5489 }
0x1319   : > { %v5492_v9 = vpop.eup %5491  ;;  %v3773_v12 = vadd.f32 1.0, %v5490_v1 }
0x131a   : > { %v3772_v40 = vadd.f32 1.0, %v5492_v9 }
0x131b   : > { %v3777_v44 = vmul.f32 %v3773_v12, %v3745_v42 }
0x131c   : > { %v3776_v43 = vmul.f32 %v3772_v40, %v3744_v20 }
0x131e   : > { %5042 = vmatprep.mubr.f32.mxu0 %v3776_v43 }
0x131f   : > { %5043 = vmatmul.mubr.f32.gmra.mrb[42].mxu0 %v3777_v44 }
0x13e8   : > { %v5041_v34 = vpop.f32.mrb[40].mxu0 }
0x13e9   : > { %v3881_v46 = vadd.f32 %v5041_v34, %v6478_v16  ;;  %v3861_v48 = vpop.f32.mrb[41].mxu0 }
0x13ea   : > { %v3880_v27 = vadd.f32 %v3861_v48, %v6480_v17 }
0x13eb   : > { %v3889_v28 = vadd.f32 %v3887_v39, %v3881_v46 }
0x13ec   : > { %v3888_v22 = vadd.f32 %v3887_v39, %v3880_v27 }
0x13ed   : > { %v3896_v49 = vsel %vm652_vm1, %v3889_v28, 0.0 }
0x13ee   : > { %3897 = vadd.xlane.f32.xlu1 %v3896_v49  ;;  %v3893_v50 = vsel %vm652_vm1, %v3888_v22, 0.0 }
0x13ef   : > { %3894 = vadd.xlane.f32.xlu0 %v3893_v50 }
0x13f2   : > { %v5044_v52 = vpop.f32.mrb[42].mxu0 }
0x13f3   : > { %v3883_v47 = vadd.f32 %v5044_v52, %v6490_v5  ;;  %v3871_v53 = vpop.f32.mrb[43].mxu0 }
0x13f4   : > { %v3882_v51 = vadd.f32 %v3871_v53, %v6488_v18 }
0x13f5   : > { %v3891_v54 = vadd.f32 %v3887_v39, %v3883_v47 }
0x13f6   : > { %v3890_v55 = vadd.f32 %v3887_v39, %v3882_v51 }
0x13f7   : > { %v3902_v16 = vsel %vm652_vm1, %v3891_v54, 0.0 }
0x13f8   : > { %3903 = vadd.xlane.f32.xlu1 %v3902_v16  ;;  %v3899_v17 = vsel %vm652_vm1, %v3890_v55, 0.0 }
0x13f9   : > { %3900 = vadd.xlane.f32.xlu0 %v3899_v17 }
0x147b   : > { %v3898_v56 = vpop.xlane.xlu1 %3897 }
0x147c   : > { %v3906_v57 = vmul.f32 0.03125, %v3898_v56  ;;  %v3895_v14 = vpop.xlane.xlu0 %3894 }
0x147d   : > { %v3905_v60 = vmul.f32 0.03125, %v3895_v14 }
0x147e   : > { %v6587_v61 = vsub.f32 %v3889_v28, %v3906_v57 }
0x147f   : > { %v6589_v62 = vsub.f32 %v3888_v22, %v3905_v60 }
0x1480   : > { %v3914_v5 = vmul.f32 %v6587_v61, %v6587_v61 }
0x1481   : > { %v3913_v18 = vmul.f32 %v6589_v62, %v6589_v62 }
0x1482   : > { %v3920_v3 = vsel %vm652_vm1, %v3914_v5, 0.0 }
0x1483   : > { %3921 = vadd.xlane.f32.xlu1 %v3920_v3  ;;  %v3917_v0 = vsel %vm652_vm1, %v3913_v18, 0.0 }
0x1484   : > { %3918 = vadd.xlane.f32.xlu0 %v3917_v0 }
0x1485   : > { %v3904_v59 = vpop.xlane.xlu1 %3903 }
0x1486   : > { %v3908_v25 = vmul.f32 0.03125, %v3904_v59  ;;  %v3901_v11 = vpop.xlane.xlu0 %3900 }
0x1487   : > { %v3907_v58 = vmul.f32 0.03125, %v3901_v11 }
0x1488   : > { %v6597_v6 = vsub.f32 %v3891_v54, %v3908_v25 }
0x1489   : > { %v6599_v35 = vsub.f32 %v3890_v55, %v3907_v58 }
0x148a   : > { %v3916_v7 = vmul.f32 %v6597_v6, %v6597_v6 }
0x148b   : > { %v3915_v2 = vmul.f32 %v6599_v35, %v6599_v35 }
0x148c   : > { %v3926_v8 = vsel %vm652_vm1, %v3916_v7, 0.0 }
0x148d   : > { %3927 = vadd.xlane.f32.xlu1 %v3926_v8  ;;  %v3923_v13 = vsel %vm652_vm1, %v3915_v2, 0.0 }
0x148e   : > { %3924 = vadd.xlane.f32.xlu0 %v3923_v13 }
0x148f   : > { %5516 = shalt.err (!%p5513_p3)
}
0x1490   : > { %s5517_s30 = scalar_lea.hbm %s6615_s20, 512  ;;  %s5521_s17 = scalar_lea.hbm %s6765_s14, 1024 }
0x1491   : > { %p5518_p4 = scmp.ne.s32.totalorder %s6615_s20, %s5517_s30  ;;  %p5522_p9 = scmp.lt.u32.totalorder %s6615_s20, %s6765_s14 }
0x1492   : > { %p5523_p10 = scmp.lt.u32.totalorder %s5521_s17, %s5517_s30  ;;  %p5525_p12 = scmp.lt.u32.totalorder %s5517_s30, %s6615_s20 }
0x1493   : > { %p5519_p7 = pnand %p5518_p4, %p5753_p5 }
0x1494   : > { %p5524_p11 = por %p5523_p10, %p5522_p9 }
0x1495   : > { %p5520_p8 = pneg %p5519_p7 }
0x1496   : > { %p5526_p13 = por %p5525_p12, %p5524_p11 }
0x1498   : > { %p5527_p0 = pnand %p5526_p13, %p5520_p8 }
0x149a   : > { %5530 = shalt.err (!%p5527_p0)
}
0x149b   : > { %s6775_s0 = smov 128   ;;  %s5630_s26 = smov 8  }
0x149c   : > { %5330 = dma.vmem_to_hbm [thread:$0]  (%p5753_p5), %s6618_s27, 512, %s6615_s20, %s6620_s2, %s6775_s0, %s6775_s0, %s5630_s26  }
0x149d   : > { %s6651_s23 = scalar_lea.hbm %s6764_s13, %s6609_s1  ;;  %s3989_s17 = sshll.u32 %s5808_s24, 4  ;;  %s6654_s17 = int_to_ptr.vmem [resolvable:$true] %s3989_s17 }
0x149e   : > { %s6794_s22 = sand.u32 1, %s5617_s19   ;;  %s5531_s3 = scalar_lea.vmem %s6654_s17, 512 }
0x149f   : > { %s6658_s29 = scalar_lea.sflag [#allocation3], %s6794_s22  ;;  %p5532_p1 = scmp.ne.s32.totalorder %s6654_s17, %s5531_s3 }
0x14a0   : > { %s5631_s20 = smov [#allocation2]  }
0x14a1   : > { %p5533_p2 = pnand %p5532_p1, %p5753_p5  ;;  %s5535_s27 = sshll.u32 %s5631_s20, 4  ;;  %s5536_s27 = int_to_ptr.vmem [resolvable:$false] %s5535_s27 }
0x14a2   : > { %s5537_s16 = scalar_lea.vmem %s5536_s27, 1024  ;;  %p5538_p4 = scmp.lt.s32.totalorder %s6654_s17, %s5536_s27 }
0x14a3   : > { %p5534_p3 = pneg %p5533_p2  ;;  %p5539_p7 = scmp.lt.s32.totalorder %s5537_s16, %s5531_s3 }
0x14a5   : > { %p5540_p8 = por %p5539_p7, %p5538_p4 }
0x14a7   : > { %p5541_p9 = pnand %p5540_p8, %p5534_p3 }
0x14a9   : > { %5544 = shalt.err (!%p5541_p9)
}
0x14aa   : > { %s5545_s24 = scalar_lea.hbm %s6651_s23, 512  ;;  %s5549_s20 = scalar_lea.hbm %s6764_s13, 1024 }
0x14ab   : > { %p5546_p10 = scmp.ne.s32.totalorder %s6651_s23, %s5545_s24  ;;  %p5550_p13 = scmp.lt.u32.totalorder %s6651_s23, %s6764_s13 }
0x14ac   : > { %p5551_p0 = scmp.lt.u32.totalorder %s5549_s20, %s5545_s24  ;;  %p5553_p2 = scmp.lt.u32.totalorder %s5545_s24, %s6651_s23 }
0x14ad   : > { %p5547_p11 = pnand %p5546_p10, %p5753_p5 }
0x14ae   : > { %p5552_p1 = por %p5551_p0, %p5550_p13 }
0x14af   : > { %p5548_p12 = pneg %p5547_p11 }
0x14b0   : > { %p5554_p3 = por %p5553_p2, %p5552_p1 }
0x14b2   : > { %p5555_p4 = pnand %p5554_p3, %p5548_p12 }
0x14b4   : > { %5558 = shalt.err (!%p5555_p4)
}
0x14b5   : > { %s6795_s3 = smov 128   ;;  %v3892_v4 = vld [vmem:[%s6763_s12] sm:$0x3]  ;;  %s5632_s22 = smov [#allocation6]  }
0x14b6   : > { %5329 = dma.vmem_to_hbm [thread:$0]  (%p5753_p5), %s6654_s17, 512, %s6651_s23, %s6658_s29, %s6795_s3, %s6795_s3, %s5630_s26   ;;  %v3948_v36 = vrot.slane %v3892_v4, %v5897_v19  ;;  %v3956_v1 = vrot.slane %v3892_v4, %v5905_v24 }
0x14b7   : > { %s520_s23 = scalar_lea.vmem [#allocation6], %s5795_s25  ;;  %s6701_s25 = scalar_lea.hbm %s6766_s15, %s6609_s1 }
0x14b8   : > { %s4021_s17 = sshll.u32 %s520_s23, 4  ;;  %s5563_s20 = sshll.u32 %s5632_s22, 4  ;;  %s6703_s17 = int_to_ptr.vmem [resolvable:$true] %s4021_s17  ;;  %s5564_s20 = int_to_ptr.vmem [resolvable:$false] %s5563_s20 }
0x14b9   : > { %s5559_s30 = scalar_lea.vmem %s6703_s17, 512  ;;  %s5565_s27 = scalar_lea.vmem %s5564_s20, 1024 }
0x14ba   : > { %p5560_p7 = scmp.ne.s32.totalorder %s6703_s17, %s5559_s30  ;;  %p5566_p10 = scmp.lt.s32.totalorder %s6703_s17, %s5564_s20 }
0x14bb   : > { %p5567_p11 = scmp.lt.s32.totalorder %s5565_s27, %s5559_s30 }
0x14bc   : > { %p5561_p8 = pnand %p5560_p7, %p5753_p5 }
0x14bd   : > { %p5568_p12 = por %p5567_p11, %p5566_p10 }
0x14be   : > { %p5562_p9 = pneg %p5561_p8 }
0x14c0   : > { %p5569_p13 = pnand %p5568_p12, %p5562_p9 }
0x1510   : > { %v3922_v15 = vpop.xlane.xlu1 %3921 }
0x1511   : > { %v3930_v41 = vmul.f32 0.03125, %v3922_v15  ;;  %v3919_v29 = vpop.xlane.xlu0 %3918 }
0x1512   : > { %v3929_v21 = vmul.f32 0.03125, %v3919_v29 }
0x1513   : > { %v3934_v26 = vadd.f32 1e-06, %v3930_v41 }
0x1514   : > { %v3933_v63 = vadd.f32 1e-06, %v3929_v21 }
0x1515   : > { %5493 = vrsqrt.f32 %v3934_v26 }
0x1516   : > { %5495 = vrsqrt.f32 %v3933_v63 }
0x151a   : > { %v3928_v30 = vpop.xlane.xlu1 %3927 }
0x151b   : > { %v3932_v23 = vmul.f32 0.03125, %v3928_v30  ;;  %v3925_v33 = vpop.xlane.xlu0 %3924 }
0x151c   : > { %v3931_v31 = vmul.f32 0.03125, %v3925_v33 }
0x151d   : > { %v3936_v32 = vadd.f32 1e-06, %v3932_v23 }
0x151e   : > { %v3935_v37 = vadd.f32 1e-06, %v3931_v31 }
0x151f   : > { %v5494_v38 = vpop.eup %5493  ;;  %5497 = vrsqrt.f32 %v3936_v32 }
0x1520   : > { %v5496_v10 = vpop.eup %5495  ;;  %v3942_v9 = vmul.f32 %v5494_v38, %v6587_v61  ;;  %5499 = vrsqrt.f32 %v3935_v37 }
0x1521   : > { %v3941_v12 = vmul.f32 %v5496_v10, %v6589_v62 }
0x1522   : > { %v3950_v20 = vmul.f32 %v3948_v36, %v3942_v9 }
0x1523   : > { %v3949_v40 = vmul.f32 %v3948_v36, %v3941_v12 }
0x1524   : > { %v3958_v42 = vadd.f32 %v3956_v1, %v3950_v20 }
0x1525   : > { %v3957_v43 = vadd.f32 %v3956_v1, %v3949_v40 }
0x1526   : > { %3962 = vst.msk [vmem:[%s520_s23 + $0x8] sm:$0xff] %vm652_vm1, %v3958_v42 }
0x1527   : > { %3961 = vst.msk [vmem:[%s520_s23] sm:$0xff] %vm652_vm1, %v3957_v43 }
0x1529   : > { %v5498_v19 = vpop.eup %5497 }
0x152a   : > { %v5500_v44 = vpop.eup %5499  ;;  %v3944_v24 = vmul.f32 %v5498_v19, %v6597_v6 }
0x152b   : > { %v3943_v45 = vmul.f32 %v5500_v44, %v6599_v35 }
0x152c   : > { %v3952_v39 = vmul.f32 %v3948_v36, %v3944_v24 }
0x152d   : > { %v3951_v34 = vmul.f32 %v3948_v36, %v3943_v45 }
0x152e   : > { %v3960_v46 = vadd.f32 %v3956_v1, %v3952_v39 }
0x152f   : > { %v3959_v48 = vadd.f32 %v3956_v1, %v3951_v34 }
0x1530   : > { %3964 = vst.msk [vmem:[%s520_s23 + $0x18] sm:$0xff] %vm652_vm1, %v3960_v46 }
0x1531   : > { %3963 = vst.msk [vmem:[%s520_s23 + $0x10] sm:$0xff] %vm652_vm1, %v3959_v48 }
0x1532   : > { %5572 = shalt.err (!%p5569_p13)
}
0x1533   : > { %s5573_s1 = scalar_lea.hbm %s6701_s25, 512  ;;  %s5577_s23 = scalar_lea.hbm %s6766_s15, 1024 }
0x1534   : > { %p5574_p0 = scmp.ne.s32.totalorder %s6701_s25, %s5573_s1  ;;  %p5578_p3 = scmp.lt.u32.totalorder %s6701_s25, %s6766_s15 }
0x1535   : > { %p5579_p4 = scmp.lt.u32.totalorder %s5577_s23, %s5573_s1  ;;  %p5581_p8 = scmp.lt.u32.totalorder %s5573_s1, %s6701_s25 }
0x1536   : > { %p5575_p1 = pnand %p5574_p0, %p5753_p5 }
0x1537   : > { %p5580_p7 = por %p5579_p4, %p5578_p3 }
0x1538   : > { %p5576_p2 = pneg %p5575_p1 }
0x1539   : > { %p5582_p9 = por %p5581_p8, %p5580_p7 }
0x153b   : > { %p5583_p10 = pnand %p5582_p9, %p5576_p2 }
0x153d   : > { %5586 = shalt.err (!%p5583_p10)
}
0x153e   : > { %5331 = dma.vmem_to_hbm [thread:$0]  (%p5753_p5), %s6703_s17, 512, %s6701_s25, %s6620_s2, %s6795_s3, %s6795_s3, %s5630_s26  }
0x153f PF: > { %p5345_p11 = scmp.ge.s32.totalorder %s5625_s21, 2  ;;  %s4036_s22 = sand.u32 1, %s5613_s18  }
0x1540   : > { %s4037_s20 = scalar_lea.sflag [#allocation3], %s4036_s22 }
0x1541   : > { %p5336_p12 = pnand %p5345_p11, %p5757_p6 }
0x1543   : > { %5604 = dma.done.wait (!%p5336_p12), %s4037_s20, 512  }
0x1544   : > { %5606 = vsyncadd (!%p5336_p12), %s4037_s20, 4294966784  ;;  %s6797_s28 = sadd.s32 4294967294, %s5625_s21  }
0x1545   : > { %s4045_s27 = sand.u32 1, %s6797_s28  }
0x1546   : > { %s4046_s1 = scalar_lea.sflag [#allocation5], %s4045_s27 }
0x1547   : > { %5608 = dma.done.wait (!%p5336_p12), %s4046_s1, 1024  }
0x1548   : > { %5610 = vsyncadd (!%p5336_p12), %s4046_s1, 4294966272  ;;  %s6798_s21 = sld [smem:[#allocation10_spill]]  ;;  %s6799_s2 = sld [smem:[#allocation9_spill]] }
0x1549   : > { %s6800_s20 = sld [smem:[#allocation11_spill]]  ;;  %s6801_s18 = smov %s5617_s19 }
0x154e   : > { %p29_p5 = scmp.ge.s32.totalorder %s6798_s21, 4   ;;  %s6802_s19 = smov %s6799_s2 }
0x1550   :  { %31 = sbr.rel (!%p29_p5) target bundleno = 10 (0xa), region = 159 }
0x1557   :  { %4060 = vsyncpa [#allocation3], 1 }
0x1558   :  { %4062 = vsyncpa [#allocation3 + $0x1], 1 }
0x1559   :  { %4063 = vsyncpa [#allocation5], 1 }
0x155a   :  { %4065 = vsyncpa [#allocation5 + $0x1], 1 }

</bundles_post_ra>
